<compile_context>
chip_gen: v7x
topology: tpu7x:2x2x1
jax: 0.10.0
libtpu: 0.0.40
codegen_flags: <defaults>
</compile_context>

<pallas_src>
import functools

import jax
import jax.numpy as jnp
import numpy as np
from jax import lax
from jax.experimental import pallas as pl
from jax.experimental.pallas import tpu as pltpu


# --------------------------------------------------------------------------- #
# 1) k-NN graph builder                                                        #
# --------------------------------------------------------------------------- #
def _knn_kernel(x_ref, idx_ref, *, k: int, use_argmin: bool):
    """x_ref: (B, M, D) f32. idx_ref: (B, k, M) i32, lane-dense (points on lanes)."""
    x = x_ref[...]
    bsz, m, _ = x.shape

    # Gram on the MXU, contracting on D directly (no explicit transpose of x).
    gram = jnp.einsum("bmd,bnd->bmn", x, x, preferred_element_type=jnp.float32)
    # ||x_i||^2 is constant per row -> drop it; ranking needs only ||x_j||^2 - 2<x_i,x_j>.
    x2 = jnp.sum(x * x, axis=-1)                         # (B, M)
    dist = x2[:, None, :] - 2.0 * gram                   # (B, M, M)

    lane = lax.broadcasted_iota(jnp.int32, (1, 1, m), 2)  # small iota, lives once
    sub = lax.broadcasted_iota(jnp.int32, (1, k, 1), 1)

    def step(j, carry):
        d, out = carry
        if use_argmin:
            idx = jnp.argmin(d, axis=-1).astype(jnp.int32)              # (B, M)
        else:
            # guaranteed-lowering fallback: value min + index-of-min
            mn = jnp.min(d, axis=-1, keepdims=True)
            idx = jnp.min(jnp.where(d == mn, lane, m), axis=-1).astype(jnp.int32)
        out = jnp.where(sub == j, idx[:, None, :], out)                  # write row j
        d = jnp.where(lane == idx[:, :, None], jnp.inf, d)               # knock out
        return d, out

    init = (dist, jnp.zeros((bsz, k, m), jnp.int32))
    _, out = lax.fori_loop(0, k, step, init, unroll=True)
    idx_ref[...] = out                                   # single dense lane-wide store


def _knn_pallas(x, k, *, use_argmin: bool, samples_per_block: int):
    n, m, d = x.shape
    grid = (n // samples_per_block,)

    cp_kwargs = dict(dimension_semantics=("parallel",))
    est_bytes = 4 * samples_per_block * m * m * 4 + 2 * samples_per_block * m * d * 4
    if est_bytes > 12 * 1024 * 1024:   # raise the scoped VMEM cap only when needed
        cp_kwargs["vmem_limit_bytes"] = int(min(2 * est_bytes, 100 * 1024 * 1024))

    return pl.pallas_call(
        functools.partial(_knn_kernel, k=k, use_argmin=use_argmin),
        out_shape=jax.ShapeDtypeStruct((n, k, m), jnp.int32),
        grid_spec=pltpu.PrefetchScalarGridSpec(
            num_scalar_prefetch=0,
            grid=grid,
            in_specs=[pl.BlockSpec((samples_per_block, m, d), lambda b: (b, 0, 0))],
            out_specs=pl.BlockSpec((samples_per_block, k, m), lambda b: (b, 0, 0)),
        ),
        compiler_params=pltpu.CompilerParams(**cp_kwargs),
    )(x)


def knn_neighbors(x: jax.Array, k: int) -> jax.Array:
    """(n_samples, n_points, dims) -> (n_samples, n_points, k) int32 neighbor indices
    (ascending distance, self included) -- the index table dgl.knn_graph is built from."""
    if x.ndim == 2:
        x = x[None]
    n, m, _ = x.shape
    x = x.astype(jnp.float32)

    # amortize the ~0.35us per-grid-step overhead: pack point sets per step when small
    per_sample_bytes = 4 * m * m * 4
    spb = max(1, min(n, (8 * 1024 * 1024) // max(per_sample_bytes, 1)))
    while n % spb:
        spb -= 1

    err = None
    for use_argmin in (True, False):   # prefer 1-reduction argmin, fall back if unsupported
        try:
            out = _knn_pallas(x, k, use_argmin=use_argmin, samples_per_block=spb)
            out = jax.block_until_ready(out)
            return jnp.swapaxes(out, 1, 2)               # (n, m, k)
        except Exception as e:                            # lowering/compile fallback
            err = e
    raise err


# --------------------------------------------------------------------------- #
# 2) fc / fc_e : 4-layer Linear + LeakyReLU(-0.8) MLP                          #
# --------------------------------------------------------------------------- #
def _mlp4_kernel(x_ref, w1, b1, w2, b2, w3, b3, w4, b4, o_ref, *, slope: float):
    def layer(h, w_ref, b_ref):
        h = jnp.dot(h, w_ref[...], preferred_element_type=jnp.float32) + b_ref[...]
        return jnp.where(h > 0, h, slope * h)             # LeakyReLU(negative_slope=slope)

    h = x_ref[...]
    h = layer(h, w1, b1)
    h = layer(h, w2, b2)
    h = layer(h, w3, b3)
    o_ref[...] = layer(h, w4, b4)


def mlp4_forward(x, ws, bs, *, row_block: int, slope: float = -0.8):
    assert len(ws) == 4 and len(bs) == 4
    n = x.shape[0]
    assert n % row_block == 0
    grid = (n // row_block,)

    in_specs = [pl.BlockSpec((row_block, x.shape[1]), lambda i: (i, 0))]
    args = [x]
    for w, b in zip(ws, bs):
        in_specs.append(pl.BlockSpec(w.shape, lambda i: (0, 0)))
        in_specs.append(pl.BlockSpec(b.shape, lambda i: (0, 0)))
        args.extend([w, b])
    out_dim = ws[-1].shape[1]

    return pl.pallas_call(
        functools.partial(_mlp4_kernel, slope=slope),
        out_shape=jax.ShapeDtypeStruct((n, out_dim), jnp.float32),
        grid_spec=pltpu.PrefetchScalarGridSpec(
            num_scalar_prefetch=0,
            grid=grid,
            in_specs=in_specs,
            out_specs=pl.BlockSpec((row_block, out_dim), lambda i: (i, 0)),
        ),
        compiler_params=pltpu.CompilerParams(dimension_semantics=("parallel",)),
    )(*args)


# --------------------------------------------------------------------------- #
# 3) Gaussian edge weights + gather + fixed-degree aggregation                 #
# --------------------------------------------------------------------------- #
def _gmm_aggregate_kernel(nbr_ref, pseudo_ref, h_ref, he_ref,
                          mu_ref, isig_ref, mue_ref, isige_ref, bias_ref,
                          rst_ref, rste_ref, *, k: int, n_kernels: int, out_feats: int):
    n_nodes = h_ref.shape[0]
    et = nbr_ref.shape[0]          # edges of this destination tile (= tile_nodes * k)
    tn = rst_ref.shape[0]

    # gather source-node features with a one-hot MXU matmul (regular, no scatter).
    # TODO(synk): for large graphs replace the (E_t, N) one-hot gather with a DMA gather.
    lane_nodes = lax.broadcasted_iota(jnp.int32, (1, n_nodes), 1)
    onehot = (nbr_ref[...] == lane_nodes).astype(jnp.float32)                    # (et, N)
    gath_h = jnp.dot(onehot, h_ref[...], preferred_element_type=jnp.float32)     # (et, K*out)
    gath_he = jnp.dot(onehot, he_ref[...], preferred_element_type=jnp.float32)   # (et, K)

    # per-edge Gaussian mixture weights: exp(-0.5 * sum_d (u-mu)^2 * inv_sigma^2),
    # expanded quadratic so everything runs as (et,dim)x(dim,K) MXU contractions.
    p = pseudo_ref[...]                                                          # (et, dim)
    dn = (((1,), (1,)), ((), ()))                                                # contract dim

    def gaussian(mu_r, isig_r):
        mu = mu_r[...]
        s2 = isig_r[...] * isig_r[...]                                           # (K, dim)
        a = lax.dot_general(p * p, s2, dn, preferred_element_type=jnp.float32)   # (et, K)
        b = lax.dot_general(p, mu * s2, dn, preferred_element_type=jnp.float32)  # (et, K)
        c = jnp.sum(mu * mu * s2, axis=1)[None, :]                               # (1, K)
        return jnp.exp(-0.5 * (a - 2.0 * b + c))                                 # (et, K)

    w = gaussian(mu_ref, isig_ref)
    we = gaussian(mue_ref, isige_ref)

    # u_mul_e messages + sum over the K mixture kernels (static lane slices only)
    weighted = gath_h[:, 0:out_feats] * w[:, 0:1]
    for kk in range(1, n_kernels):
        weighted = weighted + gath_h[:, kk * out_feats:(kk + 1) * out_feats] * w[:, kk:kk + 1]
    weighted_e = jnp.sum(gath_he * we, axis=1, keepdims=True)                    # (et, 1)

    # reduce edges onto their destination node (edges are dst-major contiguous):
    # Agg[i, e] = 1  iff  i*k <= e < (i+1)*k    (built from iotas, no div/mod)
    ri = lax.broadcasted_iota(jnp.int32, (tn, et), 0)
    ci = lax.broadcasted_iota(jnp.int32, (tn, et), 1)
    agg = ((ci >= ri * k) & (ci < ri * k + k)).astype(jnp.float32)               # (tn, et)

    rst_ref[...] = (jnp.dot(agg, weighted, preferred_element_type=jnp.float32)
                    + bias_ref[...])                                             # sum reducer
    rste_ref[...] = (jnp.dot(agg, weighted_e, preferred_element_type=jnp.float32)
                     * (1.0 / k))                                                # mean reducer


def gmm_conv_forward(params, nbr, feat, feat_e, pseudo, *, out_feats, n_kernels,
                     node_block=None):
    """GMMConv.forward on a fixed-in-degree-k graph given by the (N, k) neighbor table."""
    n_nodes, k = nbr.shape
    dim = pseudo.shape[1]
    if node_block is None:
        node_block = n_nodes if n_nodes <= 128 else 128
    assert n_nodes % node_block == 0
    assert node_block == n_nodes or node_block % 8 == 0

    # fc / fc_e node MLPs (Pallas)
    h = mlp4_forward(feat, params["fc_w"], params["fc_b"], row_block=node_block)      # (N, K*out)
    h_e = mlp4_forward(feat_e, params["fce_w"], params["fce_b"], row_block=node_block)  # (N, K)

    nbr_col = nbr.reshape(-1, 1).astype(jnp.int32)                                    # (E, 1)
    eb = node_block * k
    grid = (n_nodes // node_block,)

    rst, rst_e = pl.pallas_call(
        functools.partial(_gmm_aggregate_kernel, k=k, n_kernels=n_kernels,
                          out_feats=out_feats),
        out_shape=(jax.ShapeDtypeStruct((n_nodes, out_feats), jnp.float32),
                   jax.ShapeDtypeStruct((n_nodes, 1), jnp.float32)),
        grid_spec=pltpu.PrefetchScalarGridSpec(
            num_scalar_prefetch=0,
            grid=grid,
            in_specs=[
                pl.BlockSpec((eb, 1), lambda i: (i, 0)),          # neighbor ids of this tile
                pl.BlockSpec((eb, dim), lambda i: (i, 0)),        # pseudo coords of this tile
                pl.BlockSpec(h.shape, lambda i: (0, 0)),          # full source feature table
                pl.BlockSpec(h_e.shape, lambda i: (0, 0)),
                pl.BlockSpec(params["mu"].shape, lambda i: (0, 0)),
                pl.BlockSpec(params["inv_sigma"].shape, lambda i: (0, 0)),
                pl.BlockSpec(params["mu_e"].shape, lambda i: (0, 0)),
                pl.BlockSpec(params["inv_sigma_e"].shape, lambda i: (0, 0)),
                pl.BlockSpec(params["bias"].shape, lambda i: (0, 0)),
            ],
            out_specs=(pl.BlockSpec((node_block, out_feats), lambda i: (i, 0)),
                       pl.BlockSpec((node_block, 1), lambda i: (i, 0))),
        ),
        compiler_params=pltpu.CompilerParams(dimension_semantics=("parallel",)),
    )(nbr_col, pseudo, h, h_e, params["mu"], params["inv_sigma"],
      params["mu_e"], params["inv_sigma_e"], params["bias"])
    return rst, rst_e


# --------------------------------------------------------------------------- #
# parameters + pure-JAX reference                                              #
# --------------------------------------------------------------------------- #
def init_gmm_conv_params(key, in_feats, out_feats, dim, n_kernels):
    widths = [in_feats, 20, 40, 60, n_kernels * out_feats]
    widths_e = [1, 20, 40, 60, n_kernels]
    keys = jax.random.split(key, 13)

    def lin(rng, fan_in, fan_out):
        kw, kb = jax.random.split(rng)
        w = jax.random.normal(kw, (fan_in, fan_out), jnp.float32) / float(np.sqrt(fan_in))
        b = 0.01 * jax.random.normal(kb, (1, fan_out), jnp.float32)
        return w, b

    fc = [lin(keys[i], widths[i], widths[i + 1]) for i in range(4)]
    fce = [lin(keys[4 + i], widths_e[i], widths_e[i + 1]) for i in range(4)]
    return dict(
        fc_w=[w for w, _ in fc], fc_b=[b for _, b in fc],
        fce_w=[w for w, _ in fce], fce_b=[b for _, b in fce],
        mu=0.1 * jax.random.normal(keys[8], (n_kernels, dim), jnp.float32),
        inv_sigma=1.0 + 0.1 * jax.random.normal(keys[9], (n_kernels, dim), jnp.float32),
        mu_e=0.1 * jax.random.normal(keys[10], (n_kernels, dim), jnp.float32),
        inv_sigma_e=1.0 + 0.1 * jax.random.normal(keys[11], (n_kernels, dim), jnp.float32),
        bias=0.01 * jax.random.normal(keys[12], (1, out_feats), jnp.float32),
    )


def gmm_conv_reference(params, nbr, feat, feat_e, pseudo, *, out_feats, n_kernels):
    hp = lax.Precision.HIGHEST

    def leaky(x):
        return jnp.where(x > 0, x, -0.8 * x)

    def mlp(x, ws, bs):
        for w, b in zip(ws, bs):
            x = leaky(jnp.dot(x, w, precision=hp) + b)
        return x

    n_nodes, k = nbr.shape
    h = mlp(feat, params["fc_w"], params["fc_b"]).reshape(n_nodes, n_kernels, out_feats)
    h_e = mlp(feat_e, params["fce_w"], params["fce_b"]).reshape(n_nodes, n_kernels, 1)
    src = nbr.reshape(-1)

    def gauss(mu, inv_sigma):
        d = pseudo[:, None, :] - mu[None, :, :]
        return jnp.exp(jnp.sum(-0.5 * d * d * (inv_sigma[None] ** 2), axis=-1))   # (E, K)

    w = gauss(params["mu"], params["inv_sigma"])
    we = gauss(params["mu_e"], params["inv_sigma_e"])

    msg = h[src] * w[:, :, None]                                                  # (E, K, out)
    agg = msg.reshape(n_nodes, k, n_kernels, out_feats).sum(axis=1)               # sum reducer
    rst = agg.sum(axis=1) + params["bias"]

    msg_e = h_e[src][:, :, 0] * we                                                # (E, K)
    agg_e = msg_e.reshape(n_nodes, k, n_kernels).mean(axis=1)                     # mean reducer
    rst_e = agg_e.sum(axis=1, keepdims=True)
    return rst, rst_e


# --------------------------------------------------------------------------- #
# demo / self-test                                                             #
# --------------------------------------------------------------------------- #
if __name__ == "__main__":
    key = jax.random.PRNGKey(0)
    k_pts, k_feat, k_feat_e, k_param = jax.random.split(key, 4)

    # 2 point sets of 16 points in 3-D -> 32 graph nodes, k = 4 neighbors
    n_samples, n_points, coord_dim, k = 2, 16, 3, 4
    in_feats, out_feats, n_kernels = 16, 8, 4
    n_nodes = n_samples * n_points

    points = jax.random.normal(k_pts, (n_samples, n_points, coord_dim), jnp.float32)

    # 1) k-NN graph (Pallas)
    nbr_local = knn_neighbors(points, k)                                          # (n, m, k)
    offset = (jnp.arange(n_samples, dtype=jnp.int32) * n_points)[:, None, None]
    nbr = (nbr_local + offset).reshape(n_nodes, k)                                # (N, k)

    # sanity check the neighbor *sets* against a dense argsort reference
    coords = np.asarray(points)
    sq = np.sum(coords ** 2, axis=-1)
    d2 = sq[:, :, None] + sq[:, None, :] - 2.0 * coords @ np.swapaxes(coords, 1, 2)
    ref_idx = np.argsort(d2, axis=-1, kind="stable")[..., :k]
    assert np.array_equal(np.sort(np.asarray(nbr_local), -1), np.sort(ref_idx, -1)), \
        "k-NN neighbor sets mismatch"

    # 2) GMMConv inputs: node features, scalar node/edge feature, pseudo coords per edge
    feat = jax.random.normal(k_feat, (n_nodes, in_feats), jnp.float32)
    feat_e = jax.random.normal(k_feat_e, (n_nodes, 1), jnp.float32)
    flat_coords = points.reshape(n_nodes, coord_dim)
    src = nbr.reshape(-1)
    dst = jnp.repeat(jnp.arange(n_nodes, dtype=jnp.int32), k)
    pseudo = flat_coords[src] - flat_coords[dst]                                  # (E, dim)

    params = init_gmm_conv_params(k_param, in_feats, out_feats, coord_dim, n_kernels)

    rst, rst_e = gmm_conv_forward(params, nbr, feat, feat_e, pseudo,
                                  out_feats=out_feats, n_kernels=n_kernels, node_block=8)
    rst, rst_e = jax.block_until_ready((rst, rst_e))

    rst_ref, rst_e_ref = gmm_conv_reference(params, nbr, feat, feat_e, pseudo,
                                            out_feats=out_feats, n_kernels=n_kernels)
    np.testing.assert_allclose(np.asarray(rst), np.asarray(rst_ref), rtol=2e-3, atol=2e-3)
    np.testing.assert_allclose(np.asarray(rst_e), np.asarray(rst_e_ref), rtol=2e-3, atol=2e-3)

    print("KERNEL_OK")
</pallas_src>

<mosaic_0001>
module attributes {stable_mosaic.version = 11 : i64} {
  func.func @_knn_kernel(%arg0: i32, %arg1: memref<2x16x3xf32, #tpu.memory_space<vmem>>, %arg2: memref<2x4x16xi32, #tpu.memory_space<vmem>>) attributes {dimension_semantics = [#tpu.dimension_semantics<parallel>], iteration_bounds = array<i64: 1>, scalar_prefetch = 0 : i64, scratch_operands = 0 : i64, tpu.core_type = #tpu.core_type<tc>, window_params = [{transform_indices = @transform_0, window_bounds = array<i64: 2, 16, 3>}, {transform_indices = @transform_1, window_bounds = array<i64: 2, 4, 16>}]} {
    %c0 = arith.constant 0 : index
    %c0_0 = arith.constant 0 : index
    %c0_1 = arith.constant 0 : index
    %0 = vector.load %arg1[%c0, %c0_0, %c0_1] : memref<2x16x3xf32, #tpu.memory_space<vmem>>, vector<2x16x3xf32>
    "tpu.trace_start"() <{level = 10 : i32, message = "bmd,bnd->bmn"}> : () -> ()
    %cst = arith.constant dense<0.000000e+00> : vector<2x16x16xf32>
    %1 = tpu.matmul %0, %0, %cst {dimension_numbers = #tpu.dot_dimension_numbers<[2], [2], [1], [1], [0, 0, 0, 1, 1, 1], [0], [0]>} : vector<2x16x3xf32>, vector<2x16x3xf32>, vector<2x16x16xf32> -> vector<2x16x16xf32>
    "tpu.trace_stop"() : () -> ()
    %2 = arith.mulf %0, %0 : vector<2x16x3xf32>
    %cst_2 = arith.constant dense<0.000000e+00> : vector<2x16xf32>
    %3 = vector.multi_reduction <add>, %2, %cst_2 [2] : vector<2x16x3xf32> to vector<2x16xf32>
    %4 = vector.shape_cast %3 : vector<2x16xf32> to vector<2x1x16xf32>
    %cst_3 = arith.constant 2.000000e+00 : f32
    %5 = vector.broadcast %cst_3 : f32 to vector<2x16x16xf32>
    %6 = arith.mulf %5, %1 : vector<2x16x16xf32>
    %7 = vector.broadcast %4 : vector<2x1x16xf32> to vector<2x16x16xf32>
    %8 = arith.subf %7, %6 : vector<2x16x16xf32>
    %9 = tpu.iota {dimensions = array<i32: 2>} : vector<1x1x16xi32>
    %10 = tpu.iota {dimensions = array<i32: 1>} : vector<1x4x1xi32>
    %c0_i32 = arith.constant 0 : i32
    %11 = vector.broadcast %c0_i32 : i32 to vector<2x4x16xi32>
    %c0_i32_4 = arith.constant 0 : i32
    %12 = tpu.reduce_index %8 {axis = 2 : i32, kind = #tpu.reduction_kind<arg_min>} : vector<2x16x16xf32> -> vector<2x16xi32>
    %13 = vector.broadcast %c0_i32_4 : i32 to vector<1x4x1xi32>
    %14 = arith.cmpi eq, %10, %13 : vector<1x4x1xi32>
    %15 = vector.shape_cast %12 : vector<2x16xi32> to vector<2x1x16xi32>
    %16 = vector.shape_cast %14 : vector<1x4x1xi1> to vector<1x4x1xi1>
    %17 = vector.broadcast %16 : vector<1x4x1xi1> to vector<2x4x16xi1>
    %18 = vector.shape_cast %15 : vector<2x1x16xi32> to vector<2x1x16xi32>
    %19 = vector.broadcast %18 : vector<2x1x16xi32> to vector<2x4x16xi32>
    %20 = arith.select %17, %19, %11 : vector<2x4x16xi1>, vector<2x4x16xi32>
    %21 = vector.shape_cast %12 : vector<2x16xi32> to vector<2x16x1xi32>
    %22 = vector.broadcast %9 : vector<1x1x16xi32> to vector<2x16x16xi32>
    %23 = vector.broadcast %21 : vector<2x16x1xi32> to vector<2x16x16xi32>
    %24 = arith.cmpi eq, %22, %23 : vector<2x16x16xi32>
    %cst_5 = arith.constant 0x7F800000 : f32
    %25 = vector.broadcast %cst_5 : f32 to vector<2x16x16xf32>
    %26 = arith.select %24, %25, %8 : vector<2x16x16xi1>, vector<2x16x16xf32>
    %c1_i32 = arith.constant 1 : i32
    %27 = tpu.reduce_index %26 {axis = 2 : i32, kind = #tpu.reduction_kind<arg_min>} : vector<2x16x16xf32> -> vector<2x16xi32>
    %28 = vector.broadcast %c1_i32 : i32 to vector<1x4x1xi32>
    %29 = arith.cmpi eq, %10, %28 : vector<1x4x1xi32>
    %30 = vector.shape_cast %27 : vector<2x16xi32> to vector<2x1x16xi32>
    %31 = vector.shape_cast %29 : vector<1x4x1xi1> to vector<1x4x1xi1>
    %32 = vector.broadcast %31 : vector<1x4x1xi1> to vector<2x4x16xi1>
    %33 = vector.shape_cast %30 : vector<2x1x16xi32> to vector<2x1x16xi32>
    %34 = vector.broadcast %33 : vector<2x1x16xi32> to vector<2x4x16xi32>
    %35 = arith.select %32, %34, %20 : vector<2x4x16xi1>, vector<2x4x16xi32>
    %36 = vector.shape_cast %27 : vector<2x16xi32> to vector<2x16x1xi32>
    %37 = vector.broadcast %9 : vector<1x1x16xi32> to vector<2x16x16xi32>
    %38 = vector.broadcast %36 : vector<2x16x1xi32> to vector<2x16x16xi32>
    %39 = arith.cmpi eq, %37, %38 : vector<2x16x16xi32>
    %cst_6 = arith.constant 0x7F800000 : f32
    %40 = vector.broadcast %cst_6 : f32 to vector<2x16x16xf32>
    %41 = arith.select %39, %40, %26 : vector<2x16x16xi1>, vector<2x16x16xf32>
    %c2_i32 = arith.constant 2 : i32
    %42 = tpu.reduce_index %41 {axis = 2 : i32, kind = #tpu.reduction_kind<arg_min>} : vector<2x16x16xf32> -> vector<2x16xi32>
    %43 = vector.broadcast %c2_i32 : i32 to vector<1x4x1xi32>
    %44 = arith.cmpi eq, %10, %43 : vector<1x4x1xi32>
    %45 = vector.shape_cast %42 : vector<2x16xi32> to vector<2x1x16xi32>
    %46 = vector.shape_cast %44 : vector<1x4x1xi1> to vector<1x4x1xi1>
    %47 = vector.broadcast %46 : vector<1x4x1xi1> to vector<2x4x16xi1>
    %48 = vector.shape_cast %45 : vector<2x1x16xi32> to vector<2x1x16xi32>
    %49 = vector.broadcast %48 : vector<2x1x16xi32> to vector<2x4x16xi32>
    %50 = arith.select %47, %49, %35 : vector<2x4x16xi1>, vector<2x4x16xi32>
    %51 = vector.shape_cast %42 : vector<2x16xi32> to vector<2x16x1xi32>
    %52 = vector.broadcast %9 : vector<1x1x16xi32> to vector<2x16x16xi32>
    %53 = vector.broadcast %51 : vector<2x16x1xi32> to vector<2x16x16xi32>
    %54 = arith.cmpi eq, %52, %53 : vector<2x16x16xi32>
    %cst_7 = arith.constant 0x7F800000 : f32
    %55 = vector.broadcast %cst_7 : f32 to vector<2x16x16xf32>
    %56 = arith.select %54, %55, %41 : vector<2x16x16xi1>, vector<2x16x16xf32>
    %c3_i32 = arith.constant 3 : i32
    %57 = tpu.reduce_index %56 {axis = 2 : i32, kind = #tpu.reduction_kind<arg_min>} : vector<2x16x16xf32> -> vector<2x16xi32>
    %58 = vector.broadcast %c3_i32 : i32 to vector<1x4x1xi32>
    %59 = arith.cmpi eq, %10, %58 : vector<1x4x1xi32>
    %60 = vector.shape_cast %57 : vector<2x16xi32> to vector<2x1x16xi32>
    %61 = vector.shape_cast %59 : vector<1x4x1xi1> to vector<1x4x1xi1>
    %62 = vector.broadcast %61 : vector<1x4x1xi1> to vector<2x4x16xi1>
    %63 = vector.shape_cast %60 : vector<2x1x16xi32> to vector<2x1x16xi32>
    %64 = vector.broadcast %63 : vector<2x1x16xi32> to vector<2x4x16xi32>
    %65 = arith.select %62, %64, %50 : vector<2x4x16xi1>, vector<2x4x16xi32>
    %66 = vector.shape_cast %57 : vector<2x16xi32> to vector<2x16x1xi32>
    %67 = vector.broadcast %9 : vector<1x1x16xi32> to vector<2x16x16xi32>
    %68 = vector.broadcast %66 : vector<2x16x1xi32> to vector<2x16x16xi32>
    %69 = arith.cmpi eq, %67, %68 : vector<2x16x16xi32>
    %cst_8 = arith.constant 0x7F800000 : f32
    %70 = vector.broadcast %cst_8 : f32 to vector<2x16x16xf32>
    %71 = arith.select %69, %70, %56 : vector<2x16x16xi1>, vector<2x16x16xf32>
    %c4_i32 = arith.constant 4 : i32
    %c0_9 = arith.constant 0 : index
    %c0_10 = arith.constant 0 : index
    %c0_11 = arith.constant 0 : index
    %72 = vector.load %arg2[%c0_9, %c0_10, %c0_11] : memref<2x4x16xi32, #tpu.memory_space<vmem>>, vector<2x4x16xi32>
    tpu.vector_store %arg2[%c0_9, %c0_10, %c0_11], %65 {strides = array<i32>} : memref<2x4x16xi32, #tpu.memory_space<vmem>>, vector<2x4x16xi32>,
    return
  }
  func.func @transform_0(%arg0: i32) -> (i32, i32, i32) {
    %c0_i32 = arith.constant 0 : i32
    %c0_i32_0 = arith.constant 0 : i32
    %c0_i32_1 = arith.constant 0 : i32
    return %arg0, %c0_i32, %c0_i32_0 : i32, i32, i32
  }
  func.func @transform_1(%arg0: i32) -> (i32, i32, i32) {
    %c0_i32 = arith.constant 0 : i32
    %c0_i32_0 = arith.constant 0 : i32
    %c0_i32_1 = arith.constant 0 : i32
    return %arg0, %c0_i32, %c0_i32_0 : i32, i32, i32
  }
}

module attributes {stable_mosaic.version = 11 : i64} {
  func.func @_knn_kernel(%arg0: i32, %arg1: memref<2x16x3xf32, #tpu.memory_space<vmem>>, %arg2: memref<2x4x16xi32, #tpu.memory_space<vmem>>) attributes {dimension_semantics = [#tpu.dimension_semantics<parallel>], iteration_bounds = array<i64: 1>, scalar_prefetch = 0 : i64, scratch_operands = 0 : i64, tpu.core_type = #tpu.core_type<tc>, window_params = [{transform_indices = @transform_0, window_bounds = array<i64: 2, 16, 3>}, {transform_indices = @transform_1, window_bounds = array<i64: 2, 4, 16>}]} {
    %c0 = arith.constant 0 : index
    %c0_0 = arith.constant 0 : index
    %c0_1 = arith.constant 0 : index
    %0 = vector.load %arg1[%c0, %c0_0, %c0_1] : memref<2x16x3xf32, #tpu.memory_space<vmem>>, vector<2x16x3xf32>
    "tpu.trace_start"() <{level = 10 : i32, message = "bmd,bnd->bmn"}> : () -> ()
    %cst = arith.constant dense<0.000000e+00> : vector<2x16x16xf32>
    %1 = tpu.matmul %0, %0, %cst {dimension_numbers = #tpu.dot_dimension_numbers<[2], [2], [1], [1], [0, 0, 0, 1, 1, 1], [0], [0]>} : vector<2x16x3xf32>, vector<2x16x3xf32>, vector<2x16x16xf32> -> vector<2x16x16xf32>
    "tpu.trace_stop"() : () -> ()
    %2 = arith.mulf %0, %0 : vector<2x16x3xf32>
    %cst_2 = arith.constant dense<0.000000e+00> : vector<2x16xf32>
    %3 = vector.multi_reduction <add>, %2, %cst_2 [2] : vector<2x16x3xf32> to vector<2x16xf32>
    %4 = vector.shape_cast %3 : vector<2x16xf32> to vector<2x1x16xf32>
    %cst_3 = arith.constant 2.000000e+00 : f32
    %5 = vector.broadcast %cst_3 : f32 to vector<2x16x16xf32>
    %6 = arith.mulf %5, %1 : vector<2x16x16xf32>
    %7 = vector.broadcast %4 : vector<2x1x16xf32> to vector<2x16x16xf32>
    %8 = arith.subf %7, %6 : vector<2x16x16xf32>
    %9 = tpu.iota {dimensions = array<i32: 2>} : vector<1x1x16xi32>
    %10 = tpu.iota {dimensions = array<i32: 1>} : vector<1x4x1xi32>
    %c0_i32 = arith.constant 0 : i32
    %11 = vector.broadcast %c0_i32 : i32 to vector<2x4x16xi32>
    %c0_i32_4 = arith.constant 0 : i32
    %cst_5 = arith.constant dense<0x7F800000> : vector<2x16xf32>
    %12 = vector.multi_reduction <minimumf>, %8, %cst_5 [2] : vector<2x16x16xf32> to vector<2x16xf32>
    %13 = vector.shape_cast %12 : vector<2x16xf32> to vector<2x16x1xf32>
    %14 = vector.broadcast %13 : vector<2x16x1xf32> to vector<2x16x16xf32>
    %15 = arith.cmpf oeq, %8, %14 : vector<2x16x16xf32>
    %c16_i32 = arith.constant 16 : i32
    %16 = vector.shape_cast %9 : vector<1x1x16xi32> to vector<1x1x16xi32>
    %17 = vector.broadcast %16 : vector<1x1x16xi32> to vector<2x16x16xi32>
    %18 = vector.broadcast %c16_i32 : i32 to vector<2x16x16xi32>
    %19 = arith.select %15, %17, %18 : vector<2x16x16xi1>, vector<2x16x16xi32>
    %cst_6 = arith.constant dense<2147483647> : vector<2x16xi32>
    %20 = vector.multi_reduction <minsi>, %19, %cst_6 [2] : vector<2x16x16xi32> to vector<2x16xi32>
    %21 = vector.broadcast %c0_i32_4 : i32 to vector<1x4x1xi32>
    %22 = arith.cmpi eq, %10, %21 : vector<1x4x1xi32>
    %23 = vector.shape_cast %20 : vector<2x16xi32> to vector<2x1x16xi32>
    %24 = vector.shape_cast %22 : vector<1x4x1xi1> to vector<1x4x1xi1>
    %25 = vector.broadcast %24 : vector<1x4x1xi1> to vector<2x4x16xi1>
    %26 = vector.shape_cast %23 : vector<2x1x16xi32> to vector<2x1x16xi32>
    %27 = vector.broadcast %26 : vector<2x1x16xi32> to vector<2x4x16xi32>
    %28 = arith.select %25, %27, %11 : vector<2x4x16xi1>, vector<2x4x16xi32>
    %29 = vector.shape_cast %20 : vector<2x16xi32> to vector<2x16x1xi32>
    %30 = vector.broadcast %9 : vector<1x1x16xi32> to vector<2x16x16xi32>
    %31 = vector.broadcast %29 : vector<2x16x1xi32> to vector<2x16x16xi32>
    %32 = arith.cmpi eq, %30, %31 : vector<2x16x16xi32>
    %cst_7 = arith.constant 0x7F800000 : f32
    %33 = vector.broadcast %cst_7 : f32 to vector<2x16x16xf32>
    %34 = arith.select %32, %33, %8 : vector<2x16x16xi1>, vector<2x16x16xf32>
    %c1_i32 = arith.constant 1 : i32
    %cst_8 = arith.constant dense<0x7F800000> : vector<2x16xf32>
    %35 = vector.multi_reduction <minimumf>, %34, %cst_8 [2] : vector<2x16x16xf32> to vector<2x16xf32>
    %36 = vector.shape_cast %35 : vector<2x16xf32> to vector<2x16x1xf32>
    %37 = vector.broadcast %36 : vector<2x16x1xf32> to vector<2x16x16xf32>
    %38 = arith.cmpf oeq, %34, %37 : vector<2x16x16xf32>
    %c16_i32_9 = arith.constant 16 : i32
    %39 = vector.shape_cast %9 : vector<1x1x16xi32> to vector<1x1x16xi32>
    %40 = vector.broadcast %39 : vector<1x1x16xi32> to vector<2x16x16xi32>
    %41 = vector.broadcast %c16_i32_9 : i32 to vector<2x16x16xi32>
    %42 = arith.select %38, %40, %41 : vector<2x16x16xi1>, vector<2x16x16xi32>
    %cst_10 = arith.constant dense<2147483647> : vector<2x16xi32>
    %43 = vector.multi_reduction <minsi>, %42, %cst_10 [2] : vector<2x16x16xi32> to vector<2x16xi32>
    %44 = vector.broadcast %c1_i32 : i32 to vector<1x4x1xi32>
    %45 = arith.cmpi eq, %10, %44 : vector<1x4x1xi32>
    %46 = vector.shape_cast %43 : vector<2x16xi32> to vector<2x1x16xi32>
    %47 = vector.shape_cast %45 : vector<1x4x1xi1> to vector<1x4x1xi1>
    %48 = vector.broadcast %47 : vector<1x4x1xi1> to vector<2x4x16xi1>
    %49 = vector.shape_cast %46 : vector<2x1x16xi32> to vector<2x1x16xi32>
    %50 = vector.broadcast %49 : vector<2x1x16xi32> to vector<2x4x16xi32>
    %51 = arith.select %48, %50, %28 : vector<2x4x16xi1>, vector<2x4x16xi32>
    %52 = vector.shape_cast %43 : vector<2x16xi32> to vector<2x16x1xi32>
    %53 = vector.broadcast %9 : vector<1x1x16xi32> to vector<2x16x16xi32>
    %54 = vector.broadcast %52 : vector<2x16x1xi32> to vector<2x16x16xi32>
    %55 = arith.cmpi eq, %53, %54 : vector<2x16x16xi32>
    %cst_11 = arith.constant 0x7F800000 : f32
    %56 = vector.broadcast %cst_11 : f32 to vector<2x16x16xf32>
    %57 = arith.select %55, %56, %34 : vector<2x16x16xi1>, vector<2x16x16xf32>
    %c2_i32 = arith.constant 2 : i32
    %cst_12 = arith.constant dense<0x7F800000> : vector<2x16xf32>
    %58 = vector.multi_reduction <minimumf>, %57, %cst_12 [2] : vector<2x16x16xf32> to vector<2x16xf32>
    %59 = vector.shape_cast %58 : vector<2x16xf32> to vector<2x16x1xf32>
    %60 = vector.broadcast %59 : vector<2x16x1xf32> to vector<2x16x16xf32>
    %61 = arith.cmpf oeq, %57, %60 : vector<2x16x16xf32>
    %c16_i32_13 = arith.constant 16 : i32
    %62 = vector.shape_cast %9 : vector<1x1x16xi32> to vector<1x1x16xi32>
    %63 = vector.broadcast %62 : vector<1x1x16xi32> to vector<2x16x16xi32>
    %64 = vector.broadcast %c16_i32_13 : i32 to vector<2x16x16xi32>
    %65 = arith.select %61, %63, %64 : vector<2x16x16xi1>, vector<2x16x16xi32>
    %cst_14 = arith.constant dense<2147483647> : vector<2x16xi32>
    %66 = vector.multi_reduction <minsi>, %65, %cst_14 [2] : vector<2x16x16xi32> to vector<2x16xi32>
    %67 = vector.broadcast %c2_i32 : i32 to vector<1x4x1xi32>
    %68 = arith.cmpi eq, %10, %67 : vector<1x4x1xi32>
    %69 = vector.shape_cast %66 : vector<2x16xi32> to vector<2x1x16xi32>
    %70 = vector.shape_cast %68 : vector<1x4x1xi1> to vector<1x4x1xi1>
    %71 = vector.broadcast %70 : vector<1x4x1xi1> to vector<2x4x16xi1>
    %72 = vector.shape_cast %69 : vector<2x1x16xi32> to vector<2x1x16xi32>
    %73 = vector.broadcast %72 : vector<2x1x16xi32> to vector<2x4x16xi32>
    %74 = arith.select %71, %73, %51 : vector<2x4x16xi1>, vector<2x4x16xi32>
    %75 = vector.shape_cast %66 : vector<2x16xi32> to vector<2x16x1xi32>
    %76 = vector.broadcast %9 : vector<1x1x16xi32> to vector<2x16x16xi32>
    %77 = vector.broadcast %75 : vector<2x16x1xi32> to vector<2x16x16xi32>
    %78 = arith.cmpi eq, %76, %77 : vector<2x16x16xi32>
    %cst_15 = arith.constant 0x7F800000 : f32
    %79 = vector.broadcast %cst_15 : f32 to vector<2x16x16xf32>
    %80 = arith.select %78, %79, %57 : vector<2x16x16xi1>, vector<2x16x16xf32>
    %c3_i32 = arith.constant 3 : i32
    %cst_16 = arith.constant dense<0x7F800000> : vector<2x16xf32>
    %81 = vector.multi_reduction <minimumf>, %80, %cst_16 [2] : vector<2x16x16xf32> to vector<2x16xf32>
    %82 = vector.shape_cast %81 : vector<2x16xf32> to vector<2x16x1xf32>
    %83 = vector.broadcast %82 : vector<2x16x1xf32> to vector<2x16x16xf32>
    %84 = arith.cmpf oeq, %80, %83 : vector<2x16x16xf32>
    %c16_i32_17 = arith.constant 16 : i32
    %85 = vector.shape_cast %9 : vector<1x1x16xi32> to vector<1x1x16xi32>
    %86 = vector.broadcast %85 : vector<1x1x16xi32> to vector<2x16x16xi32>
    %87 = vector.broadcast %c16_i32_17 : i32 to vector<2x16x16xi32>
    %88 = arith.select %84, %86, %87 : vector<2x16x16xi1>, vector<2x16x16xi32>
    %cst_18 = arith.constant dense<2147483647> : vector<2x16xi32>
    %89 = vector.multi_reduction <minsi>, %88, %cst_18 [2] : vector<2x16x16xi32> to vector<2x16xi32>
    %90 = vector.broadcast %c3_i32 : i32 to vector<1x4x1xi32>
    %91 = arith.cmpi eq, %10, %90 : vector<1x4x1xi32>
    %92 = vector.shape_cast %89 : vector<2x16xi32> to vector<2x1x16xi32>
    %93 = vector.shape_cast %91 : vector<1x4x1xi1> to vector<1x4x1xi1>
    %94 = vector.broadcast %93 : vector<1x4x1xi1> to vector<2x4x16xi1>
    %95 = vector.shape_cast %92 : vector<2x1x16xi32> to vector<2x1x16xi32>
    %96 = vector.broadcast %95 : vector<2x1x16xi32> to vector<2x4x16xi32>
    %97 = arith.select %94, %96, %74 : vector<2x4x16xi1>, vector<2x4x16xi32>
    %98 = vector.shape_cast %89 : vector<2x16xi32> to vector<2x16x1xi32>
    %99 = vector.broadcast %9 : vector<1x1x16xi32> to vector<2x16x16xi32>
    %100 = vector.broadcast %98 : vector<2x16x1xi32> to vector<2x16x16xi32>
    %101 = arith.cmpi eq, %99, %100 : vector<2x16x16xi32>
    %cst_19 = arith.constant 0x7F800000 : f32
    %102 = vector.broadcast %cst_19 : f32 to vector<2x16x16xf32>
    %103 = arith.select %101, %102, %80 : vector<2x16x16xi1>, vector<2x16x16xf32>
    %c4_i32 = arith.constant 4 : i32
    %c0_20 = arith.constant 0 : index
    %c0_21 = arith.constant 0 : index
    %c0_22 = arith.constant 0 : index
    %104 = vector.load %arg2[%c0_20, %c0_21, %c0_22] : memref<2x4x16xi32, #tpu.memory_space<vmem>>, vector<2x4x16xi32>
    tpu.vector_store %arg2[%c0_20, %c0_21, %c0_22], %97 {strides = array<i32>} : memref<2x4x16xi32, #tpu.memory_space<vmem>>, vector<2x4x16xi32>,
    return
  }
  func.func @transform_0(%arg0: i32) -> (i32, i32, i32) {
    %c0_i32 = arith.constant 0 : i32
    %c0_i32_0 = arith.constant 0 : i32
    %c0_i32_1 = arith.constant 0 : i32
    return %arg0, %c0_i32, %c0_i32_0 : i32, i32, i32
  }
  func.func @transform_1(%arg0: i32) -> (i32, i32, i32) {
    %c0_i32 = arith.constant 0 : i32
    %c0_i32_0 = arith.constant 0 : i32
    %c0_i32_1 = arith.constant 0 : i32
    return %arg0, %c0_i32, %c0_i32_0 : i32, i32, i32
  }
}

</mosaic_0001>

<bundles_post_ra>
// kernel: tpu_custom_call.1
= control target key start
LH: loop header
LB: loop body
LE: loop exit
PB: predicated region body
PF: predicated region fallthrough
CT: control target
= control target key end

     0   :  { %vm13_vm0 = vcmask 23552   ;;  %s2006_s0 = inlined_call_operand.vmem [shape: f32[2,16,3], index: 0, kind: input, shape index: {}]   ;;  %s2007_s1 = inlined_call_operand.hbm [shape: s32[2,4,16], index: 1, kind: output, shape index: {}]  }
   0x1   :  { %v9_v0 = vld [vmem:[%s2006_s0] sm:$0xff]  ;;  %v10_v1 = vld [vmem:[%s2006_s0 + $0x8] sm:$0xff]  ;;  %v11_v2 = vld [vmem:[%s2006_s0 + $0x10] sm:$0xff] }
   0x2   :  { %v1499_v3 = vpack.c.bf16 %v10_v1, %v9_v0  ;;  %vm1500_vm1 = vmpackc.low %vm13_vm0, %vm13_vm0  ;;  %1489 = vmatprep.mubr.msk.f32.mxu0 %vm13_vm0, %v9_v0  ;;  %v12_v4 = vld [vmem:[%s2006_s0 + $0x18] sm:$0xff]  ;;  %1496 = vmatprep.mubr.msk.f32.mxu1 %vm13_vm0, %v11_v2  ;;  %v178_v5 = vmul.f32 %v11_v2, %v11_v2  ;;  %v176_v6 = vmul.f32 %v9_v0, %v9_v0 }
   0x3   :  { %v1505_v7 = vpack.c.bf16 %v12_v4, %v11_v2  ;;  %v179_v8 = vmul.f32 %v12_v4, %v12_v4 }
   0x4   :  { %6 = vsyncpa [#allocation3], 0  ;;  %1501 = vmatprep.subr.msk.bf16.mxu0 %vm1500_vm1, %v1499_v3  ;;  %v186_v9 = vsel %vm13_vm0, %v178_v5, 0.0  ;;  %v180_v10 = vsel %vm13_vm0, %v176_v6, 0.0  ;;  %v177_v11 = vmul.f32 %v10_v1, %v10_v1  ;;  %v200_v14 = vlaneseq  ;;  %s1542_s0 = smov [#allocation2]  }
   0x5   :  { %1504 = vmatpush3.bf16.xpose.msk.msra.mxu0 %vm1500_vm1, %v1499_v3  ;;  %1507 = vmatprep.subr.msk.bf16.mxu1 %vm1500_vm1, %v1505_v7  ;;  %v189_v12 = vsel %vm13_vm0, %v179_v8, 0.0  ;;  %v1541_v21 = vmov 0   ;;  %vm949_vm2 = vcmask 130112   ;;  %vm1230_vm3 = vcmask 1041409   ;;  %s1458_s14 = sshll.u32 %s1542_s0, 4  ;;  %s1459_s14 = int_to_ptr.vmem [resolvable:$true] %s1458_s14 }
   0x6   :  { %1510 = vmatpush3.bf16.xpose.msk.msra.mxu1 %vm1500_vm1, %v1505_v7  ;;  %187 = vadd.xlane.f32.xlu1 %v186_v9  ;;  %v183_v13 = vsel %vm13_vm0, %v177_v11, 0.0  ;;  %v1578_v15 = vshrl.u32 %v200_v14, 7  ;;  %vm1232_vm4 = vcmask 1042434   ;;  %vm1234_vm5 = vcmask 1043459   ;;  %s1517_s15 = scalar_lea.vmem %s1459_s14, 128  ;;  %p1522_p1 = scmp.lt.s32.totalorder %s1459_s14, %s1459_s14 }
   0x7   :  { %181 = vadd.xlane.f32.xlu0 %v180_v10  ;;  %1515 = vset.pattern.permute.xlu1 %v1541_v21  ;;  %vm1236_vm6 = vcmask 1044484   ;;  %vm1238_vm7 = vcmask 1045509   ;;  %vm1240_vm8 = vcmask 1046534   ;;  %vm1242_vm9 = vcmask 1047559   ;;  %p1518_p0 = scmp.ne.s32.totalorder %s1459_s14, %s1517_s15  ;;  %p1523_p2 = scmp.lt.s32.totalorder %s1517_s15, %s1517_s15 }
   0x8   :  { %v202_v16 = vsub.s32 0, %v1578_v15  ;;  %1516 = vset.pattern.permute.xlu0 %v1541_v21  ;;  %v213_v25 = vsub.s32 1, %v1578_v15  ;;  %v1588_v28 = vsub.s32 2, %v1578_v15  ;;  %v1591_v29 = vsub.s32 3, %v1578_v15 }
   0x9   :  { %v1595_v31 = vsub.s32 4, %v1578_v15  ;;  %v1600_v34 = vsub.s32 5, %v1578_v15  ;;  %v1606_v39 = vsub.s32 6, %v1578_v15  ;;  %v1609_v40 = vsub.s32 7, %v1578_v15  ;;  %p1524_p3 = por %p1523_p2, %p1522_p1 }
   0xa   :  { %190 = vadd.xlane.f32.xlu1 %v189_v12  ;;  %vm1269_vm10 = vcmask 130048   ;;  %vm1329_vm1 = vcmp.eq.s32.totalorder %v1578_v15, 1 }
   0xb   :  { %184 = vadd.xlane.f32.xlu0 %v183_v13  ;;  %p1525_p4 = pnand %p1524_p3, %p1518_p0 }
   0xc   :  { %1490 = vmatmul.mubr.msk.f32.vlgmr.msra.gmra.mrb[0].mxu0 %vm13_vm0, %v10_v1 }
   0xd   :  { %1497 = vmatmul.mubr.msk.f32.vlgmr.msra.gmra.mrb[0].mxu1 %vm13_vm0, %v12_v4  ;;  %vm1282_vm0 = vcmp.eq.s32.totalorder %v1578_v15, 0 }
  0x93   :  { %v1657_v63 = vpop.xlane.xlu1 %187 }
  0x94   :  { %v1659_v0 = vpop.xlane.xlu0 %181 }
  0x97   :  { %v1665_v2 = vpop.xlane.xlu1 %190 }
  0x98   :  { %v1667_v3 = vpop.xlane.xlu0 %184 }
  0xdf   :  { %v1491_v17 = vpop.f32.mrb[0].mxu0 }
  0xe0   :  { %v1581_v18 = vmul.f32 2.0, %v1491_v17  ;;  %v86_v19 = vpop.f32.mrb[1].mxu0  ;;  %v1498_v20 = vpop.f32.mrb[0].mxu1 }
  0xe1   :  { %v167_v22 = vpop.f32.mrb[1].mxu1  ;;  %v1583_v23 = vmul.f32 2.0, %v86_v19  ;;  %v195_v27 = vmul.f32 2.0, %v1498_v20 }
  0xe2   :  { %v291_v24 = vrot.slane %v1581_v18, %v202_v16  ;;  %v194_v26 = vmul.f32 2.0, %v167_v22  ;;  %v302_v30 = vrot.slane %v1581_v18, %v213_v25  ;;  %v313_v47 = vrot.slane %v1581_v18, %v1588_v28 }
  0xe3   :  { %v203_v32 = vrot.slane %v1583_v23, %v202_v16  ;;  %v214_v33 = vrot.slane %v1583_v23, %v213_v25  ;;  %v467_v38 = vrot.slane %v195_v27, %v202_v16  ;;  %v478_v46 = vrot.slane %v195_v27, %v213_v25 }
  0xe4   :  { %297 = vbcast.lane.b32.xlu1 %v291_v24, 264  ;;  %293 = vbcast.lane.b32.xlu0 %v291_v24, 256  ;;  %v379_v35 = vrot.slane %v194_v26, %v202_v16  ;;  %v390_v36 = vrot.slane %v194_v26, %v213_v25  ;;  %v1603_v37 = vrot.slane %v194_v26, %v1588_v28 }
  0xe5   :  { %v1612_v41 = vrot.slane %v194_v26, %v1591_v29  ;;  %v1615_v42 = vrot.slane %v194_v26, %v1595_v31  ;;  %v1618_v43 = vrot.slane %v194_v26, %v1600_v34  ;;  %v1621_v44 = vrot.slane %v194_v26, %v1606_v39 }
  0xe6   :  { %v1624_v45 = vrot.slane %v194_v26, %v1609_v40  ;;  %v489_v48 = vrot.slane %v195_v27, %v1588_v28  ;;  %v324_v49 = vrot.slane %v1581_v18, %v1591_v29  ;;  %v500_v50 = vrot.slane %v195_v27, %v1591_v29 }
  0xe7   :  { %v335_v51 = vrot.slane %v1581_v18, %v1595_v31  ;;  %v511_v52 = vrot.slane %v195_v27, %v1595_v31  ;;  %v346_v53 = vrot.slane %v1581_v18, %v1600_v34  ;;  %v522_v54 = vrot.slane %v195_v27, %v1600_v34 }
  0xe8   :  { %308 = vbcast.lane.b32.xlu1 %v302_v30, 264  ;;  %304 = vbcast.lane.b32.xlu0 %v302_v30, 256  ;;  %v357_v55 = vrot.slane %v1581_v18, %v1606_v39  ;;  %v533_v56 = vrot.slane %v195_v27, %v1606_v39  ;;  %v368_v57 = vrot.slane %v1581_v18, %v1609_v40 }
  0xe9   :  { %v544_v58 = vrot.slane %v195_v27, %v1609_v40  ;;  %v225_v59 = vrot.slane %v1583_v23, %v1588_v28  ;;  %v236_v60 = vrot.slane %v1583_v23, %v1591_v29  ;;  %v247_v61 = vrot.slane %v1583_v23, %v1595_v31 }
  0xea   :  { %v258_v62 = vrot.slane %v1583_v23, %v1600_v34  ;;  %v269_v1 = vrot.slane %v1583_v23, %v1606_v39  ;;  %v280_v6 = vrot.slane %v1583_v23, %v1609_v40 }
  0xec   :  { %473 = vbcast.lane.b32.xlu1 %v467_v38, 264  ;;  %469 = vbcast.lane.b32.xlu0 %v467_v38, 256 }
  0xf0   :  { %484 = vbcast.lane.b32.xlu1 %v478_v46, 264  ;;  %480 = vbcast.lane.b32.xlu0 %v478_v46, 256 }
  0xf4   :  { %319 = vbcast.lane.b32.xlu1 %v313_v47, 264  ;;  %315 = vbcast.lane.b32.xlu0 %v313_v47, 256 }
  0xf8   :  { %495 = vbcast.lane.b32.xlu1 %v489_v48, 264  ;;  %491 = vbcast.lane.b32.xlu0 %v489_v48, 256 }
  0xfc   :  { %330 = vbcast.lane.b32.xlu1 %v324_v49, 264  ;;  %326 = vbcast.lane.b32.xlu0 %v324_v49, 256 }
 0x100   :  { %506 = vbcast.lane.b32.xlu1 %v500_v50, 264  ;;  %502 = vbcast.lane.b32.xlu0 %v500_v50, 256 }
 0x104   :  { %341 = vbcast.lane.b32.xlu1 %v335_v51, 264  ;;  %337 = vbcast.lane.b32.xlu0 %v335_v51, 256 }
 0x108   :  { %517 = vbcast.lane.b32.xlu1 %v511_v52, 264  ;;  %513 = vbcast.lane.b32.xlu0 %v511_v52, 256 }
 0x10c   :  { %352 = vbcast.lane.b32.xlu1 %v346_v53, 264  ;;  %348 = vbcast.lane.b32.xlu0 %v346_v53, 256 }
 0x110   :  { %528 = vbcast.lane.b32.xlu1 %v522_v54, 264  ;;  %524 = vbcast.lane.b32.xlu0 %v522_v54, 256 }
 0x114   :  { %363 = vbcast.lane.b32.xlu1 %v357_v55, 264  ;;  %359 = vbcast.lane.b32.xlu0 %v357_v55, 256 }
 0x118   :  { %539 = vbcast.lane.b32.xlu1 %v533_v56, 264  ;;  %535 = vbcast.lane.b32.xlu0 %v533_v56, 256 }
 0x11c   :  { %374 = vbcast.lane.b32.xlu1 %v368_v57, 264  ;;  %370 = vbcast.lane.b32.xlu0 %v368_v57, 256 }
 0x120   :  { %550 = vbcast.lane.b32.xlu1 %v544_v58, 264  ;;  %546 = vbcast.lane.b32.xlu0 %v544_v58, 256 }
 0x124   :  { %209 = vbcast.lane.b32.xlu1 %v203_v32, 264  ;;  %205 = vbcast.lane.b32.xlu0 %v203_v32, 256 }
 0x128   :  { %216 = vbcast.lane.b32.xlu1 %v214_v33, 256  ;;  %381 = vbcast.lane.b32.xlu0 %v379_v35, 256 }
 0x12c   :  { %220 = vbcast.lane.b32.xlu1 %v214_v33, 264  ;;  %392 = vbcast.lane.b32.xlu0 %v390_v36, 256 }
 0x130   :  { %385 = vbcast.lane.b32.xlu1 %v379_v35, 264  ;;  %227 = vbcast.lane.b32.xlu0 %v225_v59, 256 }
 0x134   :  { %396 = vbcast.lane.b32.xlu1 %v390_v36, 264  ;;  %403 = vbcast.lane.b32.xlu0 %v1603_v37, 256 }
 0x138   :  { %231 = vbcast.lane.b32.xlu1 %v225_v59, 264  ;;  %238 = vbcast.lane.b32.xlu0 %v236_v60, 256 }
 0x13c   :  { %407 = vbcast.lane.b32.xlu1 %v1603_v37, 264  ;;  %414 = vbcast.lane.b32.xlu0 %v1612_v41, 256 }
 0x140   :  { %242 = vbcast.lane.b32.xlu1 %v236_v60, 264  ;;  %249 = vbcast.lane.b32.xlu0 %v247_v61, 256 }
 0x144   :  { %418 = vbcast.lane.b32.xlu1 %v1612_v41, 264  ;;  %425 = vbcast.lane.b32.xlu0 %v1615_v42, 256 }
 0x148   :  { %253 = vbcast.lane.b32.xlu1 %v247_v61, 264  ;;  %260 = vbcast.lane.b32.xlu0 %v258_v62, 256 }
 0x14c   :  { %429 = vbcast.lane.b32.xlu1 %v1615_v42, 264  ;;  %436 = vbcast.lane.b32.xlu0 %v1618_v43, 256 }
 0x150   :  { %264 = vbcast.lane.b32.xlu1 %v258_v62, 264  ;;  %271 = vbcast.lane.b32.xlu0 %v269_v1, 256 }
 0x154   :  { %440 = vbcast.lane.b32.xlu1 %v1618_v43, 264  ;;  %447 = vbcast.lane.b32.xlu0 %v1621_v44, 256 }
 0x156   :  { %v298_v4 = vpop.permute.xlu1 %297  ;;  %v294_v5 = vpop.permute.xlu0 %293 }
 0x157   :  { %v633_v9 = vsub.f32 %v1667_v3, %v298_v4  ;;  %v632_v17 = vsub.f32 %v1659_v0, %v294_v5 }
 0x158   :  { %275 = vbcast.lane.b32.xlu1 %v269_v1, 264  ;;  %282 = vbcast.lane.b32.xlu0 %v280_v6, 256 }
 0x15a   :  { %v309_v7 = vpop.permute.xlu1 %308  ;;  %v305_v8 = vpop.permute.xlu0 %304 }
 0x15b   :  { %v635_v12 = vsub.f32 %v1667_v3, %v309_v7  ;;  %v634_v21 = vsub.f32 %v1659_v0, %v305_v8 }
 0x15c   :  { %451 = vbcast.lane.b32.xlu1 %v1621_v44, 264  ;;  %458 = vbcast.lane.b32.xlu0 %v1624_v45, 256 }
 0x15e   :  { %v474_v10 = vpop.permute.xlu1 %473  ;;  %v470_v11 = vpop.permute.xlu0 %469 }
 0x15f   :  { %v665_v18 = vsub.f32 %v1665_v2, %v474_v10  ;;  %v664_v25 = vsub.f32 %v1657_v63, %v470_v11 }
 0x160   :  { %286 = vbcast.lane.b32.xlu1 %v280_v6, 264  ;;  %800 = vperm.xlu0 %1516, %v633_v9  }
 0x162   :  { %v485_v13 = vpop.permute.xlu1 %484  ;;  %v481_v16 = vpop.permute.xlu0 %480 }
 0x163   :  { %v667_v22 = vsub.f32 %v1665_v2, %v485_v13  ;;  %v666_v29 = vsub.f32 %v1657_v63, %v481_v16 }
 0x164   :  { %462 = vbcast.lane.b32.xlu1 %v1624_v45, 264  ;;  %806 = vperm.xlu0 %1516, %v635_v12  }
 0x166   :  { %v320_v19 = vpop.permute.xlu1 %319  ;;  %v316_v20 = vpop.permute.xlu0 %315 }
 0x167   :  { %v637_v26 = vsub.f32 %v1667_v3, %v320_v19  ;;  %v636_v33 = vsub.f32 %v1659_v0, %v316_v20 }
 0x168   :  { %797 = vperm.xlu1 %1515, %v632_v17   ;;  %896 = vperm.xlu0 %1516, %v665_v18  }
 0x16a   :  { %v496_v23 = vpop.permute.xlu1 %495  ;;  %v492_v24 = vpop.permute.xlu0 %491 }
 0x16b   :  { %v669_v30 = vsub.f32 %v1665_v2, %v496_v23  ;;  %v668_v37 = vsub.f32 %v1657_v63, %v492_v24 }
 0x16c   :  { %803 = vperm.xlu1 %1515, %v634_v21   ;;  %902 = vperm.xlu0 %1516, %v667_v22  }
 0x16e   :  { %v331_v27 = vpop.permute.xlu1 %330  ;;  %v327_v28 = vpop.permute.xlu0 %326 }
 0x16f   :  { %v639_v34 = vsub.f32 %v1667_v3, %v331_v27  ;;  %v638_v41 = vsub.f32 %v1659_v0, %v327_v28 }
 0x170   :  { %893 = vperm.xlu1 %1515, %v664_v25   ;;  %812 = vperm.xlu0 %1516, %v637_v26  }
 0x172   :  { %v507_v31 = vpop.permute.xlu1 %506  ;;  %v503_v32 = vpop.permute.xlu0 %502 }
 0x173   :  { %v671_v38 = vsub.f32 %v1665_v2, %v507_v31  ;;  %v670_v45 = vsub.f32 %v1657_v63, %v503_v32 }
 0x174   :  { %899 = vperm.xlu1 %1515, %v666_v29   ;;  %908 = vperm.xlu0 %1516, %v669_v30  }
 0x176   :  { %v342_v35 = vpop.permute.xlu1 %341  ;;  %v338_v36 = vpop.permute.xlu0 %337 }
 0x177   :  { %v641_v42 = vsub.f32 %v1667_v3, %v342_v35  ;;  %v640_v49 = vsub.f32 %v1659_v0, %v338_v36 }
 0x178   :  { %809 = vperm.xlu1 %1515, %v636_v33   ;;  %818 = vperm.xlu0 %1516, %v639_v34  }
 0x17a   :  { %v518_v39 = vpop.permute.xlu1 %517  ;;  %v514_v40 = vpop.permute.xlu0 %513 }
 0x17b   :  { %v673_v46 = vsub.f32 %v1665_v2, %v518_v39  ;;  %v672_v53 = vsub.f32 %v1657_v63, %v514_v40 }
 0x17c   :  { %905 = vperm.xlu1 %1515, %v668_v37   ;;  %914 = vperm.xlu0 %1516, %v671_v38  }
 0x17e   :  { %v353_v43 = vpop.permute.xlu1 %352  ;;  %v349_v44 = vpop.permute.xlu0 %348 }
 0x17f   :  { %v643_v50 = vsub.f32 %v1667_v3, %v353_v43  ;;  %v642_v57 = vsub.f32 %v1659_v0, %v349_v44 }
 0x180   :  { %815 = vperm.xlu1 %1515, %v638_v41   ;;  %824 = vperm.xlu0 %1516, %v641_v42  }
 0x182   :  { %v529_v47 = vpop.permute.xlu1 %528  ;;  %v525_v48 = vpop.permute.xlu0 %524 }
 0x183   :  { %v675_v54 = vsub.f32 %v1665_v2, %v529_v47  ;;  %v674_v61 = vsub.f32 %v1657_v63, %v525_v48 }
 0x184   :  { %911 = vperm.xlu1 %1515, %v670_v45   ;;  %920 = vperm.xlu0 %1516, %v673_v46  }
 0x186   :  { %v364_v51 = vpop.permute.xlu1 %363  ;;  %v360_v52 = vpop.permute.xlu0 %359 }
 0x187   :  { %v645_v58 = vsub.f32 %v1667_v3, %v364_v51  ;;  %v644_v5 = vsub.f32 %v1659_v0, %v360_v52 }
 0x188   :  { %821 = vperm.xlu1 %1515, %v640_v49   ;;  %830 = vperm.xlu0 %1516, %v643_v50  }
 0x18a   :  { %v540_v55 = vpop.permute.xlu1 %539  ;;  %v536_v56 = vpop.permute.xlu0 %535 }
 0x18b   :  { %v677_v62 = vsub.f32 %v1665_v2, %v540_v55  ;;  %v676_v9 = vsub.f32 %v1657_v63, %v536_v56 }
 0x18c   :  { %917 = vperm.xlu1 %1515, %v672_v53   ;;  %926 = vperm.xlu0 %1516, %v675_v54  }
 0x18e   :  { %v375_v59 = vpop.permute.xlu1 %374  ;;  %v371_v60 = vpop.permute.xlu0 %370 }
 0x18f   :  { %v647_v6 = vsub.f32 %v1667_v3, %v375_v59  ;;  %v646_v13 = vsub.f32 %v1659_v0, %v371_v60 }
 0x190   :  { %827 = vperm.xlu1 %1515, %v642_v57   ;;  %836 = vperm.xlu0 %1516, %v645_v58  }
 0x192   :  { %v1702_v1 = vpop.permute.xlu1 %550  ;;  %v1704_v4 = vpop.permute.xlu0 %546 }
 0x194   :  { %923 = vperm.xlu1 %1515, %v674_v61   ;;  %932 = vperm.xlu0 %1516, %v677_v62  }
 0x196   :  { %v210_v7 = vpop.permute.xlu1 %209  ;;  %v206_v8 = vpop.permute.xlu0 %205 }
 0x197   :  { %v616_v10 = vsub.f32 %v1659_v0, %v206_v8  ;;  %v617_v19 = vsub.f32 %v1667_v3, %v210_v7 }
 0x198   :  { %833 = vperm.xlu1 %1515, %v644_v5   ;;  %842 = vperm.xlu0 %1516, %v647_v6  }
 0x19a   :  { %v217_v11 = vpop.permute.xlu1 %216  ;;  %v382_v12 = vpop.permute.xlu0 %381 }
 0x19b   :  { %v618_v23 = vsub.f32 %v1659_v0, %v217_v11  ;;  %v648_v27 = vsub.f32 %v1657_v63, %v382_v12 }
 0x19c   :  { %929 = vperm.xlu1 %1515, %v676_v9   ;;  %749 = vperm.xlu0 %1516, %v616_v10  }
 0x19e   :  { %v221_v16 = vpop.permute.xlu1 %220  ;;  %v393_v17 = vpop.permute.xlu0 %392 }
 0x19f   :  { %v619_v18 = vsub.f32 %v1667_v3, %v221_v16  ;;  %v650_v31 = vsub.f32 %v1657_v63, %v393_v17  ;;  %v679_v17 = vsub.f32 %v1665_v2, %v1702_v1 }
 0x1a0   :  { %839 = vperm.xlu1 %1515, %v646_v13  }
 0x1a1   :  { %758 = vperm.xlu0 %1516, %v619_v18  }
 0x1a2   :  { %v386_v20 = vpop.permute.xlu1 %385  ;;  %v228_v21 = vpop.permute.xlu0 %227 }
 0x1a3   :  { %v649_v22 = vsub.f32 %v1665_v2, %v386_v20  ;;  %v620_v35 = vsub.f32 %v1659_v0, %v228_v21  ;;  %v678_v20 = vsub.f32 %v1657_v63, %v1704_v4 }
 0x1a4   :  { %752 = vperm.xlu1 %1515, %v617_v19  }
 0x1a5   :  { %848 = vperm.xlu0 %1516, %v649_v22   ;;  %v1751_v22 = vand.u32 127, %v200_v14 }
 0x1a6   :  { %v397_v24 = vpop.permute.xlu1 %396  ;;  %v404_v25 = vpop.permute.xlu0 %403 }
 0x1a7   :  { %v651_v26 = vsub.f32 %v1665_v2, %v397_v24  ;;  %v652_v39 = vsub.f32 %v1657_v63, %v404_v25  ;;  %v944_v1 = vadd.s32 4294967288, %v1751_v22  ;;  %v1760_v25 = vsub.s32 %v1751_v22, %v1578_v15 }
 0x1a8   :  { %755 = vperm.xlu1 %1515, %v618_v23  }
 0x1a9   :  { %854 = vperm.xlu0 %1516, %v651_v26  }
 0x1aa   :  { %v232_v28 = vpop.permute.xlu1 %231  ;;  %v239_v29 = vpop.permute.xlu0 %238 }
 0x1ab   :  { %v621_v30 = vsub.f32 %v1667_v3, %v232_v28  ;;  %v622_v43 = vsub.f32 %v1659_v0, %v239_v29 }
 0x1ac   :  { %845 = vperm.xlu1 %1515, %v648_v27  }
 0x1ad   :  { %764 = vperm.xlu0 %1516, %v621_v30  }
 0x1ae   :  { %v408_v32 = vpop.permute.xlu1 %407  ;;  %v415_v33 = vpop.permute.xlu0 %414 }
 0x1af   :  { %v653_v34 = vsub.f32 %v1665_v2, %v408_v32  ;;  %v654_v47 = vsub.f32 %v1657_v63, %v415_v33 }
 0x1b0   :  { %851 = vperm.xlu1 %1515, %v650_v31  }
 0x1b1   :  { %860 = vperm.xlu0 %1516, %v653_v34  }
 0x1b2   :  { %v243_v36 = vpop.permute.xlu1 %242  ;;  %v250_v37 = vpop.permute.xlu0 %249 }
 0x1b3   :  { %v623_v38 = vsub.f32 %v1667_v3, %v243_v36  ;;  %v624_v50 = vsub.f32 %v1659_v0, %v250_v37 }
 0x1b4   :  { %761 = vperm.xlu1 %1515, %v620_v35  }
 0x1b5   :  { %770 = vperm.xlu0 %1516, %v623_v38  }
 0x1b6   :  { %v419_v40 = vpop.permute.xlu1 %418  ;;  %v426_v42 = vpop.permute.xlu0 %425 }
 0x1b7   :  { %v655_v41 = vsub.f32 %v1665_v2, %v419_v40  ;;  %v656_v54 = vsub.f32 %v1657_v63, %v426_v42 }
 0x1b8   :  { %857 = vperm.xlu1 %1515, %v652_v39  }
 0x1b9   :  { %866 = vperm.xlu0 %1516, %v655_v41  }
 0x1ba   :  { %v254_v44 = vpop.permute.xlu1 %253  ;;  %v261_v46 = vpop.permute.xlu0 %260 }
 0x1bb   :  { %v625_v45 = vsub.f32 %v1667_v3, %v254_v44  ;;  %v626_v58 = vsub.f32 %v1659_v0, %v261_v46 }
 0x1bc   :  { %767 = vperm.xlu1 %1515, %v622_v43  }
 0x1bd   :  { %776 = vperm.xlu0 %1516, %v625_v45  }
 0x1be   :  { %v430_v48 = vpop.permute.xlu1 %429  ;;  %v437_v52 = vpop.permute.xlu0 %436 }
 0x1bf   :  { %v657_v49 = vsub.f32 %v1665_v2, %v430_v48  ;;  %v658_v61 = vsub.f32 %v1657_v63, %v437_v52 }
 0x1c0   :  { %863 = vperm.xlu1 %1515, %v654_v47  }
 0x1c1   :  { %872 = vperm.xlu0 %1516, %v657_v49  }
 0x1c2   :  { %v265_v51 = vpop.permute.xlu1 %264  ;;  %v272_v57 = vpop.permute.xlu0 %271 }
 0x1c3   :  { %v627_v53 = vsub.f32 %v1667_v3, %v265_v51  ;;  %v628_v7 = vsub.f32 %v1659_v0, %v272_v57 }
 0x1c4   :  { %773 = vperm.xlu1 %1515, %v624_v50  }
 0x1c5   :  { %782 = vperm.xlu0 %1516, %v627_v53  }
 0x1c6   :  { %v441_v55 = vpop.permute.xlu1 %440  ;;  %v448_v5 = vpop.permute.xlu0 %447 }
 0x1c7   :  { %v659_v56 = vsub.f32 %v1665_v2, %v441_v55  ;;  %v660_v11 = vsub.f32 %v1657_v63, %v448_v5 }
 0x1c8   :  { %869 = vperm.xlu1 %1515, %v656_v54  }
 0x1c9   :  { %878 = vperm.xlu0 %1516, %v659_v56  }
 0x1ca   :  { %v276_v59 = vpop.permute.xlu1 %275  ;;  %v283_v10 = vpop.permute.xlu0 %282 }
 0x1cb   :  { %v629_v60 = vsub.f32 %v1667_v3, %v276_v59  ;;  %v630_v16 = vsub.f32 %v1659_v0, %v283_v10 }
 0x1cc   :  { %779 = vperm.xlu1 %1515, %v626_v58  }
 0x1cd   :  { %788 = vperm.xlu0 %1516, %v629_v60  }
 0x1ce   :  { %v452_v62 = vpop.permute.xlu1 %451  ;;  %v459_v18 = vpop.permute.xlu0 %458 }
 0x1cf   :  { %v661_v6 = vsub.f32 %v1665_v2, %v452_v62 }
 0x1d0   :  { %875 = vperm.xlu1 %1515, %v658_v61  }
 0x1d1   :  { %884 = vperm.xlu0 %1516, %v661_v6  }
 0x1d2   :  { %v287_v8 = vpop.permute.xlu1 %286 }
 0x1d3   :  { %v631_v9 = vsub.f32 %v1667_v3, %v287_v8  ;;  %v662_v3 = vsub.f32 %v1657_v63, %v459_v18  ;;  %v1763_v63 = vsub.s32 %v944_v1, %v1578_v15 }
 0x1d4   :  { %785 = vperm.xlu1 %1515, %v628_v7  }
 0x1d5   :  { %794 = vperm.xlu0 %1516, %v631_v9  }
 0x1d6   :  { %v463_v12 = vpop.permute.xlu1 %462 }
 0x1d7   :  { %v663_v13 = vsub.f32 %v1665_v2, %v463_v12 }
 0x1d8   :  { %881 = vperm.xlu1 %1515, %v660_v11  }
 0x1d9   :  { %890 = vperm.xlu0 %1516, %v663_v13  }
 0x1dc   :  { %791 = vperm.xlu1 %1515, %v630_v16  }
 0x1dd   :  { %938 = vperm.xlu0 %1516, %v679_v17  }
 0x1df   :  { %v1744_v19 = vpop.permute.xlu0 %800 }
 0x1e0   :  { %887 = vperm.xlu1 %1515, %v662_v3   ;;  %v1021_v18 = vrot.slane %v1744_v19, %v1763_v63 }
 0x1e3   :  { %v1748_v21 = vpop.permute.xlu0 %806 }
 0x1e4   :  { %935 = vperm.xlu1 %1515, %v678_v20   ;;  %v1030_v16 = vrot.slane %v1748_v21, %v1763_v63 }
 0x1e7   :  { %v1753_v0 = vpop.permute.xlu1 %797  ;;  %v897_v2 = vpop.permute.xlu0 %896 }
 0x1e8   :  { %v1165_v14 = vrot.slane %v897_v2, %v1763_v63  ;;  %v1017_v9 = vrot.slane %v1753_v0, %v1760_v25 }
 0x1eb   :  { %v1756_v23 = vpop.permute.xlu1 %803  ;;  %v903_v24 = vpop.permute.xlu0 %902 }
 0x1ec   :  { %v1174_v31 = vrot.slane %v903_v24, %v1763_v63  ;;  %v1026_v7 = vrot.slane %v1756_v23, %v1760_v25  ;;  %v1022_v23 = vsel %vm949_vm2, %v1021_v18, %v1017_v9 }
 0x1ee   :  { %v1031_v0 = vsel %vm949_vm2, %v1030_v16, %v1026_v7 }
 0x1ef   :  { %v894_v4 = vpop.permute.xlu1 %893  ;;  %v1765_v26 = vpop.permute.xlu0 %812 }
 0x1f0   :  { %v1161_v27 = vrot.slane %v894_v4, %v1760_v25  ;;  %v1039_v3 = vrot.slane %v1765_v26, %v1763_v63 }
 0x1f2   :  { %v1166_v28 = vsel %vm949_vm2, %v1165_v14, %v1161_v27 }
 0x1f3   :  { %v900_v29 = vpop.permute.xlu1 %899  ;;  %v909_v30 = vpop.permute.xlu0 %908 }
 0x1f4   :  { %v1170_v32 = vrot.slane %v900_v29, %v1760_v25  ;;  %v1183_v39 = vrot.slane %v909_v30, %v1763_v63  ;;  %v1244_v30 = vsel %vm1230_vm3, %v1031_v0, %v1022_v23 }
 0x1f6   :  { %v1175_v33 = vsel %vm949_vm2, %v1174_v31, %v1170_v32 }
 0x1f7   :  { %v1258_v34 = vsel %vm1230_vm3, %v1175_v33, %v1166_v28  ;;  %v810_v35 = vpop.permute.xlu1 %809  ;;  %v819_v36 = vpop.permute.xlu0 %818 }
 0x1f8   :  { %v1035_v10 = vrot.slane %v810_v35, %v1760_v25  ;;  %v1048_v2 = vrot.slane %v819_v36, %v1763_v63 }
 0x1fa   :  { %v1040_v21 = vsel %vm949_vm2, %v1039_v3, %v1035_v10 }
 0x1fb   :  { %v906_v37 = vpop.permute.xlu1 %905  ;;  %v915_v38 = vpop.permute.xlu0 %914  ;;  %v1245_v33 = vsel %vm1232_vm4, %v1040_v21, %v1244_v30 }
 0x1fc   :  { %v1179_v40 = vrot.slane %v906_v37, %v1760_v25  ;;  %v1192_v47 = vrot.slane %v915_v38, %v1763_v63 }
 0x1fe   :  { %v1184_v41 = vsel %vm949_vm2, %v1183_v39, %v1179_v40 }
 0x1ff   :  { %v1259_v42 = vsel %vm1232_vm4, %v1184_v41, %v1258_v34  ;;  %v816_v43 = vpop.permute.xlu1 %815  ;;  %v825_v44 = vpop.permute.xlu0 %824 }
 0x200   :  { %v1044_v17 = vrot.slane %v816_v43, %v1760_v25  ;;  %v1057_v24 = vrot.slane %v825_v44, %v1763_v63 }
 0x202   :  { %v1049_v26 = vsel %vm949_vm2, %v1048_v2, %v1044_v17 }
 0x203   :  { %v912_v45 = vpop.permute.xlu1 %911  ;;  %v921_v46 = vpop.permute.xlu0 %920  ;;  %v1246_v36 = vsel %vm1234_vm5, %v1049_v26, %v1245_v33 }
 0x204   :  { %v1188_v48 = vrot.slane %v912_v45, %v1760_v25  ;;  %v1201_v55 = vrot.slane %v921_v46, %v1763_v63 }
 0x206   :  { %v1193_v49 = vsel %vm949_vm2, %v1192_v47, %v1188_v48 }
 0x207   :  { %v1260_v50 = vsel %vm1234_vm5, %v1193_v49, %v1259_v42  ;;  %v822_v51 = vpop.permute.xlu1 %821  ;;  %v831_v52 = vpop.permute.xlu0 %830 }
 0x208   :  { %v1053_v20 = vrot.slane %v822_v51, %v1760_v25  ;;  %v1066_v27 = vrot.slane %v831_v52, %v1763_v63 }
 0x20a   :  { %v1058_v31 = vsel %vm949_vm2, %v1057_v24, %v1053_v20 }
 0x20b   :  { %v918_v53 = vpop.permute.xlu1 %917  ;;  %v927_v54 = vpop.permute.xlu0 %926  ;;  %v1247_v40 = vsel %vm1236_vm6, %v1058_v31, %v1246_v36 }
 0x20c   :  { %v1197_v56 = vrot.slane %v918_v53, %v1760_v25  ;;  %v1210_v5 = vrot.slane %v927_v54, %v1763_v63 }
 0x20e   :  { %v1202_v57 = vsel %vm949_vm2, %v1201_v55, %v1197_v56 }
 0x20f   :  { %v1261_v58 = vsel %vm1236_vm6, %v1202_v57, %v1260_v50  ;;  %v828_v59 = vpop.permute.xlu1 %827  ;;  %v837_v60 = vpop.permute.xlu0 %836 }
 0x210   :  { %v1062_v1 = vrot.slane %v828_v59, %v1760_v25  ;;  %v1075_v32 = vrot.slane %v837_v60, %v1763_v63 }
 0x212   :  { %v1067_v34 = vsel %vm949_vm2, %v1066_v27, %v1062_v1 }
 0x213   :  { %v924_v61 = vpop.permute.xlu1 %923  ;;  %v933_v62 = vpop.permute.xlu0 %932  ;;  %v1248_v44 = vsel %vm1238_vm7, %v1067_v34, %v1247_v40 }
 0x214   :  { %v1206_v6 = vrot.slane %v924_v61, %v1760_v25  ;;  %v1219_v28 = vrot.slane %v933_v62, %v1763_v63 }
 0x216   :  { %v1211_v8 = vsel %vm949_vm2, %v1210_v5, %v1206_v6 }
 0x217   :  { %v834_v11 = vpop.permute.xlu1 %833  ;;  %v843_v12 = vpop.permute.xlu0 %842  ;;  %v1262_v13 = vsel %vm1238_vm7, %v1211_v8, %v1261_v58 }
 0x218   :  { %v1071_v4 = vrot.slane %v834_v11, %v1760_v25  ;;  %v1084_v41 = vrot.slane %v843_v12, %v1763_v63 }
 0x21a   :  { %v1076_v37 = vsel %vm949_vm2, %v1075_v32, %v1071_v4 }
 0x21b   :  { %v930_v19 = vpop.permute.xlu1 %929  ;;  %v1810_v14 = vpop.permute.xlu0 %749  ;;  %v1249_v46 = vsel %vm1240_vm8, %v1076_v37, %v1248_v44 }
 0x21c   :  { %v1215_v29 = vrot.slane %v930_v19, %v1760_v25 }
 0x21e   :  { %v1220_v35 = vsel %vm949_vm2, %v1219_v28, %v1215_v29 }
 0x21f   :  { %v840_v38 = vpop.permute.xlu1 %839  ;;  %v1825_v39 = vsel %vm1240_vm8, %v1220_v35, %v1262_v13 }
 0x220   :  { %v1080_v42 = vrot.slane %v840_v38, %v1760_v25  ;;  %v1830_v43 = vpop.permute.xlu0 %758 }
 0x222   :  { %v1085_v45 = vsel %vm949_vm2, %v1084_v41, %v1080_v42  ;;  %v958_v42 = vrot.slane %v1830_v43, %v1763_v63 }
 0x223   :  { %v1835_v47 = vpop.permute.xlu1 %752  ;;  %v1838_v48 = vsel %vm1242_vm9, %v1085_v45, %v1249_v46  ;;  %v943_v45 = vrot.slane %v1810_v14, %v1760_v25 }
 0x224   :  { %v849_v49 = vpop.permute.xlu0 %848  ;;  %v1273_v50 = vsel %vm1269_vm10, %v1838_v48, inf  ;;  %v948_v37 = vrot.slane %v1835_v47, %v1763_v63 }
 0x225   :  { %1274 = vmin.index.xlane.f32.xlu0 %v1273_v50  ;;  %v1093_v10 = vrot.slane %v849_v49, %v1763_v63 }
 0x227   :  { %v756_v51 = vpop.permute.xlu1 %755 }
 0x228   :  { %v855_v52 = vpop.permute.xlu0 %854  ;;  %v954_v35 = vrot.slane %v756_v51, %v1760_v25 }
 0x229   :  { %v1102_v6 = vrot.slane %v855_v52, %v1763_v63 }
 0x22a   :  { %v959_v47 = vsel %vm949_vm2, %v958_v42, %v954_v35 }
 0x22b   :  { %v846_v53 = vpop.permute.xlu1 %845 }
 0x22c   :  { %v765_v54 = vpop.permute.xlu0 %764  ;;  %v1089_v7 = vrot.slane %v846_v53, %v1760_v25  ;;  %v950_v53 = vsel %vm949_vm2, %v948_v37, %v943_v45 }
 0x22d   :  { %v967_v46 = vrot.slane %v765_v54, %v1763_v63 }
 0x22e   :  { %v1094_v16 = vsel %vm949_vm2, %v1093_v10, %v1089_v7 }
 0x22f   :  { %v852_v55 = vpop.permute.xlu1 %851 }
 0x230   :  { %v861_v56 = vpop.permute.xlu0 %860  ;;  %v1098_v61 = vrot.slane %v852_v55, %v1760_v25 }
 0x231   :  { %v1111_v9 = vrot.slane %v861_v56, %v1763_v63 }
 0x232   :  { %v1103_v11 = vsel %vm949_vm2, %v1102_v6, %v1098_v61 }
 0x233   :  { %v762_v57 = vpop.permute.xlu1 %761  ;;  %v1251_v20 = vsel %vm1230_vm3, %v1103_v11, %v1094_v16 }
 0x234   :  { %v771_v58 = vpop.permute.xlu0 %770  ;;  %v963_v38 = vrot.slane %v762_v57, %v1760_v25 }
 0x235   :  { %v976_v51 = vrot.slane %v771_v58, %v1763_v63  ;;  %v1231_v58 = vsel %vm1230_vm3, %v959_v47, %v950_v53 }
 0x236   :  { %v968_v43 = vsel %vm949_vm2, %v967_v46, %v963_v38 }
 0x237   :  { %v858_v59 = vpop.permute.xlu1 %857 }
 0x238   :  { %v867_v60 = vpop.permute.xlu0 %866  ;;  %v1107_v62 = vrot.slane %v858_v59, %v1760_v25 }
 0x239   :  { %v1120_v17 = vrot.slane %v867_v60, %v1763_v63 }
 0x23a   :  { %v1112_v12 = vsel %vm949_vm2, %v1111_v9, %v1107_v62 }
 0x23b   :  { %v768_v5 = vpop.permute.xlu1 %767  ;;  %v1252_v0 = vsel %vm1232_vm4, %v1112_v12, %v1251_v20 }
 0x23c   :  { %v777_v8 = vpop.permute.xlu0 %776  ;;  %v972_v44 = vrot.slane %v768_v5, %v1760_v25  ;;  %v1233_v5 = vsel %vm1232_vm4, %v968_v43, %v1231_v58 }
 0x23d   :  { %v985_v55 = vrot.slane %v777_v8, %v1763_v63 }
 0x23e   :  { %v977_v54 = vsel %vm949_vm2, %v976_v51, %v972_v44 }
 0x23f   :  { %v864_v13 = vpop.permute.xlu1 %863  ;;  %v1235_v8 = vsel %vm1234_vm5, %v977_v54, %v1233_v5 }
 0x240   :  { %v1116_v18 = vrot.slane %v864_v13, %v1760_v25  ;;  %v873_v3 = vpop.permute.xlu0 %872 }
 0x241   :  { %v1129_v4 = vrot.slane %v873_v3, %v1763_v63 }
 0x242   :  { %v1121_v2 = vsel %vm949_vm2, %v1120_v17, %v1116_v18 }
 0x243   :  { %v1253_v1 = vsel %vm1234_vm5, %v1121_v2, %v1252_v0  ;;  %v774_v23 = vpop.permute.xlu1 %773 }
 0x244   :  { %v783_v21 = vpop.permute.xlu0 %782  ;;  %v981_v49 = vrot.slane %v774_v23, %v1760_v25 }
 0x245   :  { %v994_v57 = vrot.slane %v783_v21, %v1763_v63 }
 0x246   :  { %v986_v61 = vsel %vm949_vm2, %v985_v55, %v981_v49 }
 0x247   :  { %v870_v24 = vpop.permute.xlu1 %869  ;;  %v1237_v13 = vsel %vm1236_vm6, %v986_v61, %v1235_v8 }
 0x248   :  { %v1125_v19 = vrot.slane %v870_v24, %v1760_v25  ;;  %v879_v26 = vpop.permute.xlu0 %878 }
 0x249   :  { %v1138_v32 = vrot.slane %v879_v26, %v1763_v63 }
 0x24a   :  { %v1130_v27 = vsel %vm949_vm2, %v1129_v4, %v1125_v19 }
 0x24b   :  { %v1254_v28 = vsel %vm1236_vm6, %v1130_v27, %v1253_v1  ;;  %v780_v29 = vpop.permute.xlu1 %779 }
 0x24c   :  { %v789_v30 = vpop.permute.xlu0 %788  ;;  %v990_v52 = vrot.slane %v780_v29, %v1760_v25 }
 0x24d   :  { %v1003_v62 = vrot.slane %v789_v30, %v1763_v63 }
 0x24e   :  { %v995_v6 = vsel %vm949_vm2, %v994_v57, %v990_v52 }
 0x24f   :  { %v876_v31 = vpop.permute.xlu1 %875  ;;  %v1239_v18 = vsel %vm1238_vm7, %v995_v6, %v1237_v13 }
 0x250   :  { %v1134_v33 = vrot.slane %v876_v31, %v1760_v25  ;;  %v885_v34 = vpop.permute.xlu0 %884 }
 0x251   :  { %v1147_v59 = vrot.slane %v885_v34, %v1763_v63 }
 0x252   :  { %v1139_v36 = vsel %vm949_vm2, %v1138_v32, %v1134_v33 }
 0x253   :  { %v786_v40 = vpop.permute.xlu1 %785  ;;  %v1255_v41 = vsel %vm1238_vm7, %v1139_v36, %v1254_v28  ;;  %vm1376_vm7 = vcmp.eq.s32.totalorder %v1578_v15, 2 }
 0x254   :  { %v795_v50 = vpop.permute.xlu0 %794  ;;  %v999_v56 = vrot.slane %v786_v40, %v1760_v25 }
 0x255   :  { %v1012_v16 = vrot.slane %v795_v50, %v1763_v63 }
 0x256   :  { %v1004_v9 = vsel %vm949_vm2, %v1003_v62, %v999_v56 }
 0x257   :  { %v882_v14 = vpop.permute.xlu1 %881  ;;  %v1241_v20 = vsel %vm1240_vm8, %v1004_v9, %v1239_v18 }
 0x258   :  { %v1143_v60 = vrot.slane %v882_v14, %v1760_v25  ;;  %v891_v10 = vpop.permute.xlu0 %890 }
 0x259   :  { %v1156_v1 = vrot.slane %v891_v10, %v1763_v63 }
 0x25a   :  { %v1148_v7 = vsel %vm949_vm2, %v1147_v59, %v1143_v60 }
 0x25b   :  { %v792_v11 = vpop.permute.xlu1 %791  ;;  %v1256_v12 = vsel %vm1240_vm8, %v1148_v7, %v1255_v41 }
 0x25c   :  { %v1008_v17 = vrot.slane %v792_v11, %v1760_v25  ;;  %v939_v24 = vpop.permute.xlu0 %938 }
 0x25d   :  { %v1228_v27 = vrot.slane %v939_v24, %v1763_v63 }
 0x25e   :  { %v1013_v3 = vsel %vm949_vm2, %v1012_v16, %v1008_v17 }
 0x25f   :  { %v888_v0 = vpop.permute.xlu1 %887  ;;  %v1243_v2 = vsel %vm1242_vm9, %v1013_v3, %v1241_v20 }
 0x260   :  { %v1152_v23 = vrot.slane %v888_v0, %v1760_v25  ;;  %v1270_v21 = vsel %vm1269_vm10, %v1243_v2, inf }
 0x261   :  { %1271 = vmin.index.xlane.f32.xlu1 %v1270_v21 }
 0x262   :  { %v1157_v4 = vsel %vm949_vm2, %v1156_v1, %v1152_v23 }
 0x263   :  { %v936_v19 = vpop.permute.xlu1 %935  ;;  %v1257_v26 = vsel %vm1242_vm9, %v1157_v4, %v1256_v12 }
 0x264   :  { %v1224_v28 = vrot.slane %v936_v19, %v1760_v25  ;;  %v1276_v29 = vsel %vm1269_vm10, %v1257_v26, inf }
 0x265   :  { %1277 = vmin.index.xlane.f32.xlu0 %v1276_v29 }
 0x266   :  { %v1229_v30 = vsel %vm949_vm2, %v1228_v27, %v1224_v28 }
 0x267   :  { %v1264_v31 = vsel %vm1242_vm9, %v1229_v30, %v1825_v39 }
 0x268   :  { %v1279_v32 = vsel %vm1269_vm10, %v1264_v31, inf }
 0x269   :  { %1280 = vmin.index.xlane.f32.xlu0 %v1279_v32 }
 0x2b2   :  { %v1275_v33 = vpop.xlane.xlu0 %1274 }
 0x2b3   :  { %vm1310_vm11 = vcmp.eq.s32.totalorder %v1751_v22, %v1275_v33  ;;  %v1292_v47 = vrot.slane %v1275_v33, %v1763_v63 }
 0x2b4   :  { %v1314_v34 = vsel %vm1310_vm11, inf, %v1838_v48 }
 0x2b5   :  { %v1320_v35 = vsel %vm1269_vm10, %v1314_v34, inf }
 0x2b6   :  { %1321 = vmin.index.xlane.f32.xlu0 %v1320_v35 }
 0x2ee   :  { %v1272_v36 = vpop.xlane.xlu1 %1271 }
 0x2ef   :  { %vm1309_vm12 = vcmp.eq.s32.totalorder %v1751_v22, %v1272_v36  ;;  %v1288_v50 = vrot.slane %v1272_v36, %v1760_v25 }
 0x2f0   :  { %v1313_v37 = vsel %vm1309_vm12, inf, %v1243_v2  ;;  %vm1423_vm12 = vcmp.eq.s32.totalorder %v1578_v15, 3 }
 0x2f1   :  { %v1317_v38 = vsel %vm1269_vm10, %v1313_v37, inf  ;;  %v1293_v51 = vsel %vm949_vm2, %v1292_v47, %v1288_v50 }
 0x2f2   :  { %1318 = vmin.index.xlane.f32.xlu1 %v1317_v38  ;;  %v1920_v40 = vpop.xlane.xlu0 %1277  ;;  %v1307_v56 = vsel %vm1282_vm0, %v1293_v51, 0 }
 0x2f3   :  { %vm1311_vm13 = vcmp.eq.s32.totalorder %v1751_v22, %v1920_v40  ;;  %v1297_v27 = vrot.slane %v1920_v40, %v1760_v25 }
 0x2f4   :  { %v1315_v39 = vsel %vm1311_vm13, inf, %v1257_v26  ;;  %vm1450_vm13 = vcmask 125952  }
 0x2f5   :  { %v1323_v41 = vsel %vm1269_vm10, %v1315_v39, inf }
 0x2f6   :  { %1324 = vmin.index.xlane.f32.xlu1 %v1323_v41  ;;  %v1925_v48 = vpop.xlane.xlu0 %1280 }
 0x2f7   :  { %vm1312_vm14 = vcmp.eq.s32.totalorder %v1751_v22, %v1925_v48  ;;  %v1301_v19 = vrot.slane %v1925_v48, %v1763_v63 }
 0x2f8   :  { %v1316_v42 = vsel %vm1312_vm14, inf, %v1264_v31 }
 0x2f9   :  { %v1326_v44 = vsel %vm1269_vm10, %v1316_v42, inf  ;;  %v1302_v31 = vsel %vm949_vm2, %v1301_v19, %v1297_v27 }
 0x2fa   :  { %1327 = vmin.index.xlane.f32.xlu0 %v1326_v44 }
 0x343   :  { %v1322_v45 = vpop.xlane.xlu0 %1321 }
 0x344   :  { %vm1357_vm15 = vcmp.eq.s32.totalorder %v1751_v22, %v1322_v45  ;;  %v1339_v53 = vrot.slane %v1322_v45, %v1763_v63 }
 0x345   :  { %v1361_v46 = vsel %vm1357_vm15, inf, %v1314_v34 }
 0x346   :  { %v1367_v49 = vsel %vm1269_vm10, %v1361_v46, inf }
 0x347   :  { %1368 = vmin.index.xlane.f32.xlu0 %v1367_v49 }
 0x37f   :  { %v1319_v52 = vpop.xlane.xlu1 %1318 }
 0x380   :  { %v1335_v43 = vrot.slane %v1319_v52, %v1760_v25  ;;  %vm1356_vm3 = vcmp.eq.s32.totalorder %v1751_v22, %v1319_v52 }
 0x381   :  { %v1360_v55 = vsel %vm1356_vm3, inf, %v1313_v37  ;;  %v1308_v37 = vsel %vm1282_vm0, %v1302_v31, 0 }
 0x382   :  { %v1340_v14 = vsel %vm949_vm2, %v1339_v53, %v1335_v43  ;;  %v1364_v54 = vsel %vm1269_vm10, %v1360_v55, inf }
 0x383   :  { %v1354_v57 = vsel %vm1329_vm1, %v1340_v14, %v1307_v56  ;;  %1365 = vmin.index.xlane.f32.xlu1 %v1364_v54  ;;  %v1325_v59 = vpop.xlane.xlu1 %1324 }
 0x384   :  { %vm1358_vm4 = vcmp.eq.s32.totalorder %v1751_v22, %v1325_v59  ;;  %v1344_v30 = vrot.slane %v1325_v59, %v1760_v25 }
 0x385   :  { %v1362_v60 = vsel %vm1358_vm4, inf, %v1315_v39 }
 0x386   :  { %v1370_v58 = vsel %vm1269_vm10, %v1362_v60, inf }
 0x387   :  { %1371 = vmin.index.xlane.f32.xlu1 %v1370_v58  ;;  %v1328_v61 = vpop.xlane.xlu0 %1327 }
 0x388   :  { %vm1359_vm5 = vcmp.eq.s32.totalorder %v1751_v22, %v1328_v61  ;;  %v1348_v26 = vrot.slane %v1328_v61, %v1763_v63 }
 0x389   :  { %v1363_v62 = vsel %vm1359_vm5, inf, %v1316_v42 }
 0x38a   :  { %v1373_v5 = vsel %vm1269_vm10, %v1363_v62, inf  ;;  %v1349_v34 = vsel %vm949_vm2, %v1348_v26, %v1344_v30 }
 0x38b   :  { %1374 = vmin.index.xlane.f32.xlu0 %v1373_v5  ;;  %v1355_v39 = vsel %vm1329_vm1, %v1349_v34, %v1308_v37 }
 0x3d4   :  { %v1369_v6 = vpop.xlane.xlu0 %1368 }
 0x3d5   :  { %vm1404_vm6 = vcmp.eq.s32.totalorder %v1751_v22, %v1369_v6  ;;  %v1386_v10 = vrot.slane %v1369_v6, %v1763_v63 }
 0x3d6   :  { %v1408_v7 = vsel %vm1404_vm6, inf, %v1361_v46 }
 0x3d7   :  { %v1414_v8 = vsel %vm1269_vm10, %v1408_v7, inf }
 0x3d8   :  { %1415 = vmin.index.xlane.f32.xlu0 %v1414_v8 }
 0x410   :  { %v1366_v9 = vpop.xlane.xlu1 %1365 }
 0x411   :  { %v1382_v11 = vrot.slane %v1366_v9, %v1760_v25  ;;  %vm1403_vm8 = vcmp.eq.s32.totalorder %v1751_v22, %v1366_v9 }
 0x412   :  { %v1407_v12 = vsel %vm1403_vm8, inf, %v1360_v55 }
 0x413   :  { %v1387_v13 = vsel %vm949_vm2, %v1386_v10, %v1382_v11  ;;  %v1411_v16 = vsel %vm1269_vm10, %v1407_v12, inf }
 0x414   :  { %v1401_v17 = vsel %vm1376_vm7, %v1387_v13, %v1354_v57  ;;  %1412 = vmin.index.xlane.f32.xlu1 %v1411_v16  ;;  %v1372_v18 = vpop.xlane.xlu1 %1371 }
 0x415   :  { %vm1405_vm9 = vcmp.eq.s32.totalorder %v1751_v22, %v1372_v18  ;;  %v1391_v32 = vrot.slane %v1372_v18, %v1760_v25 }
 0x416   :  { %v1409_v3 = vsel %vm1405_vm9, inf, %v1362_v60 }
 0x417   :  { %v1417_v20 = vsel %vm1269_vm10, %v1409_v3, inf }
 0x418   :  { %1418 = vmin.index.xlane.f32.xlu1 %v1417_v20  ;;  %v1375_v0 = vpop.xlane.xlu0 %1374 }
 0x419   :  { %vm1406_vm11 = vcmp.eq.s32.totalorder %v1751_v22, %v1375_v0  ;;  %v1395_v28 = vrot.slane %v1375_v0, %v1763_v63 }
 0x41a   :  { %v1410_v2 = vsel %vm1406_vm11, inf, %v1363_v62 }
 0x41b   :  { %v1420_v1 = vsel %vm1269_vm10, %v1410_v2, inf  ;;  %v1396_v35 = vsel %vm949_vm2, %v1395_v28, %v1391_v32 }
 0x41c   :  { %1421 = vmin.index.xlane.f32.xlu0 %v1420_v1  ;;  %v1402_v41 = vsel %vm1376_vm7, %v1396_v35, %v1355_v39 }
 0x465   :  { %v1416_v23 = vpop.xlane.xlu0 %1415 }
 0x466   :  { %v1433_v24 = vrot.slane %v1416_v23, %v1763_v63 }
 0x4a1   :  { %v1413_v21 = vpop.xlane.xlu1 %1412 }
 0x4a2   :  { %v1429_v4 = vrot.slane %v1413_v21, %v1760_v25 }
 0x4a4   :  { %v1434_v22 = vsel %vm949_vm2, %v1433_v24, %v1429_v4 }
 0x4a5   :  { %v1448_v29 = vsel %vm1423_vm12, %v1434_v22, %v1401_v17  ;;  %v1419_v33 = vpop.xlane.xlu1 %1418 }
 0x4a6   :  { %1451 = vst.msk [vmem:[#allocation2] sm:$0xf] %vm1450_vm13, %v1448_v29  ;;  %v1438_v38 = vrot.slane %v1419_v33, %v1760_v25 }
 0x4a9   :  { %v1422_v36 = vpop.xlane.xlu0 %1421 }
 0x4aa   :  { %v1442_v40 = vrot.slane %v1422_v36, %v1763_v63 }
 0x4ac   :  { %v1443_v48 = vsel %vm949_vm2, %v1442_v40, %v1438_v38 }
 0x4ad   :  { %v1449_v42 = vsel %vm1423_vm12, %v1443_v48, %v1402_v41 }
 0x4ae   :  { %1452 = vst.msk [vmem:[#allocation2 + $0x4] sm:$0xf] %vm1450_vm13, %v1449_v42 }
 0x4af   :  { %1528 = shalt.err (!%p1525_p4)
}
 0x4b0   :  { %s1529_s18 = scalar_lea.hbm %s2007_s1, 128 }
 0x4b1   :  { %p1530_p5 = scmp.ne.s32.totalorder %s2007_s1, %s1529_s18  ;;  %p1533_p6 = scmp.lt.u32.totalorder %s1529_s18, %s2007_s1 }
 0x4b3   :  { %p1535_p7 = pnand %p1533_p6, %p1530_p5 }
 0x4b5   :  { %1538 = shalt.err (!%p1535_p7)
}
 0x4b6   :  { %s1543_s23 = smov 64   ;;  %s1544_s24 = smov 4  }
 0x4b7   :  { %1464 = dma.vmem_to_hbm [thread:$0]  %s1459_s14, 128, %s2007_s1, [#allocation3], %s1543_s23, %s1543_s23, %s1544_s24  }
 0x4b8   :  { %1539 = dma.done.wait [#allocation3], 128  }
 0x4b9   :  { %1540 = vsyncadd [#allocation3], 4294967168 }
 0x4ba   :  { %1468 = vsyncpa [#allocation3], 1 }

// kernel: tpu_custom_call.1
= control target key start
LH: loop header
LB: loop body
LE: loop exit
PB: predicated region body
PF: predicated region fallthrough
CT: control target
= control target key end

     0   :  { %vm13_vm0 = vcmask 23552   ;;  %s3672_s0 = inlined_call_operand.vmem [shape: f32[2,16,3], index: 0, kind: input, shape index: {}]   ;;  %s3673_s1 = inlined_call_operand.hbm [shape: s32[2,4,16], index: 1, kind: output, shape index: {}]  }
   0x1   :  { %v9_v0 = vld [vmem:[%s3672_s0] sm:$0xff]  ;;  %v10_v1 = vld [vmem:[%s3672_s0 + $0x8] sm:$0xff]  ;;  %v11_v2 = vld [vmem:[%s3672_s0 + $0x10] sm:$0xff] }
   0x2   :  { %v2570_v3 = vpack.c.bf16 %v10_v1, %v9_v0  ;;  %vm2571_vm1 = vmpackc.low %vm13_vm0, %vm13_vm0  ;;  %2560 = vmatprep.mubr.msk.f32.mxu0 %vm13_vm0, %v9_v0  ;;  %v12_v4 = vld [vmem:[%s3672_s0 + $0x18] sm:$0xff]  ;;  %2567 = vmatprep.mubr.msk.f32.mxu1 %vm13_vm0, %v11_v2  ;;  %v178_v5 = vmul.f32 %v11_v2, %v11_v2  ;;  %v176_v6 = vmul.f32 %v9_v0, %v9_v0 }
   0x3   :  { %v2576_v7 = vpack.c.bf16 %v12_v4, %v11_v2  ;;  %v179_v8 = vmul.f32 %v12_v4, %v12_v4 }
   0x4   :  { %6 = vsyncpa [#allocation3], 0  ;;  %2572 = vmatprep.subr.msk.bf16.mxu0 %vm2571_vm1, %v2570_v3  ;;  %v186_v9 = vsel %vm13_vm0, %v178_v5, 0.0  ;;  %v180_v10 = vsel %vm13_vm0, %v176_v6, 0.0  ;;  %v177_v11 = vmul.f32 %v10_v1, %v10_v1  ;;  %v200_v14 = vlaneseq  ;;  %s2613_s0 = smov [#allocation2]  }
   0x5   :  { %2575 = vmatpush3.bf16.xpose.msk.msra.mxu0 %vm2571_vm1, %v2570_v3  ;;  %2578 = vmatprep.subr.msk.bf16.mxu1 %vm2571_vm1, %v2576_v7  ;;  %v189_v12 = vsel %vm13_vm0, %v179_v8, 0.0  ;;  %v2612_v22 = vmov 0   ;;  %vm949_vm2 = vcmask 130112   ;;  %vm1230_vm3 = vcmask 1041409   ;;  %s2529_s14 = sshll.u32 %s2613_s0, 4  ;;  %s2530_s14 = int_to_ptr.vmem [resolvable:$true] %s2529_s14 }
   0x6   :  { %2581 = vmatpush3.bf16.xpose.msk.msra.mxu1 %vm2571_vm1, %v2576_v7  ;;  %187 = vadd.xlane.f32.xlu1 %v186_v9  ;;  %v183_v13 = vsel %vm13_vm0, %v177_v11, 0.0  ;;  %v2648_v15 = vand.u32 127, %v200_v14  ;;  %v2652_v16 = vshrl.u32 %v200_v14, 7  ;;  %vm1232_vm4 = vcmask 1042434   ;;  %s2588_s15 = scalar_lea.vmem %s2530_s14, 128  ;;  %p2593_p1 = scmp.lt.s32.totalorder %s2530_s14, %s2530_s14 }
   0x7   :  { %181 = vadd.xlane.f32.xlu0 %v180_v10  ;;  %2586 = vset.pattern.permute.xlu1 %v2612_v22  ;;  %vm1234_vm5 = vcmask 1043459   ;;  %vm1236_vm6 = vcmask 1044484   ;;  %vm1238_vm7 = vcmask 1045509   ;;  %vm1240_vm8 = vcmask 1046534   ;;  %p2589_p0 = scmp.ne.s32.totalorder %s2530_s14, %s2588_s15  ;;  %p2594_p2 = scmp.lt.s32.totalorder %s2588_s15, %s2588_s15 }
   0x8   :  { %3732 = vst [vmem:[#allocation5_spill] sm:$0xff] %v2648_v15  ;;  %3733 = vst [vmem:[#allocation6_spill] sm:$0xff] %v2652_v16  ;;  %v2655_v17 = vsub.s32 0, %v2652_v16  ;;  %2587 = vset.pattern.permute.xlu0 %v2612_v22  ;;  %v2659_v25 = vsub.s32 1, %v2652_v16  ;;  %v2665_v30 = vsub.s32 2, %v2652_v16  ;;  %v2670_v33 = vsub.s32 3, %v2652_v16 }
   0x9   :  { %v2675_v36 = vsub.s32 4, %v2652_v16  ;;  %v2680_v39 = vsub.s32 5, %v2652_v16  ;;  %v2685_v42 = vsub.s32 6, %v2652_v16  ;;  %v2690_v45 = vsub.s32 7, %v2652_v16  ;;  %p2595_p3 = por %p2594_p2, %p2593_p1 }
   0xa   :  { %190 = vadd.xlane.f32.xlu1 %v189_v12  ;;  %vm1242_vm9 = vcmask 1047559   ;;  %vm1269_vm10 = vcmask 130048  }
   0xb   :  { %184 = vadd.xlane.f32.xlu0 %v183_v13  ;;  %3734 = vst [vmem:[#allocation7_spill] sm:$0xff] %v2680_v39  ;;  %3735 = vst [vmem:[#allocation8_spill] sm:$0xff] %v2685_v42  ;;  %p2596_p4 = pnand %p2595_p3, %p2589_p0 }
   0xc   :  { %2561 = vmatmul.mubr.msk.f32.vlgmr.msra.gmra.mrb[0].mxu0 %vm13_vm0, %v10_v1  ;;  %3736 = vst [vmem:[#allocation9_spill] sm:$0xff] %v2690_v45 }
   0xd   :  { %2568 = vmatmul.mubr.msk.f32.vlgmr.msra.gmra.mrb[0].mxu1 %vm13_vm0, %v12_v4 }
  0x1b   :  { %1511 = vbcast.lane.b32.xlu1 %v2648_v15, 256 }
  0x21   :  { %1515 = vbcast.lane.b32.xlu0 %v2648_v15, 264 }
  0x93   :  { %v2704_v60 = vpop.xlane.xlu1 %187 }
  0x94   :  { %v2706_v61 = vpop.xlane.xlu0 %181 }
  0x97   :  { %v2710_v0 = vpop.xlane.xlu1 %190 }
  0x98   :  { %v2712_v1 = vpop.xlane.xlu0 %184 }
  0x9b   :  { %v2715_v3 = vpop.permute.xlu1 %1511 }
  0x9c   :  { %v2717_v4 = vpop.permute.xlu0 %1515 }
  0xdf   :  { %v2562_v18 = vpop.f32.mrb[0].mxu0 }
  0xe0   :  { %v193_v19 = vmul.f32 2.0, %v2562_v18  ;;  %v86_v20 = vpop.f32.mrb[1].mxu0  ;;  %v2569_v21 = vpop.f32.mrb[0].mxu1 }
  0xe1   :  { %v167_v23 = vpop.f32.mrb[1].mxu1  ;;  %v195_v26 = vmul.f32 2.0, %v2569_v21  ;;  %v192_v47 = vmul.f32 2.0, %v86_v20 }
  0xe2   :  { %v291_v24 = vrot.slane %v193_v19, %v2655_v17  ;;  %v302_v27 = vrot.slane %v193_v19, %v2659_v25  ;;  %v313_v31 = vrot.slane %v193_v19, %v2665_v30  ;;  %v324_v34 = vrot.slane %v193_v19, %v2670_v33 }
  0xe3   :  { %v467_v28 = vrot.slane %v195_v26, %v2655_v17  ;;  %v478_v29 = vrot.slane %v195_v26, %v2659_v25  ;;  %v489_v32 = vrot.slane %v195_v26, %v2665_v30  ;;  %v500_v35 = vrot.slane %v195_v26, %v2670_v33 }
  0xe4   :  { %297 = vbcast.lane.b32.xlu1 %v291_v24, 264  ;;  %293 = vbcast.lane.b32.xlu0 %v291_v24, 256  ;;  %v335_v37 = vrot.slane %v193_v19, %v2675_v36  ;;  %v511_v38 = vrot.slane %v195_v26, %v2675_v36  ;;  %v346_v40 = vrot.slane %v193_v19, %v2680_v39  ;;  %v194_v49 = vmul.f32 2.0, %v167_v23 }
  0xe5   :  { %v522_v41 = vrot.slane %v195_v26, %v2680_v39  ;;  %v357_v43 = vrot.slane %v193_v19, %v2685_v42  ;;  %v533_v44 = vrot.slane %v195_v26, %v2685_v42  ;;  %v368_v46 = vrot.slane %v193_v19, %v2690_v45 }
  0xe6   :  { %v544_v48 = vrot.slane %v195_v26, %v2690_v45  ;;  %v203_v50 = vrot.slane %v192_v47, %v2655_v17  ;;  %v214_v51 = vrot.slane %v192_v47, %v2659_v25  ;;  %v379_v52 = vrot.slane %v194_v49, %v2655_v17 }
  0xe7   :  { %v390_v53 = vrot.slane %v194_v49, %v2659_v25  ;;  %v225_v54 = vrot.slane %v192_v47, %v2665_v30  ;;  %v401_v55 = vrot.slane %v194_v49, %v2665_v30  ;;  %v236_v56 = vrot.slane %v192_v47, %v2670_v33 }
  0xe8   :  { %308 = vbcast.lane.b32.xlu1 %v302_v27, 264  ;;  %304 = vbcast.lane.b32.xlu0 %v302_v27, 256  ;;  %v412_v57 = vrot.slane %v194_v49, %v2670_v33  ;;  %v247_v58 = vrot.slane %v192_v47, %v2675_v36  ;;  %v423_v59 = vrot.slane %v194_v49, %v2675_v36 }
  0xe9   :  { %v258_v62 = vrot.slane %v192_v47, %v2680_v39  ;;  %v434_v63 = vrot.slane %v194_v49, %v2680_v39  ;;  %v269_v2 = vrot.slane %v192_v47, %v2685_v42  ;;  %v445_v5 = vrot.slane %v194_v49, %v2685_v42 }
  0xea   :  { %v280_v8 = vrot.slane %v192_v47, %v2690_v45  ;;  %v456_v11 = vrot.slane %v194_v49, %v2690_v45 }
  0xec   :  { %473 = vbcast.lane.b32.xlu1 %v467_v28, 264  ;;  %469 = vbcast.lane.b32.xlu0 %v467_v28, 256 }
  0xf0   :  { %484 = vbcast.lane.b32.xlu1 %v478_v29, 264  ;;  %480 = vbcast.lane.b32.xlu0 %v478_v29, 256 }
  0xf4   :  { %319 = vbcast.lane.b32.xlu1 %v313_v31, 264  ;;  %315 = vbcast.lane.b32.xlu0 %v313_v31, 256 }
  0xf8   :  { %495 = vbcast.lane.b32.xlu1 %v489_v32, 264  ;;  %491 = vbcast.lane.b32.xlu0 %v489_v32, 256 }
  0xfc   :  { %330 = vbcast.lane.b32.xlu1 %v324_v34, 264  ;;  %326 = vbcast.lane.b32.xlu0 %v324_v34, 256 }
 0x100   :  { %506 = vbcast.lane.b32.xlu1 %v500_v35, 264  ;;  %502 = vbcast.lane.b32.xlu0 %v500_v35, 256 }
 0x104   :  { %341 = vbcast.lane.b32.xlu1 %v335_v37, 264  ;;  %337 = vbcast.lane.b32.xlu0 %v335_v37, 256 }
 0x108   :  { %517 = vbcast.lane.b32.xlu1 %v511_v38, 264  ;;  %513 = vbcast.lane.b32.xlu0 %v511_v38, 256 }
 0x10c   :  { %352 = vbcast.lane.b32.xlu1 %v346_v40, 264  ;;  %348 = vbcast.lane.b32.xlu0 %v346_v40, 256 }
 0x110   :  { %528 = vbcast.lane.b32.xlu1 %v522_v41, 264  ;;  %524 = vbcast.lane.b32.xlu0 %v522_v41, 256 }
 0x114   :  { %363 = vbcast.lane.b32.xlu1 %v357_v43, 264  ;;  %359 = vbcast.lane.b32.xlu0 %v357_v43, 256 }
 0x118   :  { %539 = vbcast.lane.b32.xlu1 %v533_v44, 264  ;;  %535 = vbcast.lane.b32.xlu0 %v533_v44, 256 }
 0x11c   :  { %374 = vbcast.lane.b32.xlu1 %v368_v46, 264  ;;  %370 = vbcast.lane.b32.xlu0 %v368_v46, 256 }
 0x120   :  { %550 = vbcast.lane.b32.xlu1 %v544_v48, 264  ;;  %546 = vbcast.lane.b32.xlu0 %v544_v48, 256 }
 0x124   :  { %209 = vbcast.lane.b32.xlu1 %v203_v50, 264  ;;  %205 = vbcast.lane.b32.xlu0 %v203_v50, 256 }
 0x128   :  { %216 = vbcast.lane.b32.xlu1 %v214_v51, 256  ;;  %381 = vbcast.lane.b32.xlu0 %v379_v52, 256 }
 0x12c   :  { %220 = vbcast.lane.b32.xlu1 %v214_v51, 264  ;;  %392 = vbcast.lane.b32.xlu0 %v390_v53, 256 }
 0x130   :  { %385 = vbcast.lane.b32.xlu1 %v379_v52, 264  ;;  %227 = vbcast.lane.b32.xlu0 %v225_v54, 256 }
 0x134   :  { %396 = vbcast.lane.b32.xlu1 %v390_v53, 264  ;;  %403 = vbcast.lane.b32.xlu0 %v401_v55, 256 }
 0x138   :  { %231 = vbcast.lane.b32.xlu1 %v225_v54, 264  ;;  %238 = vbcast.lane.b32.xlu0 %v236_v56, 256 }
 0x13c   :  { %407 = vbcast.lane.b32.xlu1 %v401_v55, 264  ;;  %414 = vbcast.lane.b32.xlu0 %v412_v57, 256 }
 0x140   :  { %242 = vbcast.lane.b32.xlu1 %v236_v56, 264  ;;  %249 = vbcast.lane.b32.xlu0 %v247_v58, 256 }
 0x144   :  { %418 = vbcast.lane.b32.xlu1 %v412_v57, 264  ;;  %425 = vbcast.lane.b32.xlu0 %v423_v59, 256 }
 0x148   :  { %253 = vbcast.lane.b32.xlu1 %v247_v58, 264  ;;  %260 = vbcast.lane.b32.xlu0 %v258_v62, 256 }
 0x14c   :  { %429 = vbcast.lane.b32.xlu1 %v423_v59, 264  ;;  %436 = vbcast.lane.b32.xlu0 %v434_v63, 256 }
 0x150   :  { %264 = vbcast.lane.b32.xlu1 %v258_v62, 264  ;;  %271 = vbcast.lane.b32.xlu0 %v269_v2, 256 }
 0x154   :  { %440 = vbcast.lane.b32.xlu1 %v434_v63, 264  ;;  %447 = vbcast.lane.b32.xlu0 %v445_v5, 256 }
 0x156   :  { %v298_v6 = vpop.permute.xlu1 %297  ;;  %v294_v7 = vpop.permute.xlu0 %293 }
 0x157   :  { %v2723_v12 = vsub.f32 %v2712_v1, %v298_v6  ;;  %v2731_v21 = vsub.f32 %v2706_v61, %v294_v7 }
 0x158   :  { %275 = vbcast.lane.b32.xlu1 %v269_v2, 264  ;;  %282 = vbcast.lane.b32.xlu0 %v280_v8, 256 }
 0x15a   :  { %v309_v9 = vpop.permute.xlu1 %308  ;;  %v305_v10 = vpop.permute.xlu0 %304 }
 0x15b   :  { %v2727_v18 = vsub.f32 %v2712_v1, %v309_v9  ;;  %v2739_v26 = vsub.f32 %v2706_v61, %v305_v10 }
 0x15c   :  { %451 = vbcast.lane.b32.xlu1 %v445_v5, 264  ;;  %458 = vbcast.lane.b32.xlu0 %v456_v11, 256 }
 0x15e   :  { %v474_v13 = vpop.permute.xlu1 %473  ;;  %v470_v14 = vpop.permute.xlu0 %469 }
 0x15f   :  { %v2734_v22 = vsub.f32 %v2710_v0, %v474_v13  ;;  %v2747_v31 = vsub.f32 %v2704_v60, %v470_v14 }
 0x160   :  { %286 = vbcast.lane.b32.xlu1 %v280_v8, 264  ;;  %800 = vperm.xlu0 %2587, %v2723_v12  }
 0x162   :  { %v485_v19 = vpop.permute.xlu1 %484  ;;  %v481_v20 = vpop.permute.xlu0 %480 }
 0x163   :  { %v2742_v27 = vsub.f32 %v2710_v0, %v485_v19  ;;  %v2755_v37 = vsub.f32 %v2704_v60, %v481_v20 }
 0x164   :  { %462 = vbcast.lane.b32.xlu1 %v456_v11, 264  ;;  %806 = vperm.xlu0 %2587, %v2727_v18  }
 0x166   :  { %v320_v23 = vpop.permute.xlu1 %319  ;;  %v316_v24 = vpop.permute.xlu0 %315 }
 0x167   :  { %v2750_v32 = vsub.f32 %v2712_v1, %v320_v23  ;;  %v2763_v43 = vsub.f32 %v2706_v61, %v316_v24 }
 0x168   :  { %797 = vperm.xlu1 %2586, %v2731_v21   ;;  %896 = vperm.xlu0 %2587, %v2734_v22  }
 0x16a   :  { %v496_v28 = vpop.permute.xlu1 %495  ;;  %v492_v29 = vpop.permute.xlu0 %491 }
 0x16b   :  { %v2758_v38 = vsub.f32 %v2710_v0, %v496_v28  ;;  %v2771_v48 = vsub.f32 %v2704_v60, %v492_v29 }
 0x16c   :  { %803 = vperm.xlu1 %2586, %v2739_v26   ;;  %902 = vperm.xlu0 %2587, %v2742_v27  }
 0x16e   :  { %v331_v34 = vpop.permute.xlu1 %330  ;;  %v327_v35 = vpop.permute.xlu0 %326 }
 0x16f   :  { %v2766_v44 = vsub.f32 %v2712_v1, %v331_v34  ;;  %v2779_v52 = vsub.f32 %v2706_v61, %v327_v35 }
 0x170   :  { %893 = vperm.xlu1 %2586, %v2747_v31   ;;  %812 = vperm.xlu0 %2587, %v2750_v32  }
 0x172   :  { %v507_v40 = vpop.permute.xlu1 %506  ;;  %v503_v41 = vpop.permute.xlu0 %502 }
 0x173   :  { %v2774_v49 = vsub.f32 %v2710_v0, %v507_v40  ;;  %v2787_v56 = vsub.f32 %v2704_v60, %v503_v41 }
 0x174   :  { %899 = vperm.xlu1 %2586, %v2755_v37   ;;  %908 = vperm.xlu0 %2587, %v2758_v38  }
 0x176   :  { %v342_v46 = vpop.permute.xlu1 %341  ;;  %v338_v47 = vpop.permute.xlu0 %337 }
 0x177   :  { %v2782_v53 = vsub.f32 %v2712_v1, %v342_v46  ;;  %v2795_v62 = vsub.f32 %v2706_v61, %v338_v47 }
 0x178   :  { %809 = vperm.xlu1 %2586, %v2763_v43   ;;  %818 = vperm.xlu0 %2587, %v2766_v44  }
 0x17a   :  { %v518_v50 = vpop.permute.xlu1 %517  ;;  %v514_v51 = vpop.permute.xlu0 %513 }
 0x17b   :  { %v2790_v57 = vsub.f32 %v2710_v0, %v518_v50  ;;  %v2803_v6 = vsub.f32 %v2704_v60, %v514_v51 }
 0x17c   :  { %905 = vperm.xlu1 %2586, %v2771_v48   ;;  %914 = vperm.xlu0 %2587, %v2774_v49  }
 0x17d   :  { %3737 = vst [vmem:[#allocation10_spill] sm:$0xff] %v2790_v57  ;;  %3739 = vst [vmem:[#allocation12_spill] sm:$0xff] %v2803_v6 }
 0x17e   :  { %v353_v54 = vpop.permute.xlu1 %352  ;;  %v349_v55 = vpop.permute.xlu0 %348 }
 0x17f   :  { %v2798_v63 = vsub.f32 %v2712_v1, %v353_v54  ;;  %v2811_v10 = vsub.f32 %v2706_v61, %v349_v55 }
 0x180   :  { %815 = vperm.xlu1 %2586, %v2779_v52   ;;  %824 = vperm.xlu0 %2587, %v2782_v53  }
 0x181   :  { %3738 = vst [vmem:[#allocation11_spill] sm:$0xff] %v2798_v63  ;;  %3741 = vst [vmem:[#allocation14_spill] sm:$0xff] %v2811_v10 }
 0x182   :  { %v529_v58 = vpop.permute.xlu1 %528  ;;  %v525_v59 = vpop.permute.xlu0 %524 }
 0x183   :  { %v2806_v7 = vsub.f32 %v2710_v0, %v529_v58  ;;  %v2819_v19 = vsub.f32 %v2704_v60, %v525_v59 }
 0x184   :  { %911 = vperm.xlu1 %2586, %v2787_v56   ;;  %920 = vperm.xlu0 %2587, %v2790_v57  }
 0x185   :  { %3740 = vst [vmem:[#allocation13_spill] sm:$0xff] %v2806_v7  ;;  %3743 = vst [vmem:[#allocation16_spill] sm:$0xff] %v2819_v19 }
 0x186   :  { %v364_v2 = vpop.permute.xlu1 %363  ;;  %v360_v5 = vpop.permute.xlu0 %359 }
 0x187   :  { %v2814_v11 = vsub.f32 %v2712_v1, %v364_v2  ;;  %v2827_v28 = vsub.f32 %v2706_v61, %v360_v5 }
 0x188   :  { %821 = vperm.xlu1 %2586, %v2795_v62   ;;  %830 = vperm.xlu0 %2587, %v2798_v63  }
 0x189   :  { %3742 = vst [vmem:[#allocation15_spill] sm:$0xff] %v2814_v11  ;;  %3745 = vst [vmem:[#allocation18_spill] sm:$0xff] %v2827_v28 }
 0x18a   :  { %v540_v8 = vpop.permute.xlu1 %539  ;;  %v536_v9 = vpop.permute.xlu0 %535 }
 0x18b   :  { %v2822_v20 = vsub.f32 %v2710_v0, %v540_v8  ;;  %v2835_v40 = vsub.f32 %v2704_v60, %v536_v9 }
 0x18c   :  { %917 = vperm.xlu1 %2586, %v2803_v6   ;;  %926 = vperm.xlu0 %2587, %v2806_v7  }
 0x18d   :  { %3744 = vst [vmem:[#allocation17_spill] sm:$0xff] %v2822_v20  ;;  %3747 = vst [vmem:[#allocation20_spill] sm:$0xff] %v2835_v40 }
 0x18e   :  { %v375_v13 = vpop.permute.xlu1 %374  ;;  %v371_v14 = vpop.permute.xlu0 %370 }
 0x18f   :  { %v2830_v29 = vsub.f32 %v2712_v1, %v375_v13  ;;  %v2843_v50 = vsub.f32 %v2706_v61, %v371_v14 }
 0x190   :  { %827 = vperm.xlu1 %2586, %v2811_v10   ;;  %836 = vperm.xlu0 %2587, %v2814_v11  }
 0x191   :  { %3746 = vst [vmem:[#allocation19_spill] sm:$0xff] %v2830_v29  ;;  %3749 = vst [vmem:[#allocation22_spill] sm:$0xff] %v2843_v50 }
 0x192   :  { %v551_v23 = vpop.permute.xlu1 %550  ;;  %v547_v24 = vpop.permute.xlu0 %546 }
 0x193   :  { %v2838_v41 = vsub.f32 %v2710_v0, %v551_v23  ;;  %v2851_v58 = vsub.f32 %v2704_v60, %v547_v24 }
 0x194   :  { %923 = vperm.xlu1 %2586, %v2819_v19   ;;  %932 = vperm.xlu0 %2587, %v2822_v20  }
 0x195   :  { %3748 = vst [vmem:[#allocation21_spill] sm:$0xff] %v2838_v41  ;;  %3751 = vst [vmem:[#allocation24_spill] sm:$0xff] %v2851_v58 }
 0x196   :  { %v210_v34 = vpop.permute.xlu1 %209  ;;  %v206_v35 = vpop.permute.xlu0 %205 }
 0x197   :  { %v2846_v51 = vsub.f32 %v2706_v61, %v206_v35  ;;  %v2859_v8 = vsub.f32 %v2712_v1, %v210_v34 }
 0x198   :  { %833 = vperm.xlu1 %2586, %v2827_v28   ;;  %842 = vperm.xlu0 %2587, %v2830_v29  }
 0x199   :  { %3750 = vst [vmem:[#allocation23_spill] sm:$0xff] %v2846_v51  ;;  %3753 = vst [vmem:[#allocation26_spill] sm:$0xff] %v2859_v8 }
 0x19a   :  { %v217_v46 = vpop.permute.xlu1 %216  ;;  %v382_v47 = vpop.permute.xlu0 %381 }
 0x19b   :  { %v2867_v23 = vsub.f32 %v2706_v61, %v217_v46  ;;  %v2875_v34 = vsub.f32 %v2704_v60, %v382_v47 }
 0x19c   :  { %929 = vperm.xlu1 %2586, %v2835_v40   ;;  %938 = vperm.xlu0 %2587, %v2838_v41   ;;  %v2997_v40 = vsub.s32 %v2648_v15, %v2652_v16 }
 0x19d   :  { %3755 = vst [vmem:[#allocation28_spill] sm:$0xff] %v2867_v23  ;;  %3757 = vst [vmem:[#allocation30_spill] sm:$0xff] %v2875_v34 }
 0x19e   :  { %v221_v54 = vpop.permute.xlu1 %220  ;;  %v393_v55 = vpop.permute.xlu0 %392 }
 0x19f   :  { %v2854_v59 = vsub.f32 %v2712_v1, %v221_v54  ;;  %v2883_v46 = vsub.f32 %v2704_v60, %v393_v55 }
 0x1a0   :  { %839 = vperm.xlu1 %2586, %v2843_v50   ;;  %749 = vperm.xlu0 %2587, %v2846_v51   ;;  %v944_v50 = vadd.s32 4294967288, %v2648_v15 }
 0x1a1   :  { %3752 = vst [vmem:[#allocation25_spill] sm:$0xff] %v2854_v59  ;;  %3759 = vst [vmem:[#allocation32_spill] sm:$0xff] %v2883_v46 }
 0x1a2   :  { %v386_v2 = vpop.permute.xlu1 %385  ;;  %v228_v5 = vpop.permute.xlu0 %227  ;;  %v3000_v20 = vsub.s32 %v944_v50, %v2652_v16 }
 0x1a3   :  { %v2862_v9 = vsub.f32 %v2710_v0, %v386_v2  ;;  %v2891_v47 = vsub.f32 %v2706_v61, %v228_v5 }
 0x1a4   :  { %935 = vperm.xlu1 %2586, %v2851_v58   ;;  %758 = vperm.xlu0 %2587, %v2854_v59  }
 0x1a5   :  { %3754 = vst [vmem:[#allocation27_spill] sm:$0xff] %v2862_v9  ;;  %3761 = vst [vmem:[#allocation34_spill] sm:$0xff] %v2891_v47 }
 0x1a6   :  { %v397_v13 = vpop.permute.xlu1 %396  ;;  %v404_v14 = vpop.permute.xlu0 %403 }
 0x1a7   :  { %v2870_v24 = vsub.f32 %v2710_v0, %v397_v13  ;;  %v2899_v55 = vsub.f32 %v2704_v60, %v404_v14 }
 0x1a8   :  { %752 = vperm.xlu1 %2586, %v2859_v8   ;;  %848 = vperm.xlu0 %2587, %v2862_v9  }
 0x1a9   :  { %3756 = vst [vmem:[#allocation29_spill] sm:$0xff] %v2870_v24  ;;  %3763 = vst [vmem:[#allocation36_spill] sm:$0xff] %v2899_v55 }
 0x1aa   :  { %v232_v35 = vpop.permute.xlu1 %231  ;;  %v239_v54 = vpop.permute.xlu0 %238 }
 0x1ab   :  { %v2878_v2 = vsub.f32 %v2712_v1, %v232_v35 }
 0x1ac   :  { %755 = vperm.xlu1 %2586, %v2867_v23   ;;  %854 = vperm.xlu0 %2587, %v2870_v24  }
 0x1ad   :  { %3758 = vst [vmem:[#allocation31_spill] sm:$0xff] %v2878_v2 }
 0x1ae   :  { %v408_v58 = vpop.permute.xlu1 %407  ;;  %v415_v41 = vpop.permute.xlu0 %414 }
 0x1af   :  { %v2886_v13 = vsub.f32 %v2710_v0, %v408_v58  ;;  %v2915_v14 = vsub.f32 %v2704_v60, %v415_v41 }
 0x1b0   :  { %764 = vperm.xlu0 %2587, %v2878_v2   ;;  %845 = vperm.xlu1 %2586, %v2875_v34  }
 0x1b1   :  { %3760 = vst [vmem:[#allocation33_spill] sm:$0xff] %v2886_v13  ;;  %3767 = vst [vmem:[#allocation40_spill] sm:$0xff] %v2915_v14 }
 0x1b2   :  { %v243_v23 = vpop.permute.xlu1 %242  ;;  %v250_v24 = vpop.permute.xlu0 %249 }
 0x1b3   :  { %v2894_v35 = vsub.f32 %v2712_v1, %v243_v23  ;;  %v2907_v23 = vsub.f32 %v2706_v61, %v239_v54  ;;  %v2923_v54 = vsub.f32 %v2706_v61, %v250_v24 }
 0x1b4   :  { %860 = vperm.xlu0 %2587, %v2886_v13   ;;  %851 = vperm.xlu1 %2586, %v2883_v46  }
 0x1b5   :  { %3762 = vst [vmem:[#allocation35_spill] sm:$0xff] %v2894_v35  ;;  %3765 = vst [vmem:[#allocation38_spill] sm:$0xff] %v2907_v23 }
 0x1b6   :  { %v419_v2 = vpop.permute.xlu1 %418  ;;  %v426_v34 = vpop.permute.xlu0 %425  ;;  %3769 = vst [vmem:[#allocation42_spill] sm:$0xff] %v2923_v54 }
 0x1b7   :  { %v2902_v58 = vsub.f32 %v2710_v0, %v419_v2 }
 0x1b8   :  { %770 = vperm.xlu0 %2587, %v2894_v35   ;;  %761 = vperm.xlu1 %2586, %v2891_v47  }
 0x1b9   :  { %3764 = vst [vmem:[#allocation37_spill] sm:$0xff] %v2902_v58 }
 0x1ba   :  { %v254_v13 = vpop.permute.xlu1 %253  ;;  %v261_v5 = vpop.permute.xlu0 %260 }
 0x1bb   :  { %v2910_v46 = vsub.f32 %v2712_v1, %v254_v13  ;;  %v2939_v24 = vsub.f32 %v2706_v61, %v261_v5 }
 0x1bc   :  { %866 = vperm.xlu0 %2587, %v2902_v58   ;;  %857 = vperm.xlu1 %2586, %v2899_v55  }
 0x1bd   :  { %3766 = vst [vmem:[#allocation39_spill] sm:$0xff] %v2910_v46  ;;  %3773 = vst [vmem:[#allocation46_spill] sm:$0xff] %v2939_v24 }
 0x1be   :  { %v430_v35 = vpop.permute.xlu1 %429  ;;  %v437_v55 = vpop.permute.xlu0 %436 }
 0x1bf   :  { %v2918_v2 = vsub.f32 %v2710_v0, %v430_v35  ;;  %v2931_v35 = vsub.f32 %v2704_v60, %v426_v34  ;;  %v2947_v34 = vsub.f32 %v2704_v60, %v437_v55 }
 0x1c0   :  { %776 = vperm.xlu0 %2587, %v2910_v46   ;;  %767 = vperm.xlu1 %2586, %v2907_v23  }
 0x1c1   :  { %3768 = vst [vmem:[#allocation41_spill] sm:$0xff] %v2918_v2  ;;  %3771 = vst [vmem:[#allocation44_spill] sm:$0xff] %v2931_v35 }
 0x1c2   :  { %v265_v58 = vpop.permute.xlu1 %264  ;;  %v272_v41 = vpop.permute.xlu0 %271  ;;  %3775 = vst [vmem:[#allocation48_spill] sm:$0xff] %v2947_v34 }
 0x1c3   :  { %v2926_v13 = vsub.f32 %v2712_v1, %v265_v58 }
 0x1c4   :  { %872 = vperm.xlu0 %2587, %v2918_v2   ;;  %863 = vperm.xlu1 %2586, %v2915_v14  }
 0x1c5   :  { %3770 = vst [vmem:[#allocation43_spill] sm:$0xff] %v2926_v13 }
 0x1c6   :  { %v441_v46 = vpop.permute.xlu1 %440 }
 0x1c7   :  { %v2934_v23 = vsub.f32 %v2710_v0, %v441_v46 }
 0x1c8   :  { %782 = vperm.xlu0 %2587, %v2926_v13   ;;  %773 = vperm.xlu1 %2586, %v2923_v54   ;;  %v448_v54 = vpop.permute.xlu0 %447 }
 0x1c9   :  { %3772 = vst [vmem:[#allocation45_spill] sm:$0xff] %v2934_v23  ;;  %v2963_v55 = vsub.f32 %v2704_v60, %v448_v54 }
 0x1ca   :  { %v276_v2 = vpop.permute.xlu1 %275 }
 0x1cb   :  { %v2942_v58 = vsub.f32 %v2712_v1, %v276_v2  ;;  %v2955_v2 = vsub.f32 %v2706_v61, %v272_v41  ;;  %3779 = vst [vmem:[#allocation52_spill] sm:$0xff] %v2963_v55 }
 0x1cc   :  { %878 = vperm.xlu0 %2587, %v2934_v23   ;;  %869 = vperm.xlu1 %2586, %v2931_v35   ;;  %v283_v5 = vpop.permute.xlu0 %282 }
 0x1cd   :  { %3774 = vst [vmem:[#allocation47_spill] sm:$0xff] %v2942_v58  ;;  %3777 = vst [vmem:[#allocation50_spill] sm:$0xff] %v2955_v2  ;;  %v2971_v41 = vsub.f32 %v2706_v61, %v283_v5 }
 0x1ce   :  { %v452_v13 = vpop.permute.xlu1 %451 }
 0x1cf   :  { %v2950_v46 = vsub.f32 %v2710_v0, %v452_v13  ;;  %3781 = vst [vmem:[#allocation54_spill] sm:$0xff] %v2971_v41 }
 0x1d0   :  { %788 = vperm.xlu0 %2587, %v2942_v58   ;;  %779 = vperm.xlu1 %2586, %v2939_v24  }
 0x1d1   :  { %3776 = vst [vmem:[#allocation49_spill] sm:$0xff] %v2950_v46 }
 0x1d2   :  { %v287_v23 = vpop.permute.xlu1 %286 }
 0x1d3   :  { %v2958_v35 = vsub.f32 %v2712_v1, %v287_v23 }
 0x1d4   :  { %884 = vperm.xlu0 %2587, %v2950_v46   ;;  %875 = vperm.xlu1 %2586, %v2947_v34   ;;  %v459_v46 = vpop.permute.xlu0 %458 }
 0x1d5   :  { %3778 = vst [vmem:[#allocation51_spill] sm:$0xff] %v2958_v35  ;;  %v2975_v23 = vsub.f32 %v2704_v60, %v459_v46 }
 0x1d6   :  { %v463_v58 = vpop.permute.xlu1 %462 }
 0x1d7   :  { %v2966_v13 = vsub.f32 %v2710_v0, %v463_v58  ;;  %3782 = vst [vmem:[#allocation55_spill] sm:$0xff] %v2975_v23 }
 0x1d8   :  { %794 = vperm.xlu0 %2587, %v2958_v35   ;;  %785 = vperm.xlu1 %2586, %v2955_v2  }
 0x1d9   :  { %3780 = vst [vmem:[#allocation53_spill] sm:$0xff] %v2966_v13 }
 0x1dc   :  { %890 = vperm.xlu0 %2587, %v2966_v13   ;;  %881 = vperm.xlu1 %2586, %v2963_v55  }
 0x1df   :  { %v801_v1 = vpop.permute.xlu0 %800 }
 0x1e0   :  { %791 = vperm.xlu1 %2586, %v2971_v41   ;;  %v1021_v15 = vrot.slane %v801_v1, %v3000_v20 }
 0x1e3   :  { %v807_v2 = vpop.permute.xlu0 %806 }
 0x1e4   :  { %887 = vperm.xlu1 %2586, %v2975_v23   ;;  %v1030_v7 = vrot.slane %v807_v2, %v3000_v20 }
 0x1e7   :  { %v798_v54 = vpop.permute.xlu1 %797  ;;  %v897_v0 = vpop.permute.xlu0 %896 }
 0x1e8   :  { %v1017_v19 = vrot.slane %v798_v54, %v2997_v40 }
 0x1ea   :  { %v1022_v2 = vsel %vm949_vm2, %v1021_v15, %v1017_v19 }
 0x1eb   :  { %v804_v58 = vpop.permute.xlu1 %803  ;;  %v2978_v35 = vpop.permute.xlu0 %902 }
 0x1ec   :  { %v1026_v28 = vrot.slane %v804_v58, %v2997_v40 }
 0x1ee   :  { %v1031_v58 = vsel %vm949_vm2, %v1030_v7, %v1026_v28 }
 0x1ef   :  { %v894_v13 = vpop.permute.xlu1 %893  ;;  %v813_v34 = vpop.permute.xlu0 %812 }
 0x1f0   :  { %v1161_v50 = vrot.slane %v894_v13, %v2997_v40  ;;  %v1039_v16 = vrot.slane %v813_v34, %v3000_v20  ;;  %v1174_v13 = vrot.slane %v2978_v35, %v3000_v20  ;;  %v1244_v34 = vsel %vm1230_vm3, %v1031_v58, %v1022_v2 }
 0x1f3   :  { %v900_v55 = vpop.permute.xlu1 %899  ;;  %v2980_v24 = vpop.permute.xlu0 %908 }
 0x1f4   :  { %v1170_v6 = vrot.slane %v900_v55, %v2997_v40 }
 0x1f7   :  { %v810_v61 = vpop.permute.xlu1 %809  ;;  %v819_v5 = vpop.permute.xlu0 %818 }
 0x1f8   :  { %v1035_v10 = vrot.slane %v810_v61, %v2997_v40  ;;  %v1165_v61 = vrot.slane %v897_v0, %v3000_v20  ;;  %v1048_v7 = vrot.slane %v819_v5, %v3000_v20  ;;  %v1175_v5 = vsel %vm949_vm2, %v1174_v13, %v1170_v6 }
 0x1fa   :  { %v1040_v1 = vsel %vm949_vm2, %v1039_v16, %v1035_v10 }
 0x1fb   :  { %v2982_v14 = vpop.permute.xlu1 %905  ;;  %v2984_v41 = vpop.permute.xlu0 %914 }
 0x1fc   :  { %v1179_v15 = vrot.slane %v2982_v14, %v2997_v40  ;;  %v1245_v14 = vsel %vm1232_vm4, %v1040_v1, %v1244_v34 }
 0x1ff   :  { %v816_v60 = vpop.permute.xlu1 %815  ;;  %v825_v46 = vpop.permute.xlu0 %824 }
 0x200   :  { %v1044_v63 = vrot.slane %v816_v60, %v2997_v40  ;;  %v1166_v60 = vsel %vm949_vm2, %v1165_v61, %v1161_v50  ;;  %v1057_v35 = vrot.slane %v825_v46, %v3000_v20  ;;  %v1183_v50 = vrot.slane %v2980_v24, %v3000_v20 }
 0x201   :  { %v1258_v34 = vsel %vm1230_vm3, %v1175_v5, %v1166_v60 }
 0x202   :  { %v1049_v55 = vsel %vm949_vm2, %v1048_v7, %v1044_v63  ;;  %v1192_v63 = vrot.slane %v2984_v41, %v3000_v20 }
 0x203   :  { %v2986_v47 = vpop.permute.xlu1 %911  ;;  %v2988_v23 = vpop.permute.xlu0 %920  ;;  %v1246_v6 = vsel %vm1234_vm5, %v1049_v55, %v1245_v14 }
 0x204   :  { %v1188_v16 = vrot.slane %v2986_v47, %v2997_v40  ;;  %v1201_v41 = vrot.slane %v2988_v23, %v3000_v20 }
 0x207   :  { %v822_v9 = vpop.permute.xlu1 %821  ;;  %v831_v8 = vpop.permute.xlu0 %830 }
 0x208   :  { %v1053_v28 = vrot.slane %v822_v9, %v2997_v40 }
 0x20a   :  { %v1058_v46 = vsel %vm949_vm2, %v1057_v35, %v1053_v28 }
 0x20b   :  { %v2990_v51 = vpop.permute.xlu1 %917  ;;  %v2992_v59 = vpop.permute.xlu0 %926  ;;  %v1247_v1 = vsel %vm1236_vm6, %v1058_v46, %v1246_v6 }
 0x20c   :  { %v1197_v47 = vrot.slane %v2990_v51, %v2997_v40  ;;  %v1210_v7 = vrot.slane %v2992_v59, %v3000_v20 }
 0x20e   :  { %v1202_v23 = vsel %vm949_vm2, %v1201_v41, %v1197_v47 }
 0x20f   :  { %v828_v29 = vpop.permute.xlu1 %827  ;;  %v837_v45 = vpop.permute.xlu0 %836 }
 0x210   :  { %v1062_v19 = vrot.slane %v828_v29, %v2997_v40  ;;  %v1066_v29 = vrot.slane %v831_v8, %v3000_v20  ;;  %v1075_v58 = vrot.slane %v837_v45, %v3000_v20  ;;  %v1193_v8 = vsel %vm949_vm2, %v1192_v63, %v1188_v16 }
 0x212   :  { %v1067_v24 = vsel %vm949_vm2, %v1066_v29, %v1062_v19 }
 0x213   :  { %v3003_v11 = vpop.permute.xlu1 %923  ;;  %v3005_v42 = vpop.permute.xlu0 %932  ;;  %v1248_v19 = vsel %vm1238_vm7, %v1067_v24, %v1247_v1 }
 0x214   :  { %v1206_v2 = vrot.slane %v3003_v11, %v2997_v40 }
 0x216   :  { %v1211_v35 = vsel %vm949_vm2, %v1210_v7, %v1206_v2 }
 0x217   :  { %v834_v54 = vpop.permute.xlu1 %833  ;;  %v843_v39 = vpop.permute.xlu0 %842 }
 0x218   :  { %v1071_v10 = vrot.slane %v834_v54, %v2997_v40  ;;  %v1184_v54 = vsel %vm949_vm2, %v1183_v50, %v1179_v15  ;;  %v1084_v28 = vrot.slane %v843_v39, %v3000_v20  ;;  %v1219_v15 = vrot.slane %v3005_v42, %v3000_v20 }
 0x219   :  { %v1259_v55 = vsel %vm1232_vm4, %v1184_v54, %v1258_v34 }
 0x21a   :  { %v1076_v61 = vsel %vm949_vm2, %v1075_v58, %v1071_v10  ;;  %v1260_v39 = vsel %vm1234_vm5, %v1193_v8, %v1259_v55 }
 0x21b   :  { %v930_v9 = vpop.permute.xlu1 %929  ;;  %v939_v0 = vpop.permute.xlu0 %938  ;;  %v1249_v59 = vsel %vm1240_vm8, %v1076_v61, %v1248_v19  ;;  %v1261_v42 = vsel %vm1236_vm6, %v1202_v23, %v1260_v39 }
 0x21c   :  { %v1215_v51 = vrot.slane %v930_v9, %v2997_v40  ;;  %v1228_v50 = vrot.slane %v939_v0, %v3000_v20  ;;  %v1262_v63 = vsel %vm1238_vm7, %v1211_v35, %v1261_v42 }
 0x21e   :  { %v1220_v10 = vsel %vm949_vm2, %v1219_v15, %v1215_v51 }
 0x21f   :  { %v840_v13 = vpop.permute.xlu1 %839  ;;  %v3054_v45 = vpop.permute.xlu0 %749  ;;  %v1263_v47 = vsel %vm1240_vm8, %v1220_v10, %v1262_v63 }
 0x220   :  { %v1080_v11 = vrot.slane %v840_v13, %v2997_v40  ;;  %v943_v63 = vrot.slane %v3054_v45, %v2997_v40 }
 0x222   :  { %v1085_v16 = vsel %vm949_vm2, %v1084_v28, %v1080_v11 }
 0x223   :  { %v936_v60 = vpop.permute.xlu1 %935  ;;  %v759_v9 = vpop.permute.xlu0 %758  ;;  %v3073_v5 = vsel %vm1242_vm9, %v1085_v16, %v1249_v59 }
 0x224   :  { %3783 = vst [vmem:[#allocation56_spill] sm:$0xff] %v3073_v5  ;;  %v1224_v14 = vrot.slane %v936_v60, %v2997_v40  ;;  %v1273_v29 = vsel %vm1269_vm10, %v3073_v5, inf }
 0x225   :  { %1274 = vmin.xlane.f32.xlu0 %v1273_v29 }
 0x226   :  { %v1229_v46 = vsel %vm949_vm2, %v1228_v50, %v1224_v14  ;;  %v958_v50 = vrot.slane %v759_v9, %v3000_v20 }
 0x227   :  { %v753_v58 = vpop.permute.xlu1 %752  ;;  %v849_v54 = vpop.permute.xlu0 %848  ;;  %v3084_v6 = vsel %vm1242_vm9, %v1229_v46, %v1263_v47 }
 0x228   :  { %3784 = vst [vmem:[#allocation57_spill] sm:$0xff] %v3084_v6  ;;  %v1279_v0 = vsel %vm1269_vm10, %v3084_v6, inf  ;;  %v948_v42 = vrot.slane %v753_v58, %v3000_v20  ;;  %v1093_v58 = vrot.slane %v849_v54, %v3000_v20 }
 0x229   :  { %1280 = vmin.xlane.f32.xlu0 %v1279_v0 }
 0x22a   :  { %v950_v5 = vsel %vm949_vm2, %v948_v42, %v943_v63 }
 0x22b   :  { %v756_v24 = vpop.permute.xlu1 %755  ;;  %v855_v2 = vpop.permute.xlu0 %854 }
 0x22c   :  { %v954_v10 = vrot.slane %v756_v24, %v2997_v40 }
 0x22e   :  { %v959_v47 = vsel %vm949_vm2, %v958_v50, %v954_v10 }
 0x22f   :  { %v846_v8 = vpop.permute.xlu1 %845  ;;  %v765_v41 = vpop.permute.xlu0 %764  ;;  %v1231_v10 = vsel %vm1230_vm3, %v959_v47, %v950_v5 }
 0x230   :  { %v1089_v46 = vrot.slane %v846_v8, %v2997_v40  ;;  %v967_v0 = vrot.slane %v765_v41, %v3000_v20 }
 0x232   :  { %v1094_v41 = vsel %vm949_vm2, %v1093_v58, %v1089_v46 }
 0x233   :  { %v852_v61 = vpop.permute.xlu1 %851  ;;  %v861_v51 = vpop.permute.xlu0 %860 }
 0x234   :  { %v1098_v9 = vrot.slane %v852_v61, %v2997_v40  ;;  %v1111_v5 = vrot.slane %v861_v51, %v3000_v20 }
 0x237   :  { %v762_v13 = vpop.permute.xlu1 %761  ;;  %v771_v1 = vpop.permute.xlu0 %770 }
 0x238   :  { %v963_v14 = vrot.slane %v762_v13, %v2997_v40  ;;  %v1102_v13 = vrot.slane %v855_v2, %v3000_v20  ;;  %v976_v45 = vrot.slane %v771_v1, %v3000_v20 }
 0x23a   :  { %v968_v57 = vsel %vm949_vm2, %v967_v0, %v963_v14 }
 0x23b   :  { %v858_v7 = vpop.permute.xlu1 %857  ;;  %v867_v28 = vpop.permute.xlu0 %866  ;;  %v1233_v63 = vsel %vm1232_vm4, %v968_v57, %v1231_v10 }
 0x23f   :  { %v768_v11 = vpop.permute.xlu1 %767  ;;  %v777_v34 = vpop.permute.xlu0 %776 }
 0x240   :  { %v972_v6 = vrot.slane %v768_v11, %v2997_v40  ;;  %v1107_v11 = vrot.slane %v858_v7, %v2997_v40  ;;  %v985_v61 = vrot.slane %v777_v34, %v3000_v20 }
 0x242   :  { %v977_v54 = vsel %vm949_vm2, %v976_v45, %v972_v6  ;;  %v1112_v46 = vsel %vm949_vm2, %v1111_v5, %v1107_v11 }
 0x243   :  { %v864_v23 = vpop.permute.xlu1 %863  ;;  %v873_v15 = vpop.permute.xlu0 %872  ;;  %v1235_v47 = vsel %vm1234_vm5, %v977_v54, %v1233_v63 }
 0x244   :  { %v1116_v2 = vrot.slane %v864_v23, %v2997_v40 }
 0x247   :  { %v774_v19 = vpop.permute.xlu1 %773  ;;  %v783_v55 = vpop.permute.xlu0 %782 }
 0x248   :  { %v981_v8 = vrot.slane %v774_v19, %v2997_v40  ;;  %v1103_v19 = vsel %vm949_vm2, %v1102_v13, %v1098_v9  ;;  %v994_v7 = vrot.slane %v783_v55, %v3000_v20  ;;  %v1129_v55 = vrot.slane %v873_v15, %v3000_v20 }
 0x249   :  { %v1251_v45 = vsel %vm1230_vm3, %v1103_v19, %v1094_v41 }
 0x24a   :  { %v986_v6 = vsel %vm949_vm2, %v985_v61, %v981_v8  ;;  %v1252_v11 = vsel %vm1232_vm4, %v1112_v46, %v1251_v45  ;;  %v3786_v45 = vld [vmem:[#allocation12_spill] sm:$0xff] }
 0x24b   :  { %v870_v35 = vpop.permute.xlu1 %869  ;;  %v879_v16 = vpop.permute.xlu0 %878 }
 0x24c   :  { %v1125_v34 = vrot.slane %v870_v35, %v2997_v40  ;;  %v1237_v35 = vsel %vm1236_vm6, %v986_v6, %v1235_v47 }
 0x24f   :  { %v780_v59 = vpop.permute.xlu1 %779  ;;  %v789_v39 = vpop.permute.xlu0 %788 }
 0x250   :  { %v990_v42 = vrot.slane %v780_v59, %v2997_v40  ;;  %v1120_v59 = vrot.slane %v867_v28, %v3000_v20  ;;  %v1003_v23 = vrot.slane %v789_v39, %v3000_v20  ;;  %v1138_v39 = vrot.slane %v879_v16, %v3000_v20 }
 0x252   :  { %v995_v0 = vsel %vm949_vm2, %v994_v7, %v990_v42  ;;  %v1121_v57 = vsel %vm949_vm2, %v1120_v59, %v1116_v2 }
 0x253   :  { %v876_v60 = vpop.permute.xlu1 %875  ;;  %v885_v29 = vpop.permute.xlu0 %884  ;;  %v1239_v10 = vsel %vm1238_vm7, %v995_v0, %v1237_v35  ;;  %v1253_v61 = vsel %vm1234_vm5, %v1121_v57, %v1252_v11 }
 0x254   :  { %v1134_v51 = vrot.slane %v876_v60, %v2997_v40  ;;  %v1130_v60 = vsel %vm949_vm2, %v1129_v55, %v1125_v34  ;;  %v1147_v8 = vrot.slane %v885_v29, %v3000_v20 }
 0x255   :  { %v1254_v29 = vsel %vm1236_vm6, %v1130_v60, %v1253_v61  ;;  %v3787_v60 = vld [vmem:[#allocation7_spill] sm:$0xff]  ;;  %v3791_v61 = vld [vmem:[#allocation16_spill] sm:$0xff] }
 0x256   :  { %v1139_v42 = vsel %vm949_vm2, %v1138_v39, %v1134_v51 }
 0x257   :  { %v786_v24 = vpop.permute.xlu1 %785  ;;  %v795_v14 = vpop.permute.xlu0 %794  ;;  %v1255_v5 = vsel %vm1238_vm7, %v1139_v42, %v1254_v29 }
 0x258   :  { %v999_v50 = vrot.slane %v786_v24, %v2997_v40  ;;  %v1012_v9 = vrot.slane %v795_v14, %v3000_v20 }
 0x25a   :  { %v1004_v28 = vsel %vm949_vm2, %v1003_v23, %v999_v50 }
 0x25b   :  { %v882_v1 = vpop.permute.xlu1 %881  ;;  %v891_v15 = vpop.permute.xlu0 %890  ;;  %v1241_v16 = vsel %vm1240_vm8, %v1004_v28, %v1239_v10  ;;  %v3789_v10 = vld [vmem:[#allocation14_spill] sm:$0xff] }
 0x25c   :  { %v1143_v24 = vrot.slane %v882_v1, %v2997_v40  ;;  %v1156_v14 = vrot.slane %v891_v15, %v3000_v20  ;;  %v3788_v15 = vld [vmem:[#allocation11_spill] sm:$0xff] }
 0x25e   :  { %v1148_v2 = vsel %vm949_vm2, %v1147_v8, %v1143_v24 }
 0x25f   :  { %v792_v58 = vpop.permute.xlu1 %791  ;;  %v1256_v7 = vsel %vm1240_vm8, %v1148_v2, %v1255_v5  ;;  %v3792_v2 = vld [vmem:[#allocation8_spill] sm:$0xff] }
 0x260   :  { %v1008_v13 = vrot.slane %v792_v58, %v2997_v40 }
 0x262   :  { %v1013_v54 = vsel %vm949_vm2, %v1012_v9, %v1008_v13  ;;  %v3785_v13 = vld [vmem:[#allocation10_spill] sm:$0xff] }
 0x263   :  { %v888_v41 = vpop.permute.xlu1 %887  ;;  %v3144_v50 = vsel %vm1242_vm9, %v1013_v54, %v1241_v16  ;;  %v3790_v16 = vld [vmem:[#allocation13_spill] sm:$0xff] }
 0x264   :  { %v1152_v1 = vrot.slane %v888_v41, %v2997_v40  ;;  %v1270_v19 = vsel %vm1269_vm10, %v3144_v50, inf }
 0x265   :  { %1271 = vmin.xlane.f32.xlu1 %v1270_v19  ;;  %v3794_v19 = vld [vmem:[#allocation18_spill] sm:$0xff] }
 0x266   :  { %v1157_v63 = vsel %vm949_vm2, %v1156_v14, %v1152_v1  ;;  %v3793_v1 = vld [vmem:[#allocation15_spill] sm:$0xff] }
 0x267   :  { %v3155_v59 = vsel %vm1242_vm9, %v1157_v63, %v1256_v7 }
 0x268   :  { %v1276_v6 = vsel %vm1269_vm10, %v3155_v59, inf }
 0x269   :  { %1277 = vmin.xlane.f32.xlu0 %v1276_v6  ;;  %v3795_v6 = vld [vmem:[#allocation17_spill] sm:$0xff] }
 0x2b2   :  { %v3159_v34 = vpop.xlane.xlu0 %1274 }
 0x2b3   :  { %v1321_v23 = vrot.slane %v3159_v34, %v2655_v17  ;;  %v1325_v46 = vrot.slane %v3159_v34, %v2659_v25  ;;  %v1329_v28 = vrot.slane %v3159_v34, %v2665_v30  ;;  %v1333_v58 = vrot.slane %v3159_v34, %v2670_v33 }
 0x2b4   :  { %v1337_v39 = vrot.slane %v3159_v34, %v2675_v36  ;;  %v1341_v8 = vrot.slane %v3159_v34, %v3787_v60  ;;  %v1345_v41 = vrot.slane %v3159_v34, %v3792_v2 }
 0x2b5   :  { %vm1463_vm11 = vcmp.eq.f32.partialorder %v2723_v12, %v1321_v23  ;;  %vm1462_vm12 = vcmp.eq.f32.partialorder %v2731_v21, %v1321_v23  ;;  %vm1465_vm13 = vcmp.eq.f32.partialorder %v2727_v18, %v1325_v46  ;;  %vm1464_vm14 = vcmp.eq.f32.partialorder %v2739_v26, %v1325_v46  ;;  %v3796_v23 = vld [vmem:[#allocation20_spill] sm:$0xff]  ;;  %v3797_v46 = vld [vmem:[#allocation9_spill] sm:$0xff] }
 0x2b6   :  { %v3167_v47 = vpop.xlane.xlu0 %1280  ;;  %v1534_v0 = vsel %vm1463_vm11, %v2717_v4, 16  ;;  %v1533_v51 = vsel %vm1462_vm12, %v2715_v3, 16  ;;  %v1536_v55 = vsel %vm1465_vm13, %v2717_v4, 16  ;;  %v1535_v12 = vsel %vm1464_vm14, %v2715_v3, 16 }
 0x2b7   :  { %1633 = vperm.xlu0 %2587, %v1534_v0   ;;  %1630 = vperm.xlu1 %2586, %v1533_v51   ;;  %v1385_v57 = vrot.slane %v3167_v47, %v2655_v17  ;;  %v1389_v21 = vrot.slane %v3167_v47, %v2659_v25  ;;  %vm1467_vm12 = vcmp.eq.f32.partialorder %v2750_v32, %v1329_v28 }
 0x2b8   :  { %vm1466_vm13 = vcmp.eq.f32.partialorder %v2763_v43, %v1329_v28  ;;  %v1393_v24 = vrot.slane %v3167_v47, %v2665_v30  ;;  %v1397_v35 = vrot.slane %v3167_v47, %v2670_v33  ;;  %v1401_v9 = vrot.slane %v3167_v47, %v2675_v36 }
 0x2b9   :  { %vm1495_vm15 = vcmp.eq.f32.partialorder %v2734_v22, %v1385_v57  ;;  %vm1494_vm0 = vcmp.eq.f32.partialorder %v2747_v31, %v1385_v57  ;;  %vm1497_vm1 = vcmp.eq.f32.partialorder %v2742_v27, %v1389_v21  ;;  %vm1496_vm11 = vcmp.eq.f32.partialorder %v2755_v37, %v1389_v21 }
 0x2ba   :  { %v1566_v18 = vsel %vm1495_vm15, %v2717_v4, 16  ;;  %v1565_v26 = vsel %vm1494_vm0, %v2715_v3, 16  ;;  %v1568_v22 = vsel %vm1497_vm1, %v2717_v4, 16  ;;  %v1567_v31 = vsel %vm1496_vm11, %v2715_v3, 16 }
 0x2bb   :  { %1639 = vperm.xlu0 %2587, %v1536_v55   ;;  %1636 = vperm.xlu1 %2586, %v1535_v12   ;;  %v1538_v27 = vsel %vm1467_vm12, %v2717_v4, 16  ;;  %v1537_v37 = vsel %vm1466_vm13, %v2715_v3, 16  ;;  %vm1499_vm14 = vcmp.eq.f32.partialorder %v2758_v38, %v1393_v24  ;;  %vm1498_vm15 = vcmp.eq.f32.partialorder %v2771_v48, %v1393_v24  ;;  %v3798_v55 = vld [vmem:[#allocation19_spill] sm:$0xff]  ;;  %v3799_v12 = vld [vmem:[#allocation22_spill] sm:$0xff] }
 0x2bc   :  { %v1570_v32 = vsel %vm1499_vm14, %v2717_v4, 16  ;;  %v1569_v43 = vsel %vm1498_vm15, %v2715_v3, 16  ;;  %vm1469_vm0 = vcmp.eq.f32.partialorder %v2766_v44, %v1333_v58  ;;  %vm1468_vm1 = vcmp.eq.f32.partialorder %v2779_v52, %v1333_v58  ;;  %v3802_v58 = vld [vmem:[#allocation26_spill] sm:$0xff] }
 0x2bd   :  { %v1540_v38 = vsel %vm1469_vm0, %v2717_v4, 16  ;;  %v1539_v48 = vsel %vm1468_vm1, %v2715_v3, 16  ;;  %vm1501_vm11 = vcmp.eq.f32.partialorder %v2774_v49, %v1397_v35  ;;  %vm1500_vm12 = vcmp.eq.f32.partialorder %v2787_v56, %v1397_v35  ;;  %v3803_v35 = vld [vmem:[#allocation27_spill] sm:$0xff] }
 0x2be   :  { %v1572_v44 = vsel %vm1501_vm11, %v2717_v4, 16  ;;  %v1571_v52 = vsel %vm1500_vm12, %v2715_v3, 16  ;;  %vm1471_vm13 = vcmp.eq.f32.partialorder %v2782_v53, %v1337_v39  ;;  %vm1470_vm14 = vcmp.eq.f32.partialorder %v2795_v62, %v1337_v39  ;;  %v3804_v39 = vld [vmem:[#allocation28_spill] sm:$0xff] }
 0x2bf   :  { %1729 = vperm.xlu0 %2587, %v1566_v18   ;;  %1726 = vperm.xlu1 %2586, %v1565_v26   ;;  %v1542_v49 = vsel %vm1471_vm13, %v2717_v4, 16  ;;  %v1541_v56 = vsel %vm1470_vm14, %v2715_v3, 16  ;;  %vm1503_vm15 = vcmp.eq.f32.partialorder %v3785_v13, %v1401_v9  ;;  %vm1502_vm0 = vcmp.eq.f32.partialorder %v3786_v45, %v1401_v9 }
 0x2c0   :  { %v1574_v53 = vsel %vm1503_vm15, %v2717_v4, 16  ;;  %v1573_v62 = vsel %vm1502_vm0, %v2715_v3, 16  ;;  %vm1473_vm1 = vcmp.eq.f32.partialorder %v3788_v15, %v1341_v8  ;;  %vm1472_vm11 = vcmp.eq.f32.partialorder %v3789_v10, %v1341_v8  ;;  %v3808_v8 = vld [vmem:[#allocation33_spill] sm:$0xff] }
 0x2c1   :  { %v1405_v11 = vrot.slane %v3167_v47, %v3787_v60  ;;  %v1544_v42 = vsel %vm1473_vm1, %v2717_v4, 16  ;;  %v1543_v54 = vsel %vm1472_vm11, %v2715_v3, 16  ;;  %vm1475_vm14 = vcmp.eq.f32.partialorder %v3793_v1, %v1345_v41 }
 0x2c2   :  { %vm1474_vm15 = vcmp.eq.f32.partialorder %v3794_v19, %v1345_v41  ;;  %v1409_v5 = vrot.slane %v3167_v47, %v3792_v2  ;;  %v1546_v63 = vsel %vm1475_vm14, %v2717_v4, 16  ;;  %v1349_v0 = vrot.slane %v3159_v34, %v3797_v46  ;;  %v3813_v41 = vld [vmem:[#allocation36_spill] sm:$0xff]  ;;  %v3815_v19 = vld [vmem:[#allocation38_spill] sm:$0xff] }
 0x2c3   :  { %1735 = vperm.xlu0 %2587, %v1568_v22   ;;  %1732 = vperm.xlu1 %2586, %v1567_v31   ;;  %vm1505_vm12 = vcmp.eq.f32.partialorder %v3790_v16, %v1405_v11  ;;  %vm1504_vm13 = vcmp.eq.f32.partialorder %v3791_v61, %v1405_v11  ;;  %v1545_v7 = vsel %vm1474_vm15, %v2715_v3, 16  ;;  %v3800_v22 = vld [vmem:[#allocation25_spill] sm:$0xff]  ;;  %v3801_v31 = vld [vmem:[#allocation23_spill] sm:$0xff]  ;;  %v3811_v11 = vld [vmem:[#allocation34_spill] sm:$0xff] }
 0x2c4   :  { %v1576_v29 = vsel %vm1505_vm12, %v2717_v4, 16  ;;  %v1575_v14 = vsel %vm1504_vm13, %v2715_v3, 16  ;;  %vm1507_vm0 = vcmp.eq.f32.partialorder %v3795_v6, %v1409_v5  ;;  %vm1506_vm1 = vcmp.eq.f32.partialorder %v3796_v23, %v1409_v5  ;;  %v3812_v61 = vld [vmem:[#allocation37_spill] sm:$0xff]  ;;  %v3817_v23 = vld [vmem:[#allocation40_spill] sm:$0xff] }
 0x2c5   :  { %v1578_v51 = vsel %vm1507_vm0, %v2717_v4, 16  ;;  %v1577_v57 = vsel %vm1506_vm1, %v2715_v3, 16  ;;  %vm1477_vm11 = vcmp.eq.f32.partialorder %v3798_v55, %v1349_v0  ;;  %vm1476_vm12 = vcmp.eq.f32.partialorder %v3799_v12, %v1349_v0  ;;  %v3816_v6 = vld [vmem:[#allocation41_spill] sm:$0xff]  ;;  %v3819_v55 = vld [vmem:[#allocation42_spill] sm:$0xff] }
 0x2c6   :  { %v1548_v21 = vsel %vm1477_vm11, %v2717_v4, 16  ;;  %v1547_v18 = vsel %vm1476_vm12, %v2715_v3, 16 }
 0x2c7   :  { %1645 = vperm.xlu0 %2587, %v1538_v27   ;;  %1642 = vperm.xlu1 %2586, %v1537_v37  }
 0x2cb   :  { %1741 = vperm.xlu0 %2587, %v1570_v32   ;;  %1738 = vperm.xlu1 %2586, %v1569_v43  }
 0x2cf   :  { %1651 = vperm.xlu0 %2587, %v1540_v38   ;;  %1648 = vperm.xlu1 %2586, %v1539_v48  }
 0x2d3   :  { %1747 = vperm.xlu0 %2587, %v1572_v44   ;;  %1744 = vperm.xlu1 %2586, %v1571_v52   ;;  %v3805_v44 = vld [vmem:[#allocation29_spill] sm:$0xff] }
 0x2d7   :  { %1657 = vperm.xlu0 %2587, %v1542_v49   ;;  %1654 = vperm.xlu1 %2586, %v1541_v56   ;;  %v3807_v49 = vld [vmem:[#allocation30_spill] sm:$0xff] }
 0x2db   :  { %1753 = vperm.xlu0 %2587, %v1574_v53   ;;  %1750 = vperm.xlu1 %2586, %v1573_v62   ;;  %v3809_v53 = vld [vmem:[#allocation32_spill] sm:$0xff] }
 0x2df   :  { %1663 = vperm.xlu0 %2587, %v1544_v42   ;;  %1660 = vperm.xlu1 %2586, %v1543_v54  }
 0x2e3   :  { %1759 = vperm.xlu0 %2587, %v1576_v29   ;;  %1756 = vperm.xlu1 %2586, %v1575_v14  }
 0x2e7   :  { %1669 = vperm.xlu0 %2587, %v1546_v63   ;;  %1666 = vperm.xlu1 %2586, %v1545_v7  }
 0x2eb   :  { %1765 = vperm.xlu0 %2587, %v1578_v51   ;;  %1762 = vperm.xlu1 %2586, %v1577_v57  }
 0x2ef   :  { %1675 = vperm.xlu0 %2587, %v1548_v21   ;;  %1672 = vperm.xlu1 %2586, %v1547_v18  }
 0x2f2   :  { %v3253_v26 = vpop.xlane.xlu1 %1271 }
 0x2f3   :  { %v1293_v34 = vrot.slane %v3253_v26, %v2659_v25  ;;  %v1289_v28 = vrot.slane %v3253_v26, %v2655_v17  ;;  %v1297_v52 = vrot.slane %v3253_v26, %v2665_v30  ;;  %v1301_v62 = vrot.slane %v3253_v26, %v2670_v33 }
 0x2f4   :  { %v1305_v29 = vrot.slane %v3253_v26, %v2675_v36  ;;  %v1309_v0 = vrot.slane %v3253_v26, %v3787_v60 }
 0x2f5   :  { %vm1449_vm13 = vcmp.eq.f32.partialorder %v3800_v22, %v1293_v34  ;;  %vm1446_vm14 = vcmp.eq.f32.partialorder %v3801_v31, %v1289_v28  ;;  %vm1447_vm15 = vcmp.eq.f32.partialorder %v3802_v58, %v1289_v28  ;;  %vm1448_vm1 = vcmp.eq.f32.partialorder %v3804_v39, %v1293_v34  ;;  %v3820_v34 = vld [vmem:[#allocation45_spill] sm:$0xff]  ;;  %v3821_v28 = vld [vmem:[#allocation44_spill] sm:$0xff] }
 0x2f6   :  { %v3261_v24 = vpop.xlane.xlu0 %1277  ;;  %v1520_v27 = vsel %vm1449_vm13, %v2717_v4, 16  ;;  %v1517_v37 = vsel %vm1446_vm14, %v2715_v3, 16  ;;  %v1518_v38 = vsel %vm1447_vm15, %v2717_v4, 16  ;;  %v1313_v22 = vrot.slane %v3253_v26, %v3792_v2 }
 0x2f7   :  { %1591 = vperm.xlu0 %2587, %v1520_v27   ;;  %1582 = vperm.xlu1 %2586, %v1517_v37   ;;  %v1353_v32 = vrot.slane %v3261_v24, %v2655_v17  ;;  %v1357_v43 = vrot.slane %v3261_v24, %v2659_v25  ;;  %v1519_v17 = vsel %vm1448_vm1, %v2715_v3, 16  ;;  %v3806_v25 = vld [vmem:[#allocation31_spill] sm:$0xff]  ;;  %v1361_v56 = vrot.slane %v3261_v24, %v2665_v30  ;;  %v3823_v37 = vld [vmem:[#allocation46_spill] sm:$0xff] }
 0x2f8   :  { %vm1451_vm12 = vcmp.eq.f32.partialorder %v3806_v25, %v1297_v52  ;;  %v3810_v30 = vld [vmem:[#allocation35_spill] sm:$0xff]  ;;  %vm1450_vm1 = vcmp.eq.f32.partialorder %v3811_v11, %v1297_v52  ;;  %v1365_v42 = vrot.slane %v3261_v24, %v2670_v33  ;;  %v1369_v5 = vrot.slane %v3261_v24, %v2675_v36  ;;  %v3827_v52 = vld [vmem:[#allocation50_spill] sm:$0xff] }
 0x2f9   :  { %vm1479_vm0 = vcmp.eq.f32.partialorder %v3803_v35, %v1353_v32  ;;  %vm1481_vm11 = vcmp.eq.f32.partialorder %v3805_v44, %v1357_v43  ;;  %vm1478_vm13 = vcmp.eq.f32.partialorder %v3807_v49, %v1353_v32  ;;  %v1522_v13 = vsel %vm1451_vm12, %v2717_v4, 16  ;;  %v3814_v33 = vld [vmem:[#allocation39_spill] sm:$0xff]  ;;  %v3824_v35 = vld [vmem:[#allocation49_spill] sm:$0xff]  ;;  %v3829_v49 = vld [vmem:[#allocation52_spill] sm:$0xff] }
 0x2fa   :  { %v1550_v48 = vsel %vm1479_vm0, %v2717_v4, 16  ;;  %v1552_v9 = vsel %vm1481_vm11, %v2717_v4, 16  ;;  %v1549_v45 = vsel %vm1478_vm13, %v2715_v3, 16  ;;  %vm1483_vm14 = vcmp.eq.f32.partialorder %v3808_v8, %v1361_v56  ;;  %v3818_v36 = vld [vmem:[#allocation43_spill] sm:$0xff]  ;;  %v3831_v8 = vld [vmem:[#allocation54_spill] sm:$0xff] }
 0x2fb   :  { %1585 = vperm.xlu1 %2586, %v1518_v38   ;;  %1681 = vperm.xlu0 %2587, %v1550_v48   ;;  %vm1480_vm15 = vcmp.eq.f32.partialorder %v3809_v53, %v1357_v43  ;;  %v1554_v15 = vsel %vm1483_vm14, %v2717_v4, 16  ;;  %vm1453_vm0 = vcmp.eq.f32.partialorder %v3810_v30, %v1301_v62  ;;  %v1521_v16 = vsel %vm1450_vm1, %v2715_v3, 16  ;;  %v3825_v38 = vld [vmem:[#allocation48_spill] sm:$0xff] }
 0x2fc   :  { %v1551_v10 = vsel %vm1480_vm15, %v2715_v3, 16  ;;  %v1524_v54 = vsel %vm1453_vm0, %v2717_v4, 16  ;;  %vm1485_vm11 = vcmp.eq.f32.partialorder %v3812_v61, %v1365_v42  ;;  %vm1482_vm12 = vcmp.eq.f32.partialorder %v3813_v41, %v1361_v56  ;;  %v3833_v30 = vld [vmem:[#allocation24_spill] sm:$0xff] }
 0x2fd   :  { %v1556_v14 = vsel %vm1485_vm11, %v2717_v4, 16  ;;  %v1553_v1 = vsel %vm1482_vm12, %v2715_v3, 16  ;;  %vm1455_vm13 = vcmp.eq.f32.partialorder %v3814_v33, %v1305_v29  ;;  %vm1452_vm14 = vcmp.eq.f32.partialorder %v3815_v19, %v1301_v62 }
 0x2fe   :  { %v1526_v63 = vsel %vm1455_vm13, %v2717_v4, 16  ;;  %v1523_v7 = vsel %vm1452_vm14, %v2715_v3, 16  ;;  %vm1487_vm15 = vcmp.eq.f32.partialorder %v3816_v6, %v1369_v5  ;;  %vm1484_vm0 = vcmp.eq.f32.partialorder %v3817_v23, %v1365_v42 }
 0x2ff   :  { %1588 = vperm.xlu1 %2586, %v1519_v17   ;;  %1687 = vperm.xlu0 %2587, %v1552_v9   ;;  %v1558_v51 = vsel %vm1487_vm15, %v2717_v4, 16  ;;  %v1555_v57 = vsel %vm1484_vm0, %v2715_v3, 16  ;;  %vm1457_vm1 = vcmp.eq.f32.partialorder %v3818_v36, %v1309_v0  ;;  %vm1454_vm11 = vcmp.eq.f32.partialorder %v3819_v55, %v1305_v29 }
 0x300   :  { %v1373_v12 = vrot.slane %v3261_v24, %v3787_v60  ;;  %v1528_v21 = vsel %vm1457_vm1, %v2717_v4, 16  ;;  %v1525_v18 = vsel %vm1454_vm11, %v2715_v3, 16  ;;  %vm1486_vm13 = vcmp.eq.f32.partialorder %v3821_v28, %v1369_v5  ;;  %v3822_v60 = vld [vmem:[#allocation47_spill] sm:$0xff] }
 0x301   :  { %v1557_v27 = vsel %vm1486_vm13, %v2715_v3, 16  ;;  %vm1459_vm14 = vcmp.eq.f32.partialorder %v3822_v60, %v1313_v22  ;;  %vm1456_vm15 = vcmp.eq.f32.partialorder %v3823_v37, %v1309_v0  ;;  %v1377_v58 = vrot.slane %v3261_v24, %v3792_v2  ;;  %v3826_v2 = vld [vmem:[#allocation51_spill] sm:$0xff] }
 0x302   :  { %vm1489_vm12 = vcmp.eq.f32.partialorder %v3820_v34, %v1373_v12  ;;  %v1530_v32 = vsel %vm1459_vm14, %v2717_v4, 16  ;;  %v1527_v43 = vsel %vm1456_vm15, %v2715_v3, 16  ;;  %vm1488_vm1 = vcmp.eq.f32.partialorder %v3825_v38, %v1373_v12 }
 0x303   :  { %1597 = vperm.xlu0 %2587, %v1522_v13   ;;  %1678 = vperm.xlu1 %2586, %v1549_v45   ;;  %v1560_v31 = vsel %vm1489_vm12, %v2717_v4, 16  ;;  %vm1491_vm0 = vcmp.eq.f32.partialorder %v3824_v35, %v1377_v58  ;;  %v1317_v48 = vrot.slane %v3253_v26, %v3797_v46  ;;  %v1559_v44 = vsel %vm1488_vm1, %v2715_v3, 16  ;;  %v3828_v26 = vld [vmem:[#allocation53_spill] sm:$0xff] }
 0x304   :  { %v1562_v39 = vsel %vm1491_vm0, %v2717_v4, 16  ;;  %vm1458_vm12 = vcmp.eq.f32.partialorder %v3827_v52, %v1313_v22  ;;  %v1381_v17 = vrot.slane %v3261_v24, %v3797_v46  ;;  %vm1490_vm14 = vcmp.eq.f32.partialorder %v3829_v49, %v1377_v58  ;;  %v3830_v24 = vld [vmem:[#allocation21_spill] sm:$0xff] }
 0x305   :  { %vm1461_vm11 = vcmp.eq.f32.partialorder %v3826_v2, %v1317_v48  ;;  %v1529_v25 = vsel %vm1458_vm12, %v2715_v3, 16  ;;  %v1413_v56 = vrot.slane %v3167_v47, %v3797_v46  ;;  %v1561_v45 = vsel %vm1490_vm14, %v2715_v3, 16 }
 0x306   :  { %v1532_v9 = vsel %vm1461_vm11, %v2717_v4, 16  ;;  %vm1493_vm13 = vcmp.eq.f32.partialorder %v3828_v26, %v1381_v17  ;;  %vm1460_vm0 = vcmp.eq.f32.partialorder %v3831_v8, %v1317_v48 }
 0x307   :  { %1693 = vperm.xlu0 %2587, %v1554_v15   ;;  %1684 = vperm.xlu1 %2586, %v1551_v10   ;;  %v1564_v13 = vsel %vm1493_vm13, %v2717_v4, 16  ;;  %vm1509_vm15 = vcmp.eq.f32.partialorder %v3830_v24, %v1413_v56  ;;  %v1531_v62 = vsel %vm1460_vm0, %v2715_v3, 16  ;;  %v3832_v15 = vld [vmem:[#allocation55_spill] sm:$0xff]  ;;  %vm1508_vm11 = vcmp.eq.f32.partialorder %v3833_v30, %v1413_v56 }
 0x308   :  { %v1580_v53 = vsel %vm1509_vm15, %v2717_v4, 16  ;;  %vm1492_vm1 = vcmp.eq.f32.partialorder %v3832_v15, %v1381_v17 }
 0x309   :  { %v1563_v46 = vsel %vm1492_vm1, %v2715_v3, 16 }
 0x30b   :  { %1603 = vperm.xlu0 %2587, %v1524_v54   ;;  %1594 = vperm.xlu1 %2586, %v1521_v16   ;;  %v1579_v54 = vsel %vm1508_vm11, %v2715_v3, 16 }
 0x30f   :  { %1699 = vperm.xlu0 %2587, %v1556_v14   ;;  %1690 = vperm.xlu1 %2586, %v1553_v1  }
 0x313   :  { %1609 = vperm.xlu0 %2587, %v1526_v63   ;;  %1600 = vperm.xlu1 %2586, %v1523_v7  }
 0x317   :  { %1705 = vperm.xlu0 %2587, %v1558_v51   ;;  %1696 = vperm.xlu1 %2586, %v1555_v57  }
 0x31b   :  { %1615 = vperm.xlu0 %2587, %v1528_v21   ;;  %1606 = vperm.xlu1 %2586, %v1525_v18  }
 0x31f   :  { %1711 = vperm.xlu0 %2587, %v1560_v31   ;;  %1702 = vperm.xlu1 %2586, %v1557_v27  }
 0x323   :  { %1621 = vperm.xlu0 %2587, %v1530_v32   ;;  %1612 = vperm.xlu1 %2586, %v1527_v43  }
 0x327   :  { %1717 = vperm.xlu0 %2587, %v1562_v39   ;;  %1708 = vperm.xlu1 %2586, %v1559_v44  }
 0x32b   :  { %1627 = vperm.xlu0 %2587, %v1532_v9   ;;  %1618 = vperm.xlu1 %2586, %v1529_v25  }
 0x32f   :  { %1723 = vperm.xlu0 %2587, %v1564_v13   ;;  %1714 = vperm.xlu1 %2586, %v1561_v45  }
 0x333   :  { %1771 = vperm.xlu0 %2587, %v1580_v53   ;;  %1624 = vperm.xlu1 %2586, %v1531_v62  }
 0x336   :  { %v3356_v10 = vpop.permute.xlu1 %1630  ;;  %v3358_v47 = vpop.permute.xlu0 %1633 }
 0x337   :  { %1720 = vperm.xlu1 %2586, %v1563_v46   ;;  %v1848_v8 = vrot.slane %v3356_v10, %v2997_v40  ;;  %v1852_v53 = vrot.slane %v3358_v47, %v3000_v20 }
 0x33a   :  { %v1637_v11 = vpop.permute.xlu1 %1636  ;;  %v1640_v42 = vpop.permute.xlu0 %1639 }
 0x33b   :  { %1768 = vperm.xlu1 %2586, %v1579_v54   ;;  %v1857_v9 = vrot.slane %v1637_v11, %v2997_v40  ;;  %v1861_v25 = vrot.slane %v1640_v42, %v3000_v20 }
 0x33d   :  { %v1862_v11 = vsel %vm949_vm2, %v1861_v25, %v1857_v9 }
 0x33e   :  { %v1727_v4 = vpop.permute.xlu1 %1726  ;;  %v1730_v16 = vpop.permute.xlu0 %1729 }
 0x33f   :  { %v1992_v0 = vrot.slane %v1727_v4, %v2997_v40  ;;  %v1996_v51 = vrot.slane %v1730_v16, %v3000_v20 }
 0x341   :  { %v1997_v12 = vsel %vm949_vm2, %v1996_v51, %v1992_v0 }
 0x342   :  { %v1733_v61 = vpop.permute.xlu1 %1732  ;;  %v1736_v41 = vpop.permute.xlu0 %1735 }
 0x343   :  { %v2001_v63 = vrot.slane %v1733_v61, %v2997_v40  ;;  %v2005_v7 = vrot.slane %v1736_v41, %v3000_v20  ;;  %v1853_v41 = vsel %vm949_vm2, %v1852_v53, %v1848_v8 }
 0x345   :  { %v2006_v57 = vsel %vm949_vm2, %v2005_v7, %v2001_v63 }
 0x346   :  { %v1643_v29 = vpop.permute.xlu1 %1642  ;;  %v1646_v14 = vpop.permute.xlu0 %1645  ;;  %v2082_v34 = vsel %vm1230_vm3, %v2006_v57, %v1997_v12 }
 0x347   :  { %v1866_v49 = vrot.slane %v1643_v29, %v2997_v40  ;;  %v1870_v56 = vrot.slane %v1646_v14, %v3000_v20 }
 0x349   :  { %v1871_v4 = vsel %vm949_vm2, %v1870_v56, %v1866_v49 }
 0x34a   :  { %v1739_v1 = vpop.permute.xlu1 %1738  ;;  %v1742_v33 = vpop.permute.xlu0 %1741 }
 0x34b   :  { %v2010_v19 = vrot.slane %v1739_v1, %v2997_v40  ;;  %v2014_v5 = vrot.slane %v1742_v33, %v3000_v20  ;;  %v2068_v33 = vsel %vm1230_vm3, %v1862_v11, %v1853_v41 }
 0x34d   :  { %v2015_v6 = vsel %vm949_vm2, %v2014_v5, %v2010_v19  ;;  %v2069_v5 = vsel %vm1232_vm4, %v1871_v4, %v2068_v33 }
 0x34e   :  { %v1649_v3 = vpop.permute.xlu1 %1648  ;;  %v1652_v23 = vpop.permute.xlu0 %1651  ;;  %v2083_v28 = vsel %vm1232_vm4, %v2015_v6, %v2082_v34 }
 0x34f   :  { %v1875_v62 = vrot.slane %v1649_v3, %v2997_v40  ;;  %v1879_v15 = vrot.slane %v1652_v23, %v3000_v20 }
 0x351   :  { %v1880_v29 = vsel %vm949_vm2, %v1879_v15, %v1875_v62 }
 0x352   :  { %v1745_v36 = vpop.permute.xlu1 %1744  ;;  %v1748_v55 = vpop.permute.xlu0 %1747  ;;  %v2070_v6 = vsel %vm1234_vm5, %v1880_v29, %v2069_v5 }
 0x353   :  { %v2019_v21 = vrot.slane %v1745_v36, %v2997_v40  ;;  %v2023_v18 = vrot.slane %v1748_v55, %v3000_v20 }
 0x355   :  { %v2024_v22 = vsel %vm949_vm2, %v2023_v18, %v2019_v21 }
 0x356   :  { %v2084_v31 = vsel %vm1234_vm5, %v2024_v22, %v2083_v28  ;;  %v1655_v27 = vpop.permute.xlu1 %1654  ;;  %v1658_v60 = vpop.permute.xlu0 %1657 }
 0x357   :  { %v1884_v46 = vrot.slane %v1655_v27, %v2997_v40  ;;  %v1888_v30 = vrot.slane %v1658_v60, %v3000_v20 }
 0x359   :  { %v1889_v19 = vsel %vm949_vm2, %v1888_v30, %v1884_v46 }
 0x35a   :  { %v1751_v37 = vpop.permute.xlu1 %1750  ;;  %v1754_v58 = vpop.permute.xlu0 %1753  ;;  %v2071_v57 = vsel %vm1236_vm6, %v1889_v19, %v2070_v6 }
 0x35b   :  { %v2028_v32 = vrot.slane %v1751_v37, %v2997_v40  ;;  %v2032_v43 = vrot.slane %v1754_v58, %v3000_v20 }
 0x35d   :  { %v2033_v35 = vsel %vm949_vm2, %v2032_v43, %v2028_v32 }
 0x35e   :  { %v2085_v38 = vsel %vm1236_vm6, %v2033_v35, %v2084_v31  ;;  %v1661_v48 = vpop.permute.xlu1 %1660  ;;  %v1664_v39 = vpop.permute.xlu0 %1663 }
 0x35f   :  { %v1893_v42 = vrot.slane %v1661_v48, %v2997_v40  ;;  %v1897_v54 = vrot.slane %v1664_v39, %v3000_v20 }
 0x361   :  { %v1898_v63 = vsel %vm949_vm2, %v1897_v54, %v1893_v42 }
 0x362   :  { %v1757_v44 = vpop.permute.xlu1 %1756  ;;  %v1760_v2 = vpop.permute.xlu0 %1759  ;;  %v2072_v12 = vsel %vm1238_vm7, %v1898_v63, %v2071_v57 }
 0x363   :  { %v2037_v52 = vrot.slane %v1757_v44, %v2997_v40  ;;  %v2041_v17 = vrot.slane %v1760_v2, %v3000_v20 }
 0x365   :  { %v2042_v26 = vsel %vm949_vm2, %v2041_v17, %v2037_v52 }
 0x366   :  { %v2086_v13 = vsel %vm1238_vm7, %v2042_v26, %v2085_v38  ;;  %v1667_v45 = vpop.permute.xlu1 %1666  ;;  %v1670_v24 = vpop.permute.xlu0 %1669 }
 0x367   :  { %v1902_v10 = vrot.slane %v1667_v45, %v2997_v40  ;;  %v1906_v47 = vrot.slane %v1670_v24, %v3000_v20 }
 0x369   :  { %v1907_v3 = vsel %vm949_vm2, %v1906_v47, %v1902_v10 }
 0x36a   :  { %v1763_v16 = vpop.permute.xlu1 %1762  ;;  %v1766_v61 = vpop.permute.xlu0 %1765  ;;  %v2073_v21 = vsel %vm1240_vm8, %v1907_v3, %v2072_v12 }
 0x36b   :  { %v2046_v14 = vrot.slane %v1763_v16, %v2997_v40  ;;  %v2050_v1 = vrot.slane %v1766_v61, %v3000_v20 }
 0x36d   :  { %v2051_v7 = vsel %vm949_vm2, %v2050_v1, %v2046_v14 }
 0x36e   :  { %v3416_v23 = vsel %vm1240_vm8, %v2051_v7, %v2086_v13  ;;  %v1673_v0 = vpop.permute.xlu1 %1672  ;;  %v1676_v51 = vpop.permute.xlu0 %1675 }
 0x36f   :  { %v1911_v36 = vrot.slane %v1673_v0, %v2997_v40  ;;  %v1915_v55 = vrot.slane %v1676_v51, %v3000_v20 }
 0x371   :  { %v1916_v18 = vsel %vm949_vm2, %v1915_v55, %v1911_v36 }
 0x372   :  { %v2074_v34 = vsel %vm1242_vm9, %v1916_v18, %v2073_v21 }
 0x373   :  { %v3426_v28 = vsel %vm1269_vm10, %v2074_v34, 2147483647 }
 0x374   :  { %v2106_v22 = vshra.s32 %v3426_v28, 16 }
 0x376   :  { %v1583_v31 = vpop.permute.xlu1 %1582  ;;  %v1592_v27 = vpop.permute.xlu0 %1591  ;;  %v3429_v60 = vcvt.s32.f32 %v2106_v22 }
 0x377   :  { %v1789_v11 = vrot.slane %v1592_v27, %v3000_v20  ;;  %v1776_v54 = vrot.slane %v1583_v31, %v2997_v40 }
 0x378   :  { %2109 = vmin.xlane.f32.xlu0 %v3429_v60 }
 0x37a   :  { %v1586_v37 = vpop.permute.xlu1 %1585  ;;  %v1682_v58 = vpop.permute.xlu0 %1681 }
 0x37b   :  { %v1780_v30 = vrot.slane %v1586_v37, %v3000_v20  ;;  %v1924_v29 = vrot.slane %v1682_v58, %v3000_v20 }
 0x37d   :  { %v1781_v41 = vsel %vm949_vm2, %v1780_v30, %v1776_v54 }
 0x37e   :  { %v1589_v32 = vpop.permute.xlu1 %1588  ;;  %v1688_v43 = vpop.permute.xlu0 %1687 }
 0x37f   :  { %v1785_v62 = vrot.slane %v1589_v32, %v2997_v40  ;;  %v1933_v1 = vrot.slane %v1688_v43, %v3000_v20 }
 0x381   :  { %v1790_v10 = vsel %vm949_vm2, %v1789_v11, %v1785_v62 }
 0x382   :  { %v1679_v35 = vpop.permute.xlu1 %1678  ;;  %v1598_v38 = vpop.permute.xlu0 %1597  ;;  %v2061_v7 = vsel %vm1230_vm3, %v1790_v10, %v1781_v41 }
 0x383   :  { %v1920_v4 = vrot.slane %v1679_v35, %v2997_v40  ;;  %v1798_v47 = vrot.slane %v1598_v38, %v3000_v20 }
 0x385   :  { %v1925_v6 = vsel %vm949_vm2, %v1924_v29, %v1920_v4 }
 0x386   :  { %v1685_v48 = vpop.permute.xlu1 %1684  ;;  %v1694_v39 = vpop.permute.xlu0 %1693 }
 0x387   :  { %v1929_v14 = vrot.slane %v1685_v48, %v2997_v40  ;;  %v1942_v18 = vrot.slane %v1694_v39, %v3000_v20 }
 0x389   :  { %v1934_v21 = vsel %vm949_vm2, %v1933_v1, %v1929_v14 }
 0x38a   :  { %v1595_v44 = vpop.permute.xlu1 %1594  ;;  %v1604_v2 = vpop.permute.xlu0 %1603 }
 0x38b   :  { %v1794_v42 = vrot.slane %v1595_v44, %v2997_v40  ;;  %v1807_v19 = vrot.slane %v1604_v2, %v3000_v20 }
 0x38d   :  { %v1799_v33 = vsel %vm949_vm2, %v1798_v47, %v1794_v42 }
 0x38e   :  { %v1691_v52 = vpop.permute.xlu1 %1690  ;;  %v1700_v17 = vpop.permute.xlu0 %1699  ;;  %v2062_v34 = vsel %vm1232_vm4, %v1799_v33, %v2061_v7 }
 0x38f   :  { %v1938_v3 = vrot.slane %v1691_v52, %v2997_v40  ;;  %v1951_v31 = vrot.slane %v1700_v17, %v3000_v20 }
 0x391   :  { %v1943_v32 = vsel %vm949_vm2, %v1942_v18, %v1938_v3 }
 0x392   :  { %v1601_v9 = vpop.permute.xlu1 %1600  ;;  %v1610_v25 = vpop.permute.xlu0 %1609 }
 0x393   :  { %v1803_v16 = vrot.slane %v1601_v9, %v2997_v40  ;;  %v1816_v57 = vrot.slane %v1610_v25, %v3000_v20 }
 0x395   :  { %v1808_v51 = vsel %vm949_vm2, %v1807_v19, %v1803_v16 }
 0x396   :  { %v1697_v26 = vpop.permute.xlu1 %1696  ;;  %v1706_v49 = vpop.permute.xlu0 %1705  ;;  %v2063_v43 = vsel %vm1234_vm5, %v1808_v51, %v2062_v34 }
 0x397   :  { %v1947_v36 = vrot.slane %v1697_v26, %v2997_v40  ;;  %v1960_v39 = vrot.slane %v1706_v49, %v3000_v20 }
 0x399   :  { %v1952_v48 = vsel %vm949_vm2, %v1951_v31, %v1947_v36 }
 0x39a   :  { %v1607_v56 = vpop.permute.xlu1 %1606  ;;  %v1616_v13 = vpop.permute.xlu0 %1615 }
 0x39b   :  { %v1812_v5 = vrot.slane %v1607_v56, %v2997_v40  ;;  %v1825_v22 = vrot.slane %v1616_v13, %v3000_v20  ;;  %v2075_v13 = vsel %vm1230_vm3, %v1934_v21, %v1925_v6 }
 0x39d   :  { %v1817_v27 = vsel %vm949_vm2, %v1816_v57, %v1812_v5 }
 0x39e   :  { %v1703_v45 = vpop.permute.xlu1 %1702  ;;  %v1712_v24 = vpop.permute.xlu0 %1711  ;;  %v2064_v9 = vsel %vm1236_vm6, %v1817_v27, %v2063_v43 }
 0x39f   :  { %v1956_v37 = vrot.slane %v1703_v45, %v2997_v40  ;;  %v1969_v25 = vrot.slane %v1712_v24, %v3000_v20 }
 0x3a1   :  { %v1961_v45 = vsel %vm949_vm2, %v1960_v39, %v1956_v37 }
 0x3a2   :  { %v1613_v8 = vpop.permute.xlu1 %1612  ;;  %v1622_v53 = vpop.permute.xlu0 %1621 }
 0x3a3   :  { %v1821_v0 = vrot.slane %v1613_v8, %v2997_v40  ;;  %v1834_v58 = vrot.slane %v1622_v53, %v3000_v20  ;;  %v2076_v53 = vsel %vm1232_vm4, %v1943_v32, %v2075_v13 }
 0x3a4   :  { %v2077_v30 = vsel %vm1234_vm5, %v1952_v48, %v2076_v53 }
 0x3a5   :  { %v1826_v35 = vsel %vm949_vm2, %v1825_v22, %v1821_v0  ;;  %v2078_v4 = vsel %vm1236_vm6, %v1961_v45, %v2077_v30 }
 0x3a6   :  { %v1709_v15 = vpop.permute.xlu1 %1708  ;;  %v1718_v46 = vpop.permute.xlu0 %1717  ;;  %v2065_v49 = vsel %vm1238_vm7, %v1826_v35, %v2064_v9  ;;  %v3835_v9 = vld [vmem:[#allocation56_spill] sm:$0xff] }
 0x3a7   :  { %v1965_v38 = vrot.slane %v1709_v15, %v2997_v40  ;;  %v1978_v8 = vrot.slane %v1718_v46, %v3000_v20 }
 0x3a9   :  { %v1970_v62 = vsel %vm949_vm2, %v1969_v25, %v1965_v38 }
 0x3aa   :  { %v1619_v61 = vpop.permute.xlu1 %1618  ;;  %v1628_v63 = vpop.permute.xlu0 %1627  ;;  %v2079_v16 = vsel %vm1238_vm7, %v1970_v62, %v2078_v4 }
 0x3ab   :  { %v1830_v55 = vrot.slane %v1619_v61, %v2997_v40  ;;  %v1843_v26 = vrot.slane %v1628_v63, %v3000_v20 }
 0x3ad   :  { %v1835_v44 = vsel %vm949_vm2, %v1834_v58, %v1830_v55 }
 0x3ae   :  { %v1715_v12 = vpop.permute.xlu1 %1714  ;;  %v1724_v52 = vpop.permute.xlu0 %1723  ;;  %v2066_v15 = vsel %vm1240_vm8, %v1835_v44, %v2065_v49 }
 0x3af   :  { %v1974_v2 = vrot.slane %v1715_v12, %v2997_v40  ;;  %v1987_v10 = vrot.slane %v1724_v52, %v3000_v20  ;;  %v2105_v12 = vand.u32 65535, %v3426_v28 }
 0x3b1   :  { %v1979_v11 = vsel %vm949_vm2, %v1978_v8, %v1974_v2  ;;  %v2107_v18 = vcvt.s32.f32 %v2105_v12 }
 0x3b2   :  { %v1625_v17 = vpop.permute.xlu1 %1624  ;;  %v1772_v61 = vpop.permute.xlu0 %1771  ;;  %v2080_v29 = vsel %vm1240_vm8, %v1979_v11, %v2079_v16 }
 0x3b3   :  { %v1839_v56 = vrot.slane %v1625_v17, %v2997_v40  ;;  %v2059_v5 = vrot.slane %v1772_v61, %v3000_v20  ;;  %v3834_v17 = vld [vmem:[#allocation5_spill] sm:$0xff] }
 0x3b5   :  { %v1844_v24 = vsel %vm949_vm2, %v1843_v26, %v1839_v56 }
 0x3b6   :  { %v1721_v42 = vpop.permute.xlu1 %1720  ;;  %v2067_v54 = vsel %vm1242_vm9, %v1844_v24, %v2066_v15 }
 0x3b7   :  { %v1983_v46 = vrot.slane %v1721_v42, %v2997_v40  ;;  %v2089_v47 = vsel %vm1269_vm10, %v2067_v54, 2147483647 }
 0x3b8   :  { %v2091_v41 = vshra.s32 %v2089_v47, 16  ;;  %v2090_v22 = vand.u32 65535, %v2089_v47 }
 0x3b9   :  { %v1988_v14 = vsel %vm949_vm2, %v1987_v10, %v1983_v46 }
 0x3ba   :  { %v1769_v1 = vpop.permute.xlu1 %1768  ;;  %v2093_v33 = vcvt.s32.f32 %v2091_v41  ;;  %v2081_v19 = vsel %vm1242_vm9, %v1988_v14, %v2080_v29  ;;  %v2092_v27 = vcvt.s32.f32 %v2090_v22 }
 0x3bb   :  { %v2055_v63 = vrot.slane %v1769_v1, %v2997_v40  ;;  %v2119_v7 = vsel %vm1269_vm10, %v2081_v19, 2147483647 }
 0x3bc   :  { %2094 = vmin.xlane.f32.xlu1 %v2093_v33  ;;  %v2121_v6 = vshra.s32 %v2119_v7, 16  ;;  %v2120_v37 = vand.u32 65535, %v2119_v7 }
 0x3bd   :  { %v2060_v3 = vsel %vm949_vm2, %v2059_v5, %v2055_v63 }
 0x3be   :  { %v2123_v0 = vcvt.s32.f32 %v2121_v6  ;;  %v2088_v51 = vsel %vm1242_vm9, %v2060_v3, %v3416_v23  ;;  %v2122_v32 = vcvt.s32.f32 %v2120_v37 }
 0x3bf   :  { %v2134_v57 = vsel %vm1269_vm10, %v2088_v51, 2147483647 }
 0x3c0   :  { %2124 = vmin.xlane.f32.xlu0 %v2123_v0  ;;  %v2136_v36 = vshra.s32 %v2134_v57, 16  ;;  %v2135_v43 = vand.u32 65535, %v2134_v57 }
 0x3c2   :  { %v2138_v55 = vcvt.s32.f32 %v2136_v36  ;;  %v2137_v38 = vcvt.s32.f32 %v2135_v43 }
 0x3c4   :  { %2139 = vmin.xlane.f32.xlu0 %v2138_v55 }
 0x405   :  { %v2110_v21 = vpop.xlane.xlu0 %2109 }
 0x406   :  { %vm2111_vm3 = vcmp.eq.f32.partialorder %v3429_v60, %v2110_v21  ;;  %v2116_v60 = vcvt.f32.s32 %v2110_v21 }
 0x407   :  { %v2112_v34 = vsel %vm2111_vm3, %v2107_v18, inf }
 0x408   :  { %2113 = vmin.xlane.f32.xlu0 %v2112_v34  ;;  %v2117_v44 = vshll.u32 %v2116_v60, 16 }
 0x449   :  { %v2095_v31 = vpop.xlane.xlu1 %2094 }
 0x44a   :  { %vm2096_vm4 = vcmp.eq.f32.partialorder %v2093_v33, %v2095_v31  ;;  %v2101_v56 = vcvt.f32.s32 %v2095_v31  ;;  %v3836_v33 = vld [vmem:[#allocation57_spill] sm:$0xff] }
 0x44b   :  { %v2097_v23 = vsel %vm2096_vm4, %v2092_v27, inf }
 0x44c   :  { %2098 = vmin.xlane.f32.xlu1 %v2097_v23  ;;  %v2102_v49 = vshll.u32 %v2101_v56, 16 }
 0x44d   :  { %v2125_v58 = vpop.xlane.xlu0 %2124 }
 0x44e   :  { %vm2126_vm5 = vcmp.eq.f32.partialorder %v2123_v0, %v2125_v58  ;;  %v2131_v13 = vcvt.f32.s32 %v2125_v58 }
 0x44f   :  { %v2127_v35 = vsel %vm2126_vm5, %v2122_v32, inf }
 0x450   :  { %2128 = vmin.xlane.f32.xlu1 %v2127_v35  ;;  %v2132_v62 = vshll.u32 %v2131_v13, 16 }
 0x451   :  { %v2140_v28 = vpop.xlane.xlu0 %2139 }
 0x452   :  { %vm2141_vm6 = vcmp.eq.f32.partialorder %v2138_v55, %v2140_v28  ;;  %v2146_v15 = vcvt.f32.s32 %v2140_v28 }
 0x453   :  { %v2142_v48 = vsel %vm2141_vm6, %v2137_v38, inf }
 0x454   :  { %2143 = vmin.xlane.f32.xlu0 %v2142_v48  ;;  %v2147_v16 = vshll.u32 %v2146_v15, 16 }
 0x495   :  { %v2114_v39 = vpop.xlane.xlu0 %2113 }
 0x496   :  { %v2115_v2 = vcvt.f32.s32 %v2114_v39 }
 0x498   :  { %v2118_v52 = vadd.s32 %v2117_v44, %v2115_v2 }
 0x49a   :  { %vm2177_vm7 = vcmp.eq.s32.totalorder %v3834_v17, %v2118_v52  ;;  %v2159_v30 = vrot.slane %v2118_v52, %v3000_v20 }
 0x49b   :  { %v3506_v25 = vsel %vm2177_vm7, inf, %v3835_v9 }
 0x49c   :  { %v2187_v26 = vsel %vm1269_vm10, %v3506_v25, inf }
 0x49d   :  { %2188 = vmin.xlane.f32.xlu0 %v2187_v26 }
 0x4d9   :  { %v2099_v45 = vpop.xlane.xlu1 %2098 }
 0x4da   :  { %v2100_v8 = vcvt.f32.s32 %v2099_v45 }
 0x4dc   :  { %v2103_v53 = vadd.s32 %v2102_v49, %v2100_v8 }
 0x4dd   :  { %v2129_v24 = vpop.xlane.xlu1 %2128 }
 0x4de   :  { %v2155_v11 = vrot.slane %v2103_v53, %v2997_v40  ;;  %vm2176_vm8 = vcmp.eq.s32.totalorder %v3834_v17, %v2103_v53  ;;  %v2130_v42 = vcvt.f32.s32 %v2129_v24 }
 0x4df   :  { %v3514_v54 = vsel %vm2176_vm8, inf, %v3144_v50 }
 0x4e0   :  { %v3517_v4 = vsel %vm949_vm2, %v2159_v30, %v2155_v11  ;;  %v2133_v10 = vadd.s32 %v2132_v62, %v2130_v42  ;;  %v2184_v46 = vsel %vm1269_vm10, %v3514_v54, inf }
 0x4e1   :  { %2185 = vmin.xlane.f32.xlu1 %v2184_v46  ;;  %v2144_v47 = vpop.xlane.xlu0 %2143 }
 0x4e2   :  { %vm2178_vm9 = vcmp.eq.s32.totalorder %v3834_v17, %v2133_v10  ;;  %v2145_v61 = vcvt.f32.s32 %v2144_v47  ;;  %v2164_v14 = vrot.slane %v2133_v10, %v2997_v40 }
 0x4e3   :  { %v3523_v41 = vsel %vm2178_vm9, inf, %v3155_v59 }
 0x4e4   :  { %v2148_v29 = vadd.s32 %v2147_v16, %v2145_v61  ;;  %v2190_v50 = vsel %vm1269_vm10, %v3523_v41, inf }
 0x4e5   :  { %2191 = vmin.xlane.f32.xlu1 %v2190_v50 }
 0x4e6   :  { %v2168_v1 = vrot.slane %v2148_v29, %v3000_v20  ;;  %vm2179_vm12 = vcmp.eq.s32.totalorder %v3834_v17, %v2148_v29  ;;  %v3837_v29 = vld [vmem:[#allocation6_spill] sm:$0xff] }
 0x4e7   :  { %v3531_v19 = vsel %vm2179_vm12, inf, %v3836_v33  ;;  %vm2149_vm6 = vcmp.eq.s32.totalorder %v3837_v29, 0  ;;  %vm2264_vm7 = vcmp.eq.s32.totalorder %v3837_v29, 1 }
 0x4e8   :  { %v3534_v5 = vsel %vm949_vm2, %v2168_v1, %v2164_v14  ;;  %v2193_v59 = vsel %vm1269_vm10, %v3531_v19, inf }
 0x4e9   :  { %2194 = vmin.xlane.f32.xlu0 %v2193_v59 }
 0x52a   :  { %v2189_v63 = vpop.xlane.xlu0 %2188 }
 0x52b   :  { %vm2197_vm13 = vcmp.eq.f32.partialorder %v3506_v25, %v2189_v63 }
 0x52c   :  { %v2201_v7 = vsel %vm2197_vm13, %v3834_v17, 16 }
 0x52d   :  { %v2219_v6 = vsel %vm1269_vm10, %v2201_v7, 2147483647  ;;  %v2174_v7 = vsel %vm2149_vm6, %v3517_v4, 0 }
 0x52e   :  { %v2221_v3 = vshra.s32 %v2219_v6, 16  ;;  %v2220_v43 = vand.u32 65535, %v2219_v6 }
 0x530   :  { %v2223_v0 = vcvt.s32.f32 %v2221_v3  ;;  %v2222_v28 = vcvt.s32.f32 %v2220_v43 }
 0x532   :  { %2224 = vmin.xlane.f32.xlu0 %v2223_v0 }
 0x56e   :  { %v2186_v51 = vpop.xlane.xlu1 %2185 }
 0x56f   :  { %vm2196_vm14 = vcmp.eq.f32.partialorder %v3514_v54, %v2186_v51 }
 0x570   :  { %v2200_v57 = vsel %vm2196_vm14, %v3834_v17, 16 }
 0x571   :  { %v2204_v36 = vsel %vm1269_vm10, %v2200_v57, 2147483647 }
 0x572   :  { %v2206_v55 = vshra.s32 %v2204_v36, 16  ;;  %v2192_v12 = vpop.xlane.xlu1 %2191  ;;  %v2205_v48 = vand.u32 65535, %v2204_v36 }
 0x573   :  { %vm2198_vm15 = vcmp.eq.f32.partialorder %v3523_v41, %v2192_v12 }
 0x574   :  { %v2202_v21 = vsel %vm2198_vm15, %v3834_v17, 16  ;;  %v2208_v18 = vcvt.s32.f32 %v2206_v55  ;;  %v2207_v44 = vcvt.s32.f32 %v2205_v48 }
 0x575   :  { %v2234_v34 = vsel %vm1269_vm10, %v2202_v21, 2147483647 }
 0x576   :  { %v2236_v22 = vshra.s32 %v2234_v34, 16  ;;  %2209 = vmin.xlane.f32.xlu1 %v2208_v18  ;;  %v2195_v31 = vpop.xlane.xlu0 %2194  ;;  %v2235_v60 = vand.u32 65535, %v2234_v34 }
 0x577   :  { %vm2199_vm0 = vcmp.eq.f32.partialorder %v3531_v19, %v2195_v31 }
 0x578   :  { %v2203_v27 = vsel %vm2199_vm0, %v3834_v17, 16  ;;  %v2238_v37 = vcvt.s32.f32 %v2236_v22  ;;  %v2237_v26 = vcvt.s32.f32 %v2235_v60  ;;  %v2175_v22 = vsel %vm2149_vm6, %v3534_v5, 0 }
 0x579   :  { %v2249_v23 = vsel %vm1269_vm10, %v2203_v27, 2147483647  ;;  %vm2379_vm6 = vcmp.eq.s32.totalorder %v3837_v29, 2 }
 0x57a   :  { %v2251_v58 = vshra.s32 %v2249_v23, 16  ;;  %2239 = vmin.xlane.f32.xlu1 %v2238_v37  ;;  %v2250_v52 = vand.u32 65535, %v2249_v23 }
 0x57c   :  { %v2253_v32 = vcvt.s32.f32 %v2251_v58  ;;  %v2252_v45 = vcvt.s32.f32 %v2250_v52 }
 0x57e   :  { %2254 = vmin.xlane.f32.xlu0 %v2253_v32 }
 0x5bf   :  { %v2225_v35 = vpop.xlane.xlu0 %2224 }
 0x5c0   :  { %vm2226_vm1 = vcmp.eq.f32.partialorder %v2223_v0, %v2225_v35  ;;  %v2231_v8 = vcvt.f32.s32 %v2225_v35 }
 0x5c1   :  { %v2227_v38 = vsel %vm2226_vm1, %v2222_v28, inf }
 0x5c2   :  { %2228 = vmin.xlane.f32.xlu0 %v2227_v38  ;;  %v2232_v62 = vshll.u32 %v2231_v8, 16 }
 0x603   :  { %v2210_v39 = vpop.xlane.xlu1 %2209 }
 0x604   :  { %vm2211_vm11 = vcmp.eq.f32.partialorder %v2208_v18, %v2210_v39  ;;  %v2216_v42 = vcvt.f32.s32 %v2210_v39 }
 0x605   :  { %v2212_v2 = vsel %vm2211_vm11, %v2207_v44, inf }
 0x606   :  { %2213 = vmin.xlane.f32.xlu1 %v2212_v2  ;;  %v2217_v47 = vshll.u32 %v2216_v42, 16 }
 0x607   :  { %v2240_v9 = vpop.xlane.xlu1 %2239 }
 0x608   :  { %vm2241_vm3 = vcmp.eq.f32.partialorder %v2238_v37, %v2240_v9  ;;  %v2246_v10 = vcvt.f32.s32 %v2240_v9 }
 0x609   :  { %v2242_v56 = vsel %vm2241_vm3, %v2237_v26, inf }
 0x60a   :  { %2243 = vmin.xlane.f32.xlu1 %v2242_v56  ;;  %v2247_v50 = vshll.u32 %v2246_v10, 16 }
 0x60b   :  { %v2255_v13 = vpop.xlane.xlu0 %2254 }
 0x60c   :  { %vm2256_vm4 = vcmp.eq.f32.partialorder %v2253_v32, %v2255_v13  ;;  %v2261_v14 = vcvt.f32.s32 %v2255_v13 }
 0x60d   :  { %v2257_v49 = vsel %vm2256_vm4, %v2252_v45, inf }
 0x60e   :  { %2258 = vmin.xlane.f32.xlu0 %v2257_v49  ;;  %v2262_v36 = vshll.u32 %v2261_v14, 16 }
 0x64f   :  { %v2229_v53 = vpop.xlane.xlu0 %2228 }
 0x650   :  { %v2230_v15 = vcvt.f32.s32 %v2229_v53 }
 0x652   :  { %v2233_v24 = vadd.s32 %v2232_v62, %v2230_v15 }
 0x654   :  { %vm2292_vm5 = vcmp.eq.s32.totalorder %v3834_v17, %v2233_v24 }
 0x655   :  { %v3552_v30 = vsel %vm2292_vm5, inf, %v3506_v25  ;;  %v2274_v25 = vrot.slane %v2233_v24, %v3000_v20 }
 0x656   :  { %v2302_v11 = vsel %vm1269_vm10, %v3552_v30, inf }
 0x657   :  { %2303 = vmin.xlane.f32.xlu0 %v2302_v11 }
 0x693   :  { %v2214_v46 = vpop.xlane.xlu1 %2213 }
 0x694   :  { %v2215_v16 = vcvt.f32.s32 %v2214_v46 }
 0x696   :  { %v2218_v61 = vadd.s32 %v2217_v47, %v2215_v16 }
 0x697   :  { %v2244_v1 = vpop.xlane.xlu1 %2243 }
 0x698   :  { %v2270_v33 = vrot.slane %v2218_v61, %v2997_v40  ;;  %vm2291_vm8 = vcmp.eq.s32.totalorder %v3834_v17, %v2218_v61  ;;  %v2245_v59 = vcvt.f32.s32 %v2244_v1 }
 0x699   :  { %v3562_v63 = vsel %vm2291_vm8, inf, %v3514_v54 }
 0x69a   :  { %v2275_v6 = vsel %vm949_vm2, %v2274_v25, %v2270_v33  ;;  %v2248_v3 = vadd.s32 %v2247_v50, %v2245_v59  ;;  %v2299_v0 = vsel %vm1269_vm10, %v3562_v63, inf }
 0x69b   :  { %v3572_v51 = vsel %vm2264_vm7, %v2275_v6, %v2174_v7  ;;  %2300 = vmin.xlane.f32.xlu1 %v2299_v0  ;;  %v2259_v57 = vpop.xlane.xlu0 %2258 }
 0x69c   :  { %vm2293_vm9 = vcmp.eq.s32.totalorder %v3834_v17, %v2248_v3  ;;  %v2260_v54 = vcvt.f32.s32 %v2259_v57  ;;  %v2279_v21 = vrot.slane %v2248_v3, %v2997_v40 }
 0x69d   :  { %v3576_v55 = vsel %vm2293_vm9, inf, %v3523_v41 }
 0x69e   :  { %v2263_v4 = vadd.s32 %v2262_v36, %v2260_v54  ;;  %v2305_v12 = vsel %vm1269_vm10, %v3576_v55, inf }
 0x69f   :  { %2306 = vmin.xlane.f32.xlu1 %v2305_v12 }
 0x6a0   :  { %v2283_v18 = vrot.slane %v2263_v4, %v3000_v20  ;;  %vm2294_vm12 = vcmp.eq.s32.totalorder %v3834_v17, %v2263_v4 }
 0x6a1   :  { %v3584_v34 = vsel %vm2294_vm12, inf, %v3531_v19 }
 0x6a2   :  { %v2284_v41 = vsel %vm949_vm2, %v2283_v18, %v2279_v21  ;;  %v2308_v31 = vsel %vm1269_vm10, %v3584_v34, inf }
 0x6a3   :  { %v3594_v27 = vsel %vm2264_vm7, %v2284_v41, %v2175_v22  ;;  %2309 = vmin.xlane.f32.xlu0 %v2308_v31 }
 0x6e4   :  { %v2304_v37 = vpop.xlane.xlu0 %2303 }
 0x6e5   :  { %vm2312_vm13 = vcmp.eq.f32.partialorder %v3552_v30, %v2304_v37 }
 0x6e6   :  { %v2316_v19 = vsel %vm2312_vm13, %v3834_v17, 16 }
 0x6e7   :  { %v2334_v23 = vsel %vm1269_vm10, %v2316_v19, 2147483647 }
 0x6e8   :  { %v2336_v58 = vshra.s32 %v2334_v23, 16  ;;  %v2335_v45 = vand.u32 65535, %v2334_v23 }
 0x6ea   :  { %v2338_v32 = vcvt.s32.f32 %v2336_v58  ;;  %v2337_v8 = vcvt.s32.f32 %v2335_v45 }
 0x6ec   :  { %2339 = vmin.xlane.f32.xlu0 %v2338_v32 }
 0x728   :  { %v2301_v5 = vpop.xlane.xlu1 %2300 }
 0x729   :  { %vm2311_vm14 = vcmp.eq.f32.partialorder %v3562_v63, %v2301_v5 }
 0x72a   :  { %v2315_v43 = vsel %vm2311_vm14, %v3834_v17, 16 }
 0x72b   :  { %v2319_v35 = vsel %vm1269_vm10, %v2315_v43, 2147483647 }
 0x72c   :  { %v2321_v28 = vshra.s32 %v2319_v35, 16  ;;  %v2307_v38 = vpop.xlane.xlu1 %2306  ;;  %v2320_v62 = vand.u32 65535, %v2319_v35 }
 0x72d   :  { %vm2313_vm15 = vcmp.eq.f32.partialorder %v3576_v55, %v2307_v38 }
 0x72e   :  { %v2317_v48 = vsel %vm2313_vm15, %v3834_v17, 16  ;;  %v2323_v60 = vcvt.s32.f32 %v2321_v28  ;;  %v2322_v11 = vcvt.s32.f32 %v2320_v62 }
 0x72f   :  { %v2349_v39 = vsel %vm1269_vm10, %v2317_v48, 2147483647 }
 0x730   :  { %v2351_v44 = vshra.s32 %v2349_v39, 16  ;;  %2324 = vmin.xlane.f32.xlu1 %v2323_v60  ;;  %v2310_v2 = vpop.xlane.xlu0 %2309  ;;  %v2350_v15 = vand.u32 65535, %v2349_v39 }
 0x731   :  { %vm2314_vm0 = vcmp.eq.f32.partialorder %v3584_v34, %v2310_v2 }
 0x732   :  { %v2318_v52 = vsel %vm2314_vm0, %v3834_v17, 16  ;;  %v2353_v9 = vcvt.s32.f32 %v2351_v44  ;;  %v2352_v47 = vcvt.s32.f32 %v2350_v15 }
 0x733   :  { %v2364_v26 = vsel %vm1269_vm10, %v2318_v52, 2147483647 }
 0x734   :  { %v2366_v56 = vshra.s32 %v2364_v26, 16  ;;  %2354 = vmin.xlane.f32.xlu1 %v2353_v9  ;;  %v2365_v10 = vand.u32 65535, %v2364_v26 }
 0x736   :  { %v2368_v13 = vcvt.s32.f32 %v2366_v56  ;;  %v2367_v50 = vcvt.s32.f32 %v2365_v10 }
 0x738   :  { %2369 = vmin.xlane.f32.xlu0 %v2368_v13 }
 0x779   :  { %v2340_v49 = vpop.xlane.xlu0 %2339 }
 0x77a   :  { %vm2341_vm1 = vcmp.eq.f32.partialorder %v2338_v32, %v2340_v49  ;;  %v2346_v1 = vcvt.f32.s32 %v2340_v49 }
 0x77b   :  { %v2342_v53 = vsel %vm2341_vm1, %v2337_v8, inf }
 0x77c   :  { %2343 = vmin.xlane.f32.xlu0 %v2342_v53  ;;  %v2347_v33 = vshll.u32 %v2346_v1, 16 }
 0x7bd   :  { %v2325_v24 = vpop.xlane.xlu1 %2324 }
 0x7be   :  { %vm2326_vm11 = vcmp.eq.f32.partialorder %v2323_v60, %v2325_v24  ;;  %v2331_v0 = vcvt.f32.s32 %v2325_v24 }
 0x7bf   :  { %v2327_v42 = vsel %vm2326_vm11, %v2322_v11, inf }
 0x7c0   :  { %2328 = vmin.xlane.f32.xlu1 %v2327_v42  ;;  %v2332_v54 = vshll.u32 %v2331_v0, 16 }
 0x7c1   :  { %v2355_v46 = vpop.xlane.xlu1 %2354 }
 0x7c2   :  { %vm2356_vm3 = vcmp.eq.f32.partialorder %v2353_v9, %v2355_v46  ;;  %v2361_v57 = vcvt.f32.s32 %v2355_v46 }
 0x7c3   :  { %v2357_v16 = vsel %vm2356_vm3, %v2352_v47, inf  ;;  %vm2494_vm3 = vcmp.eq.s32.totalorder %v3837_v29, 3 }
 0x7c4   :  { %2358 = vmin.xlane.f32.xlu1 %v2357_v16  ;;  %v2362_v21 = vshll.u32 %v2361_v57, 16 }
 0x7c5   :  { %v2370_v61 = vpop.xlane.xlu0 %2369 }
 0x7c6   :  { %vm2371_vm4 = vcmp.eq.f32.partialorder %v2368_v13, %v2370_v61  ;;  %v2376_v18 = vcvt.f32.s32 %v2370_v61 }
 0x7c7   :  { %v2372_v14 = vsel %vm2371_vm4, %v2367_v50, inf  ;;  %vm2521_vm4 = vcmask 125952  }
 0x7c8   :  { %2373 = vmin.xlane.f32.xlu0 %v2372_v14  ;;  %v2377_v43 = vshll.u32 %v2376_v18, 16 }
 0x809   :  { %v2344_v25 = vpop.xlane.xlu0 %2343 }
 0x80a   :  { %v2345_v59 = vcvt.f32.s32 %v2344_v25 }
 0x80c   :  { %v2348_v7 = vadd.s32 %v2347_v33, %v2345_v59 }
 0x80e   :  { %vm2407_vm5 = vcmp.eq.s32.totalorder %v3834_v17, %v2348_v7  ;;  %v2389_v41 = vrot.slane %v2348_v7, %v3000_v20 }
 0x80f   :  { %v2411_v6 = vsel %vm2407_vm5, inf, %v3552_v30 }
 0x810   :  { %v2417_v3 = vsel %vm1269_vm10, %v2411_v6, inf }
 0x811   :  { %2418 = vmin.xlane.f32.xlu0 %v2417_v3 }
 0x84d   :  { %v2329_v36 = vpop.xlane.xlu1 %2328 }
 0x84e   :  { %v2330_v4 = vcvt.f32.s32 %v2329_v36 }
 0x850   :  { %v2333_v12 = vadd.s32 %v2332_v54, %v2330_v4 }
 0x851   :  { %v2359_v22 = vpop.xlane.xlu1 %2358 }
 0x852   :  { %v2385_v31 = vrot.slane %v2333_v12, %v2997_v40  ;;  %v2360_v37 = vcvt.f32.s32 %v2359_v22  ;;  %vm2406_vm7 = vcmp.eq.s32.totalorder %v3834_v17, %v2333_v12 }
 0x853   :  { %v2410_v30 = vsel %vm2406_vm7, inf, %v3562_v63 }
 0x854   :  { %v2390_v19 = vsel %vm949_vm2, %v2389_v41, %v2385_v31  ;;  %v2363_v23 = vadd.s32 %v2362_v21, %v2360_v37  ;;  %v2414_v58 = vsel %vm1269_vm10, %v2410_v30, inf }
 0x855   :  { %v3621_v32 = vsel %vm2379_vm6, %v2390_v19, %v3572_v51  ;;  %2415 = vmin.xlane.f32.xlu1 %v2414_v58  ;;  %v2374_v5 = vpop.xlane.xlu0 %2373 }
 0x856   :  { %v2375_v35 = vcvt.f32.s32 %v2374_v5  ;;  %vm2408_vm8 = vcmp.eq.s32.totalorder %v3834_v17, %v2363_v23  ;;  %v2394_v48 = vrot.slane %v2363_v23, %v2997_v40 }
 0x857   :  { %v2412_v28 = vsel %vm2408_vm8, inf, %v3576_v55 }
 0x858   :  { %v2378_v38 = vadd.s32 %v2377_v43, %v2375_v35  ;;  %v2420_v63 = vsel %vm1269_vm10, %v2412_v28, inf }
 0x859   :  { %2421 = vmin.xlane.f32.xlu1 %v2420_v63 }
 0x85a   :  { %v2398_v60 = vrot.slane %v2378_v38, %v3000_v20  ;;  %vm2409_vm9 = vcmp.eq.s32.totalorder %v3834_v17, %v2378_v38 }
 0x85b   :  { %v2413_v51 = vsel %vm2409_vm9, inf, %v3584_v34 }
 0x85c   :  { %v2399_v39 = vsel %vm949_vm2, %v2398_v60, %v2394_v48  ;;  %v2423_v44 = vsel %vm1269_vm10, %v2413_v51, inf }
 0x85d   :  { %v3635_v55 = vsel %vm2379_vm6, %v2399_v39, %v3594_v27  ;;  %2424 = vmin.xlane.f32.xlu0 %v2423_v44 }
 0x89e   :  { %v2419_v2 = vpop.xlane.xlu0 %2418 }
 0x89f   :  { %vm2427_vm12 = vcmp.eq.f32.partialorder %v2411_v6, %v2419_v2 }
 0x8a0   :  { %v2431_v52 = vsel %vm2427_vm12, %v3834_v17, 16 }
 0x8a1   :  { %v2449_v9 = vsel %vm1269_vm10, %v2431_v52, 2147483647 }
 0x8a2   :  { %v2451_v26 = vshra.s32 %v2449_v9, 16  ;;  %v2450_v16 = vand.u32 65535, %v2449_v9 }
 0x8a4   :  { %v2453_v56 = vcvt.s32.f32 %v2451_v26  ;;  %v2452_v50 = vcvt.s32.f32 %v2450_v16 }
 0x8a6   :  { %2454 = vmin.xlane.f32.xlu0 %v2453_v56 }
 0x8e2   :  { %v2416_v34 = vpop.xlane.xlu1 %2415 }
 0x8e3   :  { %vm2426_vm13 = vcmp.eq.f32.partialorder %v2410_v30, %v2416_v34 }
 0x8e4   :  { %v2430_v13 = vsel %vm2426_vm13, %v3834_v17, 16 }
 0x8e5   :  { %v2434_v45 = vsel %vm1269_vm10, %v2430_v13, 2147483647 }
 0x8e6   :  { %v2436_v49 = vshra.s32 %v2434_v45, 16  ;;  %v2422_v8 = vpop.xlane.xlu1 %2421  ;;  %v2435_v1 = vand.u32 65535, %v2434_v45 }
 0x8e7   :  { %vm2428_vm14 = vcmp.eq.f32.partialorder %v2412_v28, %v2422_v8 }
 0x8e8   :  { %v2432_v27 = vsel %vm2428_vm14, %v3834_v17, 16  ;;  %v2438_v53 = vcvt.s32.f32 %v2436_v49  ;;  %v2437_v59 = vcvt.s32.f32 %v2435_v1 }
 0x8e9   :  { %v2464_v62 = vsel %vm1269_vm10, %v2432_v27, 2147483647 }
 0x8ea   :  { %v2466_v15 = vshra.s32 %v2464_v62, 16  ;;  %2439 = vmin.xlane.f32.xlu1 %v2438_v53  ;;  %v2425_v24 = vpop.xlane.xlu0 %2424  ;;  %v2465_v25 = vand.u32 65535, %v2464_v62 }
 0x8eb   :  { %vm2429_vm15 = vcmp.eq.f32.partialorder %v2413_v51, %v2425_v24 }
 0x8ec   :  { %v2433_v11 = vsel %vm2429_vm15, %v3834_v17, 16  ;;  %v2468_v42 = vcvt.s32.f32 %v2466_v15  ;;  %v2467_v3 = vcvt.s32.f32 %v2465_v25 }
 0x8ed   :  { %v2479_v10 = vsel %vm1269_vm10, %v2433_v11, 2147483647 }
 0x8ee   :  { %v2481_v46 = vshra.s32 %v2479_v10, 16  ;;  %2469 = vmin.xlane.f32.xlu1 %v2468_v42  ;;  %v2480_v17 = vand.u32 65535, %v2479_v10 }
 0x8f0   :  { %v2483_v47 = vcvt.s32.f32 %v2481_v46  ;;  %v2482_v36 = vcvt.s32.f32 %v2480_v17 }
 0x8f2   :  { %2484 = vmin.xlane.f32.xlu0 %v2483_v47 }
 0x933   :  { %v2455_v61 = vpop.xlane.xlu0 %2454 }
 0x934   :  { %vm2456_vm0 = vcmp.eq.f32.partialorder %v2453_v56, %v2455_v61  ;;  %v2461_v12 = vcvt.f32.s32 %v2455_v61 }
 0x935   :  { %v2457_v14 = vsel %vm2456_vm0, %v2452_v50, inf }
 0x936   :  { %2458 = vmin.xlane.f32.xlu0 %v2457_v14  ;;  %v2462_v22 = vshll.u32 %v2461_v12, 16 }
 0x977   :  { %v2440_v33 = vpop.xlane.xlu1 %2439 }
 0x978   :  { %vm2441_vm1 = vcmp.eq.f32.partialorder %v2438_v53, %v2440_v33  ;;  %v2446_v21 = vcvt.f32.s32 %v2440_v33 }
 0x979   :  { %v2442_v7 = vsel %vm2441_vm1, %v2437_v59, inf }
 0x97a   :  { %2443 = vmin.xlane.f32.xlu1 %v2442_v7  ;;  %v2447_v31 = vshll.u32 %v2446_v21, 16 }
 0x97b   :  { %v2470_v6 = vpop.xlane.xlu1 %2469 }
 0x97c   :  { %vm2471_vm10 = vcmp.eq.f32.partialorder %v2468_v42, %v2470_v6  ;;  %v2476_v19 = vcvt.f32.s32 %v2470_v6 }
 0x97d   :  { %v2472_v0 = vsel %vm2471_vm10, %v2467_v3, inf }
 0x97e   :  { %2473 = vmin.xlane.f32.xlu1 %v2472_v0  ;;  %v2477_v38 = vshll.u32 %v2476_v19, 16 }
 0x97f   :  { %v2485_v57 = vpop.xlane.xlu0 %2484 }
 0x980   :  { %vm2486_vm11 = vcmp.eq.f32.partialorder %v2483_v47, %v2485_v57  ;;  %v2491_v58 = vcvt.f32.s32 %v2485_v57 }
 0x981   :  { %v2487_v54 = vsel %vm2486_vm11, %v2482_v36, inf }
 0x982   :  { %2488 = vmin.xlane.f32.xlu0 %v2487_v54  ;;  %v2492_v51 = vshll.u32 %v2491_v58, 16 }
 0x9c3   :  { %v2459_v4 = vpop.xlane.xlu0 %2458 }
 0x9c4   :  { %v2460_v18 = vcvt.f32.s32 %v2459_v4 }
 0x9c6   :  { %v2463_v37 = vadd.s32 %v2462_v22, %v2460_v18 }
 0x9c8   :  { %v2504_v43 = vrot.slane %v2463_v37, %v3000_v20 }
 0xa07   :  { %v2444_v41 = vpop.xlane.xlu1 %2443 }
 0xa08   :  { %v2445_v30 = vcvt.f32.s32 %v2444_v41 }
 0xa0a   :  { %v2448_v23 = vadd.s32 %v2447_v31, %v2445_v30 }
 0xa0b   :  { %v2474_v5 = vpop.xlane.xlu1 %2473 }
 0xa0c   :  { %v2500_v35 = vrot.slane %v2448_v23, %v2997_v40  ;;  %v2475_v28 = vcvt.f32.s32 %v2474_v5 }
 0xa0e   :  { %v2505_v63 = vsel %vm949_vm2, %v2504_v43, %v2500_v35  ;;  %v2478_v39 = vadd.s32 %v2477_v38, %v2475_v28 }
 0xa0f   :  { %v2489_v48 = vpop.xlane.xlu0 %2488  ;;  %v2519_v60 = vsel %vm2494_vm3, %v2505_v63, %v3621_v32 }
 0xa10   :  { %v2490_v44 = vcvt.f32.s32 %v2489_v48  ;;  %2522 = vst.msk [vmem:[#allocation2] sm:$0xf] %vm2521_vm4, %v2519_v60  ;;  %v2509_v52 = vrot.slane %v2478_v39, %v2997_v40 }
 0xa12   :  { %v2493_v2 = vadd.s32 %v2492_v51, %v2490_v44 }
 0xa14   :  { %v2513_v9 = vrot.slane %v2493_v2, %v3000_v20 }
 0xa16   :  { %v2514_v26 = vsel %vm949_vm2, %v2513_v9, %v2509_v52 }
 0xa17   :  { %v2520_v56 = vsel %vm2494_vm3, %v2514_v26, %v3635_v55 }
 0xa18   :  { %2523 = vst.msk [vmem:[#allocation2 + $0x4] sm:$0xf] %vm2521_vm4, %v2520_v56 }
 0xa19   :  { %2599 = shalt.err (!%p2596_p4)
}
 0xa1a   :  { %s2600_s18 = scalar_lea.hbm %s3673_s1, 128 }
 0xa1b   :  { %p2601_p5 = scmp.ne.s32.totalorder %s3673_s1, %s2600_s18  ;;  %p2604_p6 = scmp.lt.u32.totalorder %s2600_s18, %s3673_s1 }
 0xa1d   :  { %p2606_p7 = pnand %p2604_p6, %p2601_p5 }
 0xa1f   :  { %2609 = shalt.err (!%p2606_p7)
}
 0xa20   :  { %s2614_s23 = smov 64   ;;  %s2615_s24 = smov 4  }
 0xa21   :  { %2535 = dma.vmem_to_hbm [thread:$0]  %s2530_s14, 128, %s3673_s1, [#allocation3], %s2614_s23, %s2614_s23, %s2615_s24  }
 0xa22   :  { %2610 = dma.done.wait [#allocation3], 128  }
 0xa23   :  { %2611 = vsyncadd [#allocation3], 4294967168 }
 0xa24   :  { %2539 = vsyncpa [#allocation3], 1 }

</bundles_post_ra>
